<compile_context>
chip_gen: v7x
topology: tpu7x:2x2x1
jax: 0.10.0
libtpu: 0.0.40
codegen_flags: <defaults>
</compile_context>

<pallas_src>
import jax
import jax.numpy as jnp
from jax.experimental import pallas as pl
from jax.experimental.pallas import tpu as pltpu


def _make_attention_kernel(*, num_heads, head_dim, scale, sr_ratio, C):
    """Builds the fused per-batch attention kernel (static config closed over)."""

    def kernel(*refs):
        if sr_ratio > 1:
            (x_ref, xp_ref, wq_ref, bq_ref, wsr_ref, bsr_ref,
             lng_ref, lnb_ref, wkv_ref, bkv_ref, wp_ref, bp_ref, o_ref) = refs
        else:
            (x_ref, wq_ref, bq_ref,
             wkv_ref, bkv_ref, wp_ref, bp_ref, o_ref) = refs

        x = x_ref[...].astype(jnp.float32)                          # (N, C)

        # ---------------- q projection (MXU) ----------------
        q = jnp.dot(x, wq_ref[...],
                    preferred_element_type=jnp.float32) + bq_ref[...]   # (N, C)

        # ---------------- kv source ----------------
        if sr_ratio > 1:
            # Spatial-reduction Conv2d(kernel=stride=sr) == matmul on
            # pre-extracted non-overlapping patches, then LayerNorm(C).
            xp = xp_ref[...].astype(jnp.float32)                    # (Nk, C*sr*sr)
            xs = jnp.dot(xp, wsr_ref[...],
                         preferred_element_type=jnp.float32) + bsr_ref[...]
            mu = jnp.mean(xs, axis=-1, keepdims=True)
            var = jnp.mean(jnp.square(xs - mu), axis=-1, keepdims=True)
            xs = (xs - mu) * jax.lax.rsqrt(var + 1e-5)
            xs = xs * lng_ref[...] + lnb_ref[...]
        else:
            xs = x

        # ---------------- kv projection ----------------
        kv = jnp.dot(xs, wkv_ref[...],
                     preferred_element_type=jnp.float32) + bkv_ref[...]  # (Nk, 2C)
        k = kv[:, :C]                                               # (Nk, C)
        v = kv[:, C:]                                               # (Nk, C)

        # ---------------- per-head scaled-dot-product attention ----------------
        outs = []
        for h in range(num_heads):
            lo, hi = h * head_dim, (h + 1) * head_dim
            qh, kh, vh = q[:, lo:hi], k[:, lo:hi], v[:, lo:hi]
            # q @ k^T without materializing a transpose (contract last dims).
            s = jax.lax.dot_general(
                qh, kh, (((1,), (1,)), ((), ())),
                preferred_element_type=jnp.float32) * scale         # (N, Nk)
            m = jnp.max(s, axis=-1, keepdims=True)
            p = jnp.exp(s - m)
            p = p / jnp.sum(p, axis=-1, keepdims=True)              # softmax
            # TODO(synk): attn_drop (training-mode dropout) not implemented.
            outs.append(jnp.dot(p, vh, preferred_element_type=jnp.float32))
        o = jnp.concatenate(outs, axis=-1)                          # (N, C)

        # ---------------- output projection ----------------
        out = jnp.dot(o, wp_ref[...],
                      preferred_element_type=jnp.float32) + bp_ref[...]
        o_ref[...] = out.astype(o_ref.dtype)

    return kernel


def attention_forward(x, params, H, W, *, num_heads, sr_ratio=1):
    """Fused Pallas forward of the PyTorch Attention module (eval mode)."""
    B, N, C = x.shape
    assert N == H * W and C % num_heads == 0
    head_dim = C // num_heads
    scale = head_dim ** -0.5
    f32 = jnp.float32

    # Parameter re-layout (plain-JAX glue; weights transposed so kernel does x @ W).
    wq_t = params["wq"].T.astype(f32)                  # (C, C)
    bq = params["bq"].reshape(1, C).astype(f32)
    wkv_t = params["wkv"].T.astype(f32)                # (C, 2C)
    bkv = params["bkv"].reshape(1, 2 * C).astype(f32)
    wp_t = params["wproj"].T.astype(f32)               # (C, C)
    bp = params["bproj"].reshape(1, C).astype(f32)

    inputs = [x]
    in_specs = [pl.BlockSpec((None, N, C), lambda b: (b, 0, 0))]

    if sr_ratio > 1:
        sr = sr_ratio
        Hk, Wk = H // sr, W // sr
        Nk, Cp = Hk * Wk, C * sr * sr
        # Layout plumbing only: extract non-overlapping sr x sr patches,
        # flattened as (c_in, ky, kx) to match the OIHW conv-weight flattening.
        x_img = x.reshape(B, H, W, C).transpose(0, 3, 1, 2)          # (B, C, H, W)
        xp = (x_img.reshape(B, C, Hk, sr, Wk, sr)
                   .transpose(0, 2, 4, 1, 3, 5)
                   .reshape(B, Nk, Cp))
        wsr = params["sr_w"].reshape(C, Cp).T.astype(f32)            # (Cp, C)
        bsr = params["sr_b"].reshape(1, C).astype(f32)
        lng = params["ln_g"].reshape(1, C).astype(f32)
        lnb = params["ln_b"].reshape(1, C).astype(f32)
        inputs.append(xp)
        in_specs.append(pl.BlockSpec((None, Nk, Cp), lambda b: (b, 0, 0)))
        weights = [wq_t, bq, wsr, bsr, lng, lnb, wkv_t, bkv, wp_t, bp]
    else:
        weights = [wq_t, bq, wkv_t, bkv, wp_t, bp]

    inputs += weights
    in_specs += [pl.BlockSpec(w.shape, lambda b: (0, 0)) for w in weights]

    kernel = _make_attention_kernel(num_heads=num_heads, head_dim=head_dim,
                                    scale=scale, sr_ratio=sr_ratio, C=C)

    return pl.pallas_call(
        kernel,
        out_shape=jax.ShapeDtypeStruct((B, N, C), x.dtype),
        grid=(B,),
        in_specs=in_specs,
        out_specs=pl.BlockSpec((None, N, C), lambda b: (b, 0, 0)),
        compiler_params=pltpu.CompilerParams(
            dimension_semantics=("parallel",),
            vmem_limit_bytes=32 * 1024 * 1024),
    )(*inputs)


def attention_reference(x, params, H, W, *, num_heads, sr_ratio=1):
    """Pure-JAX reference matching the PyTorch forward (eval mode)."""
    B, N, C = x.shape
    hd = C // num_heads
    scale = hd ** -0.5
    with jax.default_matmul_precision("highest"):
        q = x @ params["wq"].T + params["bq"]
        q = q.reshape(B, N, num_heads, hd).transpose(0, 2, 1, 3)     # (B,h,N,hd)
        if sr_ratio > 1:
            x_ = x.transpose(0, 2, 1).reshape(B, C, H, W)
            x_ = jax.lax.conv_general_dilated(
                x_, params["sr_w"], (sr_ratio, sr_ratio), "VALID",
                dimension_numbers=("NCHW", "OIHW", "NCHW"))
            x_ = x_ + params["sr_b"][None, :, None, None]
            x_ = x_.reshape(B, C, -1).transpose(0, 2, 1)             # (B, Nk, C)
            mu = x_.mean(-1, keepdims=True)
            var = jnp.mean(jnp.square(x_ - mu), axis=-1, keepdims=True)
            x_ = (x_ - mu) / jnp.sqrt(var + 1e-5) * params["ln_g"] + params["ln_b"]
            kv_src = x_
        else:
            kv_src = x
        kv = kv_src @ params["wkv"].T + params["bkv"]
        Nk = kv.shape[1]
        kv = kv.reshape(B, Nk, 2, num_heads, hd).transpose(2, 0, 3, 1, 4)
        k, v = kv[0], kv[1]                                          # (B,h,Nk,hd)
        attn = jnp.einsum("bhnd,bhmd->bhnm", q, k) * scale
        attn = jax.nn.softmax(attn, axis=-1)
        o = jnp.einsum("bhnm,bhmd->bhnd", attn, v)
        o = o.transpose(0, 2, 1, 3).reshape(B, N, C)
        return o @ params["wproj"].T + params["bproj"]


if __name__ == "__main__":
    B, H, W = 2, 8, 8
    dim, num_heads = 128, 8
    N = H * W

    key = jax.random.PRNGKey(0)
    ks = jax.random.split(key, 10)
    s = 1.0 / float(jnp.sqrt(jnp.float32(dim)))
    x = jax.random.normal(ks[0], (B, N, dim), jnp.float32)
    params = dict(
        wq=jax.random.normal(ks[1], (dim, dim), jnp.float32) * s,
        bq=jnp.zeros((dim,), jnp.float32),                    # qkv_bias=False
        wkv=jax.random.normal(ks[2], (2 * dim, dim), jnp.float32) * s,
        bkv=jnp.zeros((2 * dim,), jnp.float32),               # qkv_bias=False
        sr_w=jax.random.normal(ks[3], (dim, dim, 2, 2), jnp.float32) * (s / 2.0),
        sr_b=jax.random.normal(ks[4], (dim,), jnp.float32) * 0.1,
        ln_g=1.0 + 0.1 * jax.random.normal(ks[5], (dim,), jnp.float32),
        ln_b=0.1 * jax.random.normal(ks[6], (dim,), jnp.float32),
        wproj=jax.random.normal(ks[7], (dim, dim), jnp.float32) * s,
        bproj=jax.random.normal(ks[8], (dim,), jnp.float32) * 0.1,
    )

    # sr_ratio > 1 path (spatial-reduction conv + LayerNorm before kv)
    out_sr = jax.block_until_ready(
        attention_forward(x, params, H, W, num_heads=num_heads, sr_ratio=2))
    ref_sr = jax.block_until_ready(
        attention_reference(x, params, H, W, num_heads=num_heads, sr_ratio=2))
    if not jnp.allclose(out_sr, ref_sr, rtol=2e-3, atol=2e-3):
        max_err = float(jnp.max(jnp.abs(out_sr - ref_sr)))
        raise AssertionError(f"sr_ratio=2 mismatch vs reference, max abs err = {max_err}")

    # sr_ratio == 1 path (kv straight from x)
    out_1 = jax.block_until_ready(
        attention_forward(x, params, H, W, num_heads=num_heads, sr_ratio=1))
    ref_1 = jax.block_until_ready(
        attention_reference(x, params, H, W, num_heads=num_heads, sr_ratio=1))
    if not jnp.allclose(out_1, ref_1, rtol=2e-3, atol=2e-3):
        max_err = float(jnp.max(jnp.abs(out_1 - ref_1)))
        raise AssertionError(f"sr_ratio=1 mismatch vs reference, max abs err = {max_err}")

    print("KERNEL_OK")
</pallas_src>

<mosaic_0001>
module attributes {stable_mosaic.version = 11 : i64} {
  func.func @kernel(%arg0: i32, %arg1: memref<1x64x128xf32, #tpu.memory_space<vmem>>, %arg2: memref<1x16x512xf32, #tpu.memory_space<vmem>>, %arg3: memref<128x128xf32, #tpu.memory_space<vmem>>, %arg4: memref<1x128xf32, #tpu.memory_space<vmem>>, %arg5: memref<512x128xf32, #tpu.memory_space<vmem>>, %arg6: memref<1x128xf32, #tpu.memory_space<vmem>>, %arg7: memref<1x128xf32, #tpu.memory_space<vmem>>, %arg8: memref<1x128xf32, #tpu.memory_space<vmem>>, %arg9: memref<128x256xf32, #tpu.memory_space<vmem>>, %arg10: memref<1x256xf32, #tpu.memory_space<vmem>>, %arg11: memref<128x128xf32, #tpu.memory_space<vmem>>, %arg12: memref<1x128xf32, #tpu.memory_space<vmem>>, %arg13: memref<1x64x128xf32, #tpu.memory_space<vmem>>) attributes {dimension_semantics = [#tpu.dimension_semantics<parallel>], iteration_bounds = array<i64: 2>, scalar_prefetch = 0 : i64, scratch_operands = 0 : i64, tpu.core_type = #tpu.core_type<tc>, window_params = [{transform_indices = @transform_0, window_bounds = array<i64: 1, 64, 128>}, {transform_indices = @transform_1, window_bounds = array<i64: 1, 16, 512>}, {pipeline_mode = #tpu.pipeline_mode<synchronous>, transform_indices = @transform_2, window_bounds = array<i64: 128, 128>}, {pipeline_mode = #tpu.pipeline_mode<synchronous>, transform_indices = @transform_3, window_bounds = array<i64: 1, 128>}, {pipeline_mode = #tpu.pipeline_mode<synchronous>, transform_indices = @transform_4, window_bounds = array<i64: 512, 128>}, {pipeline_mode = #tpu.pipeline_mode<synchronous>, transform_indices = @transform_5, window_bounds = array<i64: 1, 128>}, {pipeline_mode = #tpu.pipeline_mode<synchronous>, transform_indices = @transform_6, window_bounds = array<i64: 1, 128>}, {pipeline_mode = #tpu.pipeline_mode<synchronous>, transform_indices = @transform_7, window_bounds = array<i64: 1, 128>}, {pipeline_mode = #tpu.pipeline_mode<synchronous>, transform_indices = @transform_8, window_bounds = array<i64: 128, 256>}, {pipeline_mode = #tpu.pipeline_mode<synchronous>, transform_indices = @transform_9, window_bounds = array<i64: 1, 256>}, {pipeline_mode = #tpu.pipeline_mode<synchronous>, transform_indices = @transform_10, window_bounds = array<i64: 128, 128>}, {pipeline_mode = #tpu.pipeline_mode<synchronous>, transform_indices = @transform_11, window_bounds = array<i64: 1, 128>}, {transform_indices = @transform_12, window_bounds = array<i64: 1, 64, 128>}]} {
    %c0 = arith.constant 0 : index
    %c0_0 = arith.constant 0 : index
    %c0_1 = arith.constant 0 : index
    %0 = vector.load %arg1[%c0, %c0_0, %c0_1] : memref<1x64x128xf32, #tpu.memory_space<vmem>>, vector<1x64x128xf32>
    %1 = vector.shape_cast %0 : vector<1x64x128xf32> to vector<64x128xf32>
    %c0_2 = arith.constant 0 : index
    %c0_3 = arith.constant 0 : index
    %2 = vector.load %arg3[%c0_2, %c0_3] : memref<128x128xf32, #tpu.memory_space<vmem>>, vector<128x128xf32>
    %cst = arith.constant dense<0.000000e+00> : vector<64x128xf32>
    %3 = tpu.matmul %1, %2, %cst {dimension_numbers = #tpu.dot_dimension_numbers<[1], [0], [0], [1], [0, 0, 1, 1], [], []>} : vector<64x128xf32>, vector<128x128xf32>, vector<64x128xf32> -> vector<64x128xf32>
    %c0_4 = arith.constant 0 : index
    %c0_5 = arith.constant 0 : index
    %4 = vector.load %arg4[%c0_4, %c0_5] : memref<1x128xf32, #tpu.memory_space<vmem>>, vector<1x128xf32>
    %5 = vector.broadcast %4 : vector<1x128xf32> to vector<64x128xf32>
    %6 = arith.addf %3, %5 : vector<64x128xf32>
    %c0_6 = arith.constant 0 : index
    %c0_7 = arith.constant 0 : index
    %c0_8 = arith.constant 0 : index
    %7 = vector.load %arg2[%c0_6, %c0_7, %c0_8] : memref<1x16x512xf32, #tpu.memory_space<vmem>>, vector<1x16x512xf32>
    %8 = vector.shape_cast %7 : vector<1x16x512xf32> to vector<16x512xf32>
    %c0_9 = arith.constant 0 : index
    %c0_10 = arith.constant 0 : index
    %9 = vector.load %arg5[%c0_9, %c0_10] : memref<512x128xf32, #tpu.memory_space<vmem>>, vector<512x128xf32>
    %cst_11 = arith.constant dense<0.000000e+00> : vector<16x128xf32>
    %10 = tpu.matmul %8, %9, %cst_11 {dimension_numbers = #tpu.dot_dimension_numbers<[1], [0], [0], [1], [0, 0, 1, 1], [], []>} : vector<16x512xf32>, vector<512x128xf32>, vector<16x128xf32> -> vector<16x128xf32>
    %c0_12 = arith.constant 0 : index
    %c0_13 = arith.constant 0 : index
    %11 = vector.load %arg6[%c0_12, %c0_13] : memref<1x128xf32, #tpu.memory_space<vmem>>, vector<1x128xf32>
    %12 = vector.broadcast %11 : vector<1x128xf32> to vector<16x128xf32>
    %13 = arith.addf %10, %12 : vector<16x128xf32>
    %cst_14 = arith.constant dense<0.000000e+00> : vector<16xf32>
    %14 = vector.multi_reduction <add>, %13, %cst_14 [1] : vector<16x128xf32> to vector<16xf32>
    %15 = vector.shape_cast %14 : vector<16xf32> to vector<16x1xf32>
    %cst_15 = arith.constant 1.280000e+02 : f32
    %16 = vector.broadcast %cst_15 : f32 to vector<16x1xf32>
    %17 = arith.divf %15, %16 : vector<16x1xf32>
    %18 = vector.broadcast %17 : vector<16x1xf32> to vector<16x128xf32>
    %19 = arith.subf %13, %18 : vector<16x128xf32>
    %20 = arith.mulf %19, %19 : vector<16x128xf32>
    %cst_16 = arith.constant dense<0.000000e+00> : vector<16xf32>
    %21 = vector.multi_reduction <add>, %20, %cst_16 [1] : vector<16x128xf32> to vector<16xf32>
    %22 = vector.shape_cast %21 : vector<16xf32> to vector<16x1xf32>
    %cst_17 = arith.constant 1.280000e+02 : f32
    %23 = vector.broadcast %cst_17 : f32 to vector<16x1xf32>
    %24 = arith.divf %22, %23 : vector<16x1xf32>
    %25 = vector.broadcast %17 : vector<16x1xf32> to vector<16x128xf32>
    %26 = arith.subf %13, %25 : vector<16x128xf32>
    %cst_18 = arith.constant 9.99999974E-6 : f32
    %27 = vector.broadcast %cst_18 : f32 to vector<16x1xf32>
    %28 = arith.addf %24, %27 : vector<16x1xf32>
    %29 = math.rsqrt %28 : vector<16x1xf32>
    %30 = vector.broadcast %29 : vector<16x1xf32> to vector<16x128xf32>
    %31 = arith.mulf %26, %30 : vector<16x128xf32>
    %c0_19 = arith.constant 0 : index
    %c0_20 = arith.constant 0 : index
    %32 = vector.load %arg7[%c0_19, %c0_20] : memref<1x128xf32, #tpu.memory_space<vmem>>, vector<1x128xf32>
    %33 = vector.broadcast %32 : vector<1x128xf32> to vector<16x128xf32>
    %34 = arith.mulf %31, %33 : vector<16x128xf32>
    %c0_21 = arith.constant 0 : index
    %c0_22 = arith.constant 0 : index
    %35 = vector.load %arg8[%c0_21, %c0_22] : memref<1x128xf32, #tpu.memory_space<vmem>>, vector<1x128xf32>
    %36 = vector.broadcast %35 : vector<1x128xf32> to vector<16x128xf32>
    %37 = arith.addf %34, %36 : vector<16x128xf32>
    %c0_23 = arith.constant 0 : index
    %c0_24 = arith.constant 0 : index
    %38 = vector.load %arg9[%c0_23, %c0_24] : memref<128x256xf32, #tpu.memory_space<vmem>>, vector<128x256xf32>
    %cst_25 = arith.constant dense<0.000000e+00> : vector<16x256xf32>
    %39 = tpu.matmul %37, %38, %cst_25 {dimension_numbers = #tpu.dot_dimension_numbers<[1], [0], [0], [1], [0, 0, 1, 1], [], []>} : vector<16x128xf32>, vector<128x256xf32>, vector<16x256xf32> -> vector<16x256xf32>
    %c0_26 = arith.constant 0 : index
    %c0_27 = arith.constant 0 : index
    %40 = vector.load %arg10[%c0_26, %c0_27] : memref<1x256xf32, #tpu.memory_space<vmem>>, vector<1x256xf32>
    %41 = vector.broadcast %40 : vector<1x256xf32> to vector<16x256xf32>
    %42 = arith.addf %39, %41 : vector<16x256xf32>
    %43 = vector.extract_strided_slice %42 {offsets = [0, 0], sizes = [16, 128], strides = [1, 1]} : vector<16x256xf32> to vector<16x128xf32>
    %44 = vector.extract_strided_slice %42 {offsets = [0, 128], sizes = [16, 128], strides = [1, 1]} : vector<16x256xf32> to vector<16x128xf32>
    %45 = vector.extract_strided_slice %6 {offsets = [0, 0], sizes = [64, 16], strides = [1, 1]} : vector<64x128xf32> to vector<64x16xf32>
    %46 = vector.extract_strided_slice %43 {offsets = [0, 0], sizes = [16, 16], strides = [1, 1]} : vector<16x128xf32> to vector<16x16xf32>
    %47 = vector.extract_strided_slice %44 {offsets = [0, 0], sizes = [16, 16], strides = [1, 1]} : vector<16x128xf32> to vector<16x16xf32>
    %cst_28 = arith.constant dense<0.000000e+00> : vector<64x16xf32>
    %48 = tpu.matmul %45, %46, %cst_28 {dimension_numbers = #tpu.dot_dimension_numbers<[1], [1], [0], [0], [0, 0, 1, 0], [], []>} : vector<64x16xf32>, vector<16x16xf32>, vector<64x16xf32> -> vector<64x16xf32>
    %cst_29 = arith.constant 2.500000e-01 : f32
    %49 = vector.broadcast %cst_29 : f32 to vector<64x16xf32>
    %50 = arith.mulf %48, %49 : vector<64x16xf32>
    %cst_30 = arith.constant dense<0xFF800000> : vector<64xf32>
    %51 = vector.multi_reduction <maximumf>, %50, %cst_30 [1] : vector<64x16xf32> to vector<64xf32>
    %52 = vector.shape_cast %51 : vector<64xf32> to vector<64x1xf32>
    %53 = vector.broadcast %52 : vector<64x1xf32> to vector<64x16xf32>
    %54 = arith.subf %50, %53 : vector<64x16xf32>
    %55 = math.exp %54 : vector<64x16xf32>
    %cst_31 = arith.constant dense<0.000000e+00> : vector<64xf32>
    %56 = vector.multi_reduction <add>, %55, %cst_31 [1] : vector<64x16xf32> to vector<64xf32>
    %57 = vector.shape_cast %56 : vector<64xf32> to vector<64x1xf32>
    %58 = vector.broadcast %57 : vector<64x1xf32> to vector<64x16xf32>
    %59 = arith.divf %55, %58 : vector<64x16xf32>
    %cst_32 = arith.constant dense<0.000000e+00> : vector<64x16xf32>
    %60 = tpu.matmul %59, %47, %cst_32 {dimension_numbers = #tpu.dot_dimension_numbers<[1], [0], [0], [1], [0, 0, 1, 1], [], []>} : vector<64x16xf32>, vector<16x16xf32>, vector<64x16xf32> -> vector<64x16xf32>
    %61 = vector.extract_strided_slice %6 {offsets = [0, 16], sizes = [64, 16], strides = [1, 1]} : vector<64x128xf32> to vector<64x16xf32>
    %62 = vector.extract_strided_slice %43 {offsets = [0, 16], sizes = [16, 16], strides = [1, 1]} : vector<16x128xf32> to vector<16x16xf32>
    %63 = vector.extract_strided_slice %44 {offsets = [0, 16], sizes = [16, 16], strides = [1, 1]} : vector<16x128xf32> to vector<16x16xf32>
    %cst_33 = arith.constant dense<0.000000e+00> : vector<64x16xf32>
    %64 = tpu.matmul %61, %62, %cst_33 {dimension_numbers = #tpu.dot_dimension_numbers<[1], [1], [0], [0], [0, 0, 1, 0], [], []>} : vector<64x16xf32>, vector<16x16xf32>, vector<64x16xf32> -> vector<64x16xf32>
    %cst_34 = arith.constant 2.500000e-01 : f32
    %65 = vector.broadcast %cst_34 : f32 to vector<64x16xf32>
    %66 = arith.mulf %64, %65 : vector<64x16xf32>
    %cst_35 = arith.constant dense<0xFF800000> : vector<64xf32>
    %67 = vector.multi_reduction <maximumf>, %66, %cst_35 [1] : vector<64x16xf32> to vector<64xf32>
    %68 = vector.shape_cast %67 : vector<64xf32> to vector<64x1xf32>
    %69 = vector.broadcast %68 : vector<64x1xf32> to vector<64x16xf32>
    %70 = arith.subf %66, %69 : vector<64x16xf32>
    %71 = math.exp %70 : vector<64x16xf32>
    %cst_36 = arith.constant dense<0.000000e+00> : vector<64xf32>
    %72 = vector.multi_reduction <add>, %71, %cst_36 [1] : vector<64x16xf32> to vector<64xf32>
    %73 = vector.shape_cast %72 : vector<64xf32> to vector<64x1xf32>
    %74 = vector.broadcast %73 : vector<64x1xf32> to vector<64x16xf32>
    %75 = arith.divf %71, %74 : vector<64x16xf32>
    %cst_37 = arith.constant dense<0.000000e+00> : vector<64x16xf32>
    %76 = tpu.matmul %75, %63, %cst_37 {dimension_numbers = #tpu.dot_dimension_numbers<[1], [0], [0], [1], [0, 0, 1, 1], [], []>} : vector<64x16xf32>, vector<16x16xf32>, vector<64x16xf32> -> vector<64x16xf32>
    %77 = vector.extract_strided_slice %6 {offsets = [0, 32], sizes = [64, 16], strides = [1, 1]} : vector<64x128xf32> to vector<64x16xf32>
    %78 = vector.extract_strided_slice %43 {offsets = [0, 32], sizes = [16, 16], strides = [1, 1]} : vector<16x128xf32> to vector<16x16xf32>
    %79 = vector.extract_strided_slice %44 {offsets = [0, 32], sizes = [16, 16], strides = [1, 1]} : vector<16x128xf32> to vector<16x16xf32>
    %cst_38 = arith.constant dense<0.000000e+00> : vector<64x16xf32>
    %80 = tpu.matmul %77, %78, %cst_38 {dimension_numbers = #tpu.dot_dimension_numbers<[1], [1], [0], [0], [0, 0, 1, 0], [], []>} : vector<64x16xf32>, vector<16x16xf32>, vector<64x16xf32> -> vector<64x16xf32>
    %cst_39 = arith.constant 2.500000e-01 : f32
    %81 = vector.broadcast %cst_39 : f32 to vector<64x16xf32>
    %82 = arith.mulf %80, %81 : vector<64x16xf32>
    %cst_40 = arith.constant dense<0xFF800000> : vector<64xf32>
    %83 = vector.multi_reduction <maximumf>, %82, %cst_40 [1] : vector<64x16xf32> to vector<64xf32>
    %84 = vector.shape_cast %83 : vector<64xf32> to vector<64x1xf32>
    %85 = vector.broadcast %84 : vector<64x1xf32> to vector<64x16xf32>
    %86 = arith.subf %82, %85 : vector<64x16xf32>
    %87 = math.exp %86 : vector<64x16xf32>
    %cst_41 = arith.constant dense<0.000000e+00> : vector<64xf32>
    %88 = vector.multi_reduction <add>, %87, %cst_41 [1] : vector<64x16xf32> to vector<64xf32>
    %89 = vector.shape_cast %88 : vector<64xf32> to vector<64x1xf32>
    %90 = vector.broadcast %89 : vector<64x1xf32> to vector<64x16xf32>
    %91 = arith.divf %87, %90 : vector<64x16xf32>
    %cst_42 = arith.constant dense<0.000000e+00> : vector<64x16xf32>
    %92 = tpu.matmul %91, %79, %cst_42 {dimension_numbers = #tpu.dot_dimension_numbers<[1], [0], [0], [1], [0, 0, 1, 1], [], []>} : vector<64x16xf32>, vector<16x16xf32>, vector<64x16xf32> -> vector<64x16xf32>
    %93 = vector.extract_strided_slice %6 {offsets = [0, 48], sizes = [64, 16], strides = [1, 1]} : vector<64x128xf32> to vector<64x16xf32>
    %94 = vector.extract_strided_slice %43 {offsets = [0, 48], sizes = [16, 16], strides = [1, 1]} : vector<16x128xf32> to vector<16x16xf32>
    %95 = vector.extract_strided_slice %44 {offsets = [0, 48], sizes = [16, 16], strides = [1, 1]} : vector<16x128xf32> to vector<16x16xf32>
    %cst_43 = arith.constant dense<0.000000e+00> : vector<64x16xf32>
    %96 = tpu.matmul %93, %94, %cst_43 {dimension_numbers = #tpu.dot_dimension_numbers<[1], [1], [0], [0], [0, 0, 1, 0], [], []>} : vector<64x16xf32>, vector<16x16xf32>, vector<64x16xf32> -> vector<64x16xf32>
    %cst_44 = arith.constant 2.500000e-01 : f32
    %97 = vector.broadcast %cst_44 : f32 to vector<64x16xf32>
    %98 = arith.mulf %96, %97 : vector<64x16xf32>
    %cst_45 = arith.constant dense<0xFF800000> : vector<64xf32>
    %99 = vector.multi_reduction <maximumf>, %98, %cst_45 [1] : vector<64x16xf32> to vector<64xf32>
    %100 = vector.shape_cast %99 : vector<64xf32> to vector<64x1xf32>
    %101 = vector.broadcast %100 : vector<64x1xf32> to vector<64x16xf32>
    %102 = arith.subf %98, %101 : vector<64x16xf32>
    %103 = math.exp %102 : vector<64x16xf32>
    %cst_46 = arith.constant dense<0.000000e+00> : vector<64xf32>
    %104 = vector.multi_reduction <add>, %103, %cst_46 [1] : vector<64x16xf32> to vector<64xf32>
    %105 = vector.shape_cast %104 : vector<64xf32> to vector<64x1xf32>
    %106 = vector.broadcast %105 : vector<64x1xf32> to vector<64x16xf32>
    %107 = arith.divf %103, %106 : vector<64x16xf32>
    %cst_47 = arith.constant dense<0.000000e+00> : vector<64x16xf32>
    %108 = tpu.matmul %107, %95, %cst_47 {dimension_numbers = #tpu.dot_dimension_numbers<[1], [0], [0], [1], [0, 0, 1, 1], [], []>} : vector<64x16xf32>, vector<16x16xf32>, vector<64x16xf32> -> vector<64x16xf32>
    %109 = vector.extract_strided_slice %6 {offsets = [0, 64], sizes = [64, 16], strides = [1, 1]} : vector<64x128xf32> to vector<64x16xf32>
    %110 = vector.extract_strided_slice %43 {offsets = [0, 64], sizes = [16, 16], strides = [1, 1]} : vector<16x128xf32> to vector<16x16xf32>
    %111 = vector.extract_strided_slice %44 {offsets = [0, 64], sizes = [16, 16], strides = [1, 1]} : vector<16x128xf32> to vector<16x16xf32>
    %cst_48 = arith.constant dense<0.000000e+00> : vector<64x16xf32>
    %112 = tpu.matmul %109, %110, %cst_48 {dimension_numbers = #tpu.dot_dimension_numbers<[1], [1], [0], [0], [0, 0, 1, 0], [], []>} : vector<64x16xf32>, vector<16x16xf32>, vector<64x16xf32> -> vector<64x16xf32>
    %cst_49 = arith.constant 2.500000e-01 : f32
    %113 = vector.broadcast %cst_49 : f32 to vector<64x16xf32>
    %114 = arith.mulf %112, %113 : vector<64x16xf32>
    %cst_50 = arith.constant dense<0xFF800000> : vector<64xf32>
    %115 = vector.multi_reduction <maximumf>, %114, %cst_50 [1] : vector<64x16xf32> to vector<64xf32>
    %116 = vector.shape_cast %115 : vector<64xf32> to vector<64x1xf32>
    %117 = vector.broadcast %116 : vector<64x1xf32> to vector<64x16xf32>
    %118 = arith.subf %114, %117 : vector<64x16xf32>
    %119 = math.exp %118 : vector<64x16xf32>
    %cst_51 = arith.constant dense<0.000000e+00> : vector<64xf32>
    %120 = vector.multi_reduction <add>, %119, %cst_51 [1] : vector<64x16xf32> to vector<64xf32>
    %121 = vector.shape_cast %120 : vector<64xf32> to vector<64x1xf32>
    %122 = vector.broadcast %121 : vector<64x1xf32> to vector<64x16xf32>
    %123 = arith.divf %119, %122 : vector<64x16xf32>
    %cst_52 = arith.constant dense<0.000000e+00> : vector<64x16xf32>
    %124 = tpu.matmul %123, %111, %cst_52 {dimension_numbers = #tpu.dot_dimension_numbers<[1], [0], [0], [1], [0, 0, 1, 1], [], []>} : vector<64x16xf32>, vector<16x16xf32>, vector<64x16xf32> -> vector<64x16xf32>
    %125 = vector.extract_strided_slice %6 {offsets = [0, 80], sizes = [64, 16], strides = [1, 1]} : vector<64x128xf32> to vector<64x16xf32>
    %126 = vector.extract_strided_slice %43 {offsets = [0, 80], sizes = [16, 16], strides = [1, 1]} : vector<16x128xf32> to vector<16x16xf32>
    %127 = vector.extract_strided_slice %44 {offsets = [0, 80], sizes = [16, 16], strides = [1, 1]} : vector<16x128xf32> to vector<16x16xf32>
    %cst_53 = arith.constant dense<0.000000e+00> : vector<64x16xf32>
    %128 = tpu.matmul %125, %126, %cst_53 {dimension_numbers = #tpu.dot_dimension_numbers<[1], [1], [0], [0], [0, 0, 1, 0], [], []>} : vector<64x16xf32>, vector<16x16xf32>, vector<64x16xf32> -> vector<64x16xf32>
    %cst_54 = arith.constant 2.500000e-01 : f32
    %129 = vector.broadcast %cst_54 : f32 to vector<64x16xf32>
    %130 = arith.mulf %128, %129 : vector<64x16xf32>
    %cst_55 = arith.constant dense<0xFF800000> : vector<64xf32>
    %131 = vector.multi_reduction <maximumf>, %130, %cst_55 [1] : vector<64x16xf32> to vector<64xf32>
    %132 = vector.shape_cast %131 : vector<64xf32> to vector<64x1xf32>
    %133 = vector.broadcast %132 : vector<64x1xf32> to vector<64x16xf32>
    %134 = arith.subf %130, %133 : vector<64x16xf32>
    %135 = math.exp %134 : vector<64x16xf32>
    %cst_56 = arith.constant dense<0.000000e+00> : vector<64xf32>
    %136 = vector.multi_reduction <add>, %135, %cst_56 [1] : vector<64x16xf32> to vector<64xf32>
    %137 = vector.shape_cast %136 : vector<64xf32> to vector<64x1xf32>
    %138 = vector.broadcast %137 : vector<64x1xf32> to vector<64x16xf32>
    %139 = arith.divf %135, %138 : vector<64x16xf32>
    %cst_57 = arith.constant dense<0.000000e+00> : vector<64x16xf32>
    %140 = tpu.matmul %139, %127, %cst_57 {dimension_numbers = #tpu.dot_dimension_numbers<[1], [0], [0], [1], [0, 0, 1, 1], [], []>} : vector<64x16xf32>, vector<16x16xf32>, vector<64x16xf32> -> vector<64x16xf32>
    %141 = vector.extract_strided_slice %6 {offsets = [0, 96], sizes = [64, 16], strides = [1, 1]} : vector<64x128xf32> to vector<64x16xf32>
    %142 = vector.extract_strided_slice %43 {offsets = [0, 96], sizes = [16, 16], strides = [1, 1]} : vector<16x128xf32> to vector<16x16xf32>
    %143 = vector.extract_strided_slice %44 {offsets = [0, 96], sizes = [16, 16], strides = [1, 1]} : vector<16x128xf32> to vector<16x16xf32>
    %cst_58 = arith.constant dense<0.000000e+00> : vector<64x16xf32>
    %144 = tpu.matmul %141, %142, %cst_58 {dimension_numbers = #tpu.dot_dimension_numbers<[1], [1], [0], [0], [0, 0, 1, 0], [], []>} : vector<64x16xf32>, vector<16x16xf32>, vector<64x16xf32> -> vector<64x16xf32>
    %cst_59 = arith.constant 2.500000e-01 : f32
    %145 = vector.broadcast %cst_59 : f32 to vector<64x16xf32>
    %146 = arith.mulf %144, %145 : vector<64x16xf32>
    %cst_60 = arith.constant dense<0xFF800000> : vector<64xf32>
    %147 = vector.multi_reduction <maximumf>, %146, %cst_60 [1] : vector<64x16xf32> to vector<64xf32>
    %148 = vector.shape_cast %147 : vector<64xf32> to vector<64x1xf32>
    %149 = vector.broadcast %148 : vector<64x1xf32> to vector<64x16xf32>
    %150 = arith.subf %146, %149 : vector<64x16xf32>
    %151 = math.exp %150 : vector<64x16xf32>
    %cst_61 = arith.constant dense<0.000000e+00> : vector<64xf32>
    %152 = vector.multi_reduction <add>, %151, %cst_61 [1] : vector<64x16xf32> to vector<64xf32>
    %153 = vector.shape_cast %152 : vector<64xf32> to vector<64x1xf32>
    %154 = vector.broadcast %153 : vector<64x1xf32> to vector<64x16xf32>
    %155 = arith.divf %151, %154 : vector<64x16xf32>
    %cst_62 = arith.constant dense<0.000000e+00> : vector<64x16xf32>
    %156 = tpu.matmul %155, %143, %cst_62 {dimension_numbers = #tpu.dot_dimension_numbers<[1], [0], [0], [1], [0, 0, 1, 1], [], []>} : vector<64x16xf32>, vector<16x16xf32>, vector<64x16xf32> -> vector<64x16xf32>
    %157 = vector.extract_strided_slice %6 {offsets = [0, 112], sizes = [64, 16], strides = [1, 1]} : vector<64x128xf32> to vector<64x16xf32>
    %158 = vector.extract_strided_slice %43 {offsets = [0, 112], sizes = [16, 16], strides = [1, 1]} : vector<16x128xf32> to vector<16x16xf32>
    %159 = vector.extract_strided_slice %44 {offsets = [0, 112], sizes = [16, 16], strides = [1, 1]} : vector<16x128xf32> to vector<16x16xf32>
    %cst_63 = arith.constant dense<0.000000e+00> : vector<64x16xf32>
    %160 = tpu.matmul %157, %158, %cst_63 {dimension_numbers = #tpu.dot_dimension_numbers<[1], [1], [0], [0], [0, 0, 1, 0], [], []>} : vector<64x16xf32>, vector<16x16xf32>, vector<64x16xf32> -> vector<64x16xf32>
    %cst_64 = arith.constant 2.500000e-01 : f32
    %161 = vector.broadcast %cst_64 : f32 to vector<64x16xf32>
    %162 = arith.mulf %160, %161 : vector<64x16xf32>
    %cst_65 = arith.constant dense<0xFF800000> : vector<64xf32>
    %163 = vector.multi_reduction <maximumf>, %162, %cst_65 [1] : vector<64x16xf32> to vector<64xf32>
    %164 = vector.shape_cast %163 : vector<64xf32> to vector<64x1xf32>
    %165 = vector.broadcast %164 : vector<64x1xf32> to vector<64x16xf32>
    %166 = arith.subf %162, %165 : vector<64x16xf32>
    %167 = math.exp %166 : vector<64x16xf32>
    %cst_66 = arith.constant dense<0.000000e+00> : vector<64xf32>
    %168 = vector.multi_reduction <add>, %167, %cst_66 [1] : vector<64x16xf32> to vector<64xf32>
    %169 = vector.shape_cast %168 : vector<64xf32> to vector<64x1xf32>
    %170 = vector.broadcast %169 : vector<64x1xf32> to vector<64x16xf32>
    %171 = arith.divf %167, %170 : vector<64x16xf32>
    %cst_67 = arith.constant dense<0.000000e+00> : vector<64x16xf32>
    %172 = tpu.matmul %171, %159, %cst_67 {dimension_numbers = #tpu.dot_dimension_numbers<[1], [0], [0], [1], [0, 0, 1, 1], [], []>} : vector<64x16xf32>, vector<16x16xf32>, vector<64x16xf32> -> vector<64x16xf32>
    %173 = tpu.concatenate %60, %76, %92, %108, %124, %140, %156, %172 in 1 : vector<64x16xf32>, vector<64x16xf32>, vector<64x16xf32>, vector<64x16xf32>, vector<64x16xf32>, vector<64x16xf32>, vector<64x16xf32>, vector<64x16xf32> -> vector<64x128xf32>
    %c0_68 = arith.constant 0 : index
    %c0_69 = arith.constant 0 : index
    %174 = vector.load %arg11[%c0_68, %c0_69] : memref<128x128xf32, #tpu.memory_space<vmem>>, vector<128x128xf32>
    %cst_70 = arith.constant dense<0.000000e+00> : vector<64x128xf32>
    %175 = tpu.matmul %173, %174, %cst_70 {dimension_numbers = #tpu.dot_dimension_numbers<[1], [0], [0], [1], [0, 0, 1, 1], [], []>} : vector<64x128xf32>, vector<128x128xf32>, vector<64x128xf32> -> vector<64x128xf32>
    %c0_71 = arith.constant 0 : index
    %c0_72 = arith.constant 0 : index
    %176 = vector.load %arg12[%c0_71, %c0_72] : memref<1x128xf32, #tpu.memory_space<vmem>>, vector<1x128xf32>
    %177 = vector.broadcast %176 : vector<1x128xf32> to vector<64x128xf32>
    %178 = arith.addf %175, %177 : vector<64x128xf32>
    %c0_73 = arith.constant 0 : index
    %c0_74 = arith.constant 0 : index
    %c0_75 = arith.constant 0 : index
    %179 = vector.load %arg13[%c0_73, %c0_74, %c0_75] : memref<1x64x128xf32, #tpu.memory_space<vmem>>, vector<1x64x128xf32>
    %180 = vector.shape_cast %179 : vector<1x64x128xf32> to vector<64x128xf32>
    %181 = vector.shape_cast %178 : vector<64x128xf32> to vector<1x64x128xf32>
    tpu.vector_store %arg13[%c0_73, %c0_74, %c0_75], %181 {strides = array<i32>} : memref<1x64x128xf32, #tpu.memory_space<vmem>>, vector<1x64x128xf32>,
    return
  }
  func.func @transform_0(%arg0: i32) -> (i32, i32, i32) {
    %c0_i32 = arith.constant 0 : i32
    %c0_i32_0 = arith.constant 0 : i32
    %c0_i32_1 = arith.constant 0 : i32
    return %arg0, %c0_i32, %c0_i32_0 : i32, i32, i32
  }
  func.func @transform_1(%arg0: i32) -> (i32, i32, i32) {
    %c0_i32 = arith.constant 0 : i32
    %c0_i32_0 = arith.constant 0 : i32
    %c0_i32_1 = arith.constant 0 : i32
    return %arg0, %c0_i32, %c0_i32_0 : i32, i32, i32
  }
  func.func @transform_2(%arg0: i32) -> (i32, i32) {
    %c0_i32 = arith.constant 0 : i32
    %c0_i32_0 = arith.constant 0 : i32
    %c0_i32_1 = arith.constant 0 : i32
    return %c0_i32, %c0_i32_0 : i32, i32
  }
  func.func @transform_3(%arg0: i32) -> (i32, i32) {
    %c0_i32 = arith.constant 0 : i32
    %c0_i32_0 = arith.constant 0 : i32
    %c0_i32_1 = arith.constant 0 : i32
    return %c0_i32, %c0_i32_0 : i32, i32
  }
  func.func @transform_4(%arg0: i32) -> (i32, i32) {
    %c0_i32 = arith.constant 0 : i32
    %c0_i32_0 = arith.constant 0 : i32
    %c0_i32_1 = arith.constant 0 : i32
    return %c0_i32, %c0_i32_0 : i32, i32
  }
  func.func @transform_5(%arg0: i32) -> (i32, i32) {
    %c0_i32 = arith.constant 0 : i32
    %c0_i32_0 = arith.constant 0 : i32
    %c0_i32_1 = arith.constant 0 : i32
    return %c0_i32, %c0_i32_0 : i32, i32
  }
  func.func @transform_6(%arg0: i32) -> (i32, i32) {
    %c0_i32 = arith.constant 0 : i32
    %c0_i32_0 = arith.constant 0 : i32
    %c0_i32_1 = arith.constant 0 : i32
    return %c0_i32, %c0_i32_0 : i32, i32
  }
  func.func @transform_7(%arg0: i32) -> (i32, i32) {
    %c0_i32 = arith.constant 0 : i32
    %c0_i32_0 = arith.constant 0 : i32
    %c0_i32_1 = arith.constant 0 : i32
    return %c0_i32, %c0_i32_0 : i32, i32
  }
  func.func @transform_8(%arg0: i32) -> (i32, i32) {
    %c0_i32 = arith.constant 0 : i32
    %c0_i32_0 = arith.constant 0 : i32
    %c0_i32_1 = arith.constant 0 : i32
    return %c0_i32, %c0_i32_0 : i32, i32
  }
  func.func @transform_9(%arg0: i32) -> (i32, i32) {
    %c0_i32 = arith.constant 0 : i32
    %c0_i32_0 = arith.constant 0 : i32
    %c0_i32_1 = arith.constant 0 : i32
    return %c0_i32, %c0_i32_0 : i32, i32
  }
  func.func @transform_10(%arg0: i32) -> (i32, i32) {
    %c0_i32 = arith.constant 0 : i32
    %c0_i32_0 = arith.constant 0 : i32
    %c0_i32_1 = arith.constant 0 : i32
    return %c0_i32, %c0_i32_0 : i32, i32
  }
  func.func @transform_11(%arg0: i32) -> (i32, i32) {
    %c0_i32 = arith.constant 0 : i32
    %c0_i32_0 = arith.constant 0 : i32
    %c0_i32_1 = arith.constant 0 : i32
    return %c0_i32, %c0_i32_0 : i32, i32
  }
  func.func @transform_12(%arg0: i32) -> (i32, i32, i32) {
    %c0_i32 = arith.constant 0 : i32
    %c0_i32_0 = arith.constant 0 : i32
    %c0_i32_1 = arith.constant 0 : i32
    return %arg0, %c0_i32, %c0_i32_0 : i32, i32, i32
  }
}

</mosaic_0001>

<bundles_post_ra>
// kernel: tpu_custom_call.1
= control target key start
LH: loop header
LB: loop body
LE: loop exit
PB: predicated region body
PF: predicated region fallthrough
CT: control target
= control target key end

     0   :  { %s8208_s0 = inlined_call_operand.hbm [shape: f32[2,64,128], index: 0, kind: input, shape index: {}]   ;;  %s8209_s1 = inlined_call_operand.hbm [shape: f32[2,16,512], index: 1, kind: input, shape index: {}]   ;;  %s8210_s2 = inlined_call_operand.hbm [shape: f32[128,128], index: 2, kind: input, shape index: {}]   ;;  %s8211_s3 = inlined_call_operand.vmem [shape: f32[1,128], index: 3, kind: input, shape index: {}]   ;;  %s8212_s4 = inlined_call_operand.hbm [shape: f32[512,128], index: 4, kind: input, shape index: {}]   ;;  %s8213_s5 = inlined_call_operand.vmem [shape: f32[1,128], index: 5, kind: input, shape index: {}]   ;;  %s8214_s6 = inlined_call_operand.vmem [shape: f32[1,128], index: 6, kind: input, shape index: {}]   ;;  %s8215_s7 = inlined_call_operand.vmem [shape: f32[1,128], index: 7, kind: input, shape index: {}]   ;;  %s8216_s8 = inlined_call_operand.hbm [shape: f32[128,256], index: 8, kind: input, shape index: {}]   ;;  %s8217_s9 = inlined_call_operand.vmem [shape: f32[1,256], index: 9, kind: input, shape index: {}]   ;;  %s8218_s10 = inlined_call_operand.hbm [shape: f32[128,128], index: 10, kind: input, shape index: {}]   ;;  %s8219_s11 = inlined_call_operand.vmem [shape: f32[1,128], index: 11, kind: input, shape index: {}]   ;;  %s8220_s12 = inlined_call_operand.hbm [shape: f32[2,64,128], index: 12, kind: output, shape index: {}]  }
   0x1   :  { %8259 = sst [smem:[#allocation43_spill]] %s8210_s2 }
   0x2   :  { %8260 = sst [smem:[#allocation44_spill]] %s8212_s4 }
   0x3   :  { %8261 = sst [smem:[#allocation45_spill]] %s8215_s7 }
   0x4   :  { %8262 = sst [smem:[#allocation46_spill]] %s8216_s8 }
   0x5   :  { %8263 = sst [smem:[#allocation47_spill]] %s8217_s9 }
   0x6   :  { %8264 = sst [smem:[#allocation48_spill]] %s8218_s10 }
   0x7   :  { %8265 = sst [smem:[#allocation49_spill]] %s8219_s11 }
   0x8   :  { %8266 = sst [smem:[#allocation50_spill]] %s8220_s12 }
   0x9   :  { %17 = vsyncpa [#allocation3], 0 }
   0xa   :  { %19 = vsyncpa [#allocation3 + $0x1], 0 }
   0xb   :  { %20 = vsyncpa [#allocation6], 0 }
   0xc   :  { %22 = vsyncpa [#allocation6 + $0x1], 0 }
   0xd   :  { %23 = vsyncpa [#allocation9], 0 }
   0xe   :  { %24 = vsyncpa [#allocation12], 0 }
   0xf   :  { %25 = vsyncpa [#allocation4], 0 }
  0x10   :  { %27 = vsyncpa [#allocation4 + $0x1], 0  ;;  %s6590_s21 = smov 0   ;;  %s6592_s22 = smov 0  }
  0x11   :  { %s6594_s23 = smov 0   ;;  %s6596_s24 = smov 0  }
  0x12 LB: > { %8267 = sst [smem:[#allocation20_spill]] %s6488_s21  ;;  %s6611_s25 = sadd.s32 4294967295, %s6500_s24   ;;  %s6500_s24 = sphi %s6596_s24, %s8359_s24   ;;  %s6496_s23 = sphi %s6594_s23, %s8358_s23   ;;  %s6492_s22 = sphi %s6592_s22, %s8357_s22   ;;  %s6488_s21 = sphi %s6590_s21, %s8356_s21  }
  0x13   : > { %s4622_s26 = sadd.s32 4294967294, %s6500_s24   ;;  %p53_p0 = scmp.ne.s32.totalorder %s6492_s22, %s6488_s21 }
  0x14   : > { %p8223_p1 = scmp.eq.s32.totalorder %s6611_s25, 0  ;;  %p319_p3 = scmp.eq.s32.totalorder %s4622_s26, 1 }
  0x15   : > { %p4623_p5 = scmp.ge.s32.totalorder %s6500_s24, 1  ;;  %p326_p7 = scmp.lt.s32.totalorder %s6500_s24, 3 }
  0x16   : > { %p6620_p4 = por %p8223_p1, %p53_p0  ;;  %p6625_p6 = por %p319_p3, %p53_p0 }
  0x17   : > { %p6630_p8 = pnand %p4623_p5, %p326_p7  ;;  %s6502_s30 = smov [#allocation7]  }
  0x18   : > { %s8268_s27 = scalar_select %p6620_p4, 1, 0 }
  0x19   : > { %s8269_s28 = scalar_select %p6625_p6, 1, 0 }
  0x1a   : > { %s8271_s29 = scalar_select %p6630_p8, 1, 0 }
  0x1b   : > { %8270 = sst [smem:[#allocation21_spill]] %s8269_s28  ;;  %s338_s13 = sshll.u32 %s6502_s30, 4  ;;  %s6634_s13 = int_to_ptr.vmem [resolvable:$true] %s338_s13 }
  0x1c   : > { %p5690_p9 = pneg %p6630_p8  ;;  %s6503_s15 = smov [#allocation8]  }
  0x1d   : > { %s354_s16 = sshll.u32 %s6503_s15, 4  ;;  %s6504_s17 = smov [#allocation10]   ;;  %s6645_s16 = int_to_ptr.vmem [resolvable:$true] %s354_s16 }
  0x1e   : > { %p6641_p11 = pnand %p5690_p9, %p8223_p1  ;;  %s6647_s18 = sshll.u32 %s6504_s17, 4  ;;  %s377_s18 = int_to_ptr.vmem [resolvable:$true] %s6647_s18 }
  0x1f   : > { %s8273_s2 = sld [smem:[#allocation43_spill]] }
  0x20   : > { %p6657_p13 = pneg %p6641_p11 }
  0x25   : > { %s6246_s26 = scalar_lea.hbm %s8273_s2, 2048 }
  0x26   : > { %p6247_p12 = scmp.ne.s32.totalorder %s8273_s2, %s6246_s26  ;;  %p6253_p5 = scmp.lt.u32.totalorder %s6246_s26, %s8273_s2 }
  0x28   : > { %p6249_p0 = pnand %p6657_p13, %p6247_p12 }
  0x2a   : > { %p6250_p3 = pneg %p6249_p0 }
  0x2c   : > { %p6255_p7 = pnand %p6253_p5, %p6250_p3 }
  0x2e   : > { %6258 = shalt.err (!%p6255_p7)
}
  0x2f   : > { %s6259_s28 = scalar_lea.vmem %s6634_s13, 2048  ;;  %p6267_p2 = scmp.lt.s32.totalorder %s6634_s13, %s6634_s13 }
  0x30   : > { %p6260_p9 = scmp.ne.s32.totalorder %s6634_s13, %s6259_s28  ;;  %p6268_p6 = scmp.lt.s32.totalorder %s6259_s28, %s6259_s28 }
  0x32   : > { %p6262_p10 = pnand %p6260_p9, %p6657_p13  ;;  %p6269_p12 = por %p6268_p6, %p6267_p2 }
  0x34   : > { %p6263_p1 = pneg %p6262_p10 }
  0x36   : > { %p6270_p0 = pnand %p6269_p12, %p6263_p1 }
  0x38   : > { %6273 = shalt.err (!%p6270_p0)
}
  0x39   : > { %s8227_s19 = smov 128   ;;  %s8229_s20 = smov 8  }
  0x3a   : > { %5693 = dma.hbm_to_vmem [thread:$0]  (!%p6641_p11), %s8273_s2, 2048, %s6634_s13, [#allocation6], %s8227_s19, %s8227_s19, %s8229_s20  }
  0x3b   : > { %s8275_s4 = sld [smem:[#allocation44_spill]] }
  0x41   : > { %s6274_s28 = scalar_lea.hbm %s8275_s4, 8192 }
  0x42   : > { %p6275_p1 = scmp.ne.s32.totalorder %s8275_s4, %s6274_s28  ;;  %p6281_p10 = scmp.lt.u32.totalorder %s6274_s28, %s8275_s4 }
  0x44   : > { %p6277_p2 = pnand %p6275_p1, %p6657_p13 }
  0x46   : > { %p6278_p6 = pneg %p6277_p2 }
  0x48   : > { %p6283_p3 = pnand %p6281_p10, %p6278_p6 }
  0x4a   : > { %6286 = shalt.err (!%p6283_p3)
}
  0x4b   : > { %s6287_s13 = scalar_lea.vmem %s6645_s16, 8192  ;;  %p6295_p12 = scmp.lt.s32.totalorder %s6645_s16, %s6645_s16 }
  0x4c   : > { %p6288_p5 = scmp.ne.s32.totalorder %s6645_s16, %s6287_s13  ;;  %p6296_p0 = scmp.lt.s32.totalorder %s6287_s13, %s6287_s13 }
  0x4e   : > { %p6290_p7 = pnand %p6288_p5, %p6657_p13  ;;  %p6297_p1 = por %p6296_p0, %p6295_p12 }
  0x50   : > { %p6291_p9 = pneg %p6290_p7 }
  0x52   : > { %p6298_p2 = pnand %p6297_p1, %p6291_p9 }
  0x54   : > { %6301 = shalt.err (!%p6298_p2)
}
  0x55   : > { %5696 = dma.hbm_to_vmem [thread:$0]  (!%p6641_p11), %s8275_s4, 8192, %s6645_s16, [#allocation9], %s8227_s19, %s8227_s19, %s8229_s20  }
  0x56   : > { %s8276_s8 = sld [smem:[#allocation46_spill]] }
  0x5c   : > { %s6302_s26 = scalar_lea.hbm %s8276_s8, 4096 }
  0x5d   : > { %p6303_p6 = scmp.ne.s32.totalorder %s8276_s8, %s6302_s26  ;;  %p6309_p5 = scmp.lt.u32.totalorder %s6302_s26, %s8276_s8 }
  0x5f   : > { %p6305_p10 = pnand %p6303_p6, %p6657_p13 }
  0x61   : > { %p6306_p3 = pneg %p6305_p10 }
  0x63   : > { %p6311_p7 = pnand %p6309_p5, %p6306_p3 }
  0x65   : > { %6314 = shalt.err (!%p6311_p7)
}
  0x66   : > { %s6315_s13 = scalar_lea.vmem %s377_s18, 4096  ;;  %p6323_p1 = scmp.lt.s32.totalorder %s377_s18, %s377_s18 }
  0x67   : > { %p6316_p9 = scmp.ne.s32.totalorder %s377_s18, %s6315_s13  ;;  %p6324_p2 = scmp.lt.s32.totalorder %s6315_s13, %s6315_s13 }
  0x69   : > { %p6318_p12 = pnand %p6316_p9, %p6657_p13  ;;  %p6325_p4 = por %p6324_p2, %p6323_p1 }
  0x6b   : > { %p6319_p0 = pneg %p6318_p12 }
  0x6d   : > { %p6326_p8 = pnand %p6325_p4, %p6319_p0 }
  0x6f   : > { %6329 = shalt.err (!%p6326_p8)
}
  0x70   : > { %s6507_s16 = smov 256   ;;  %s6508_s7 = smov 16  }
  0x71   : > { %5699 = dma.hbm_to_vmem [thread:$0]  (!%p6641_p11), %s8276_s8, 4096, %s377_s18, [#allocation9], %s6507_s16, %s6507_s16, %s6508_s7  }
  0x72   : > { %s6509_s12 = smov [#allocation11]   ;;  %s8277_s10 = sld [smem:[#allocation48_spill]] }
  0x73   : > { %s392_s26 = sshll.u32 %s6509_s12, 4  ;;  %s393_s26 = int_to_ptr.vmem [resolvable:$true] %s392_s26 }
  0x78   : > { %s6330_s17 = scalar_lea.hbm %s8277_s10, 2048 }
  0x79   : > { %p6331_p4 = scmp.ne.s32.totalorder %s8277_s10, %s6330_s17  ;;  %p6337_p10 = scmp.lt.u32.totalorder %s6330_s17, %s8277_s10 }
  0x7b   : > { %p6333_p8 = pnand %p6331_p4, %p6657_p13 }
  0x7d   : > { %p6334_p6 = pneg %p6333_p8 }
  0x7f   : > { %p6339_p3 = pnand %p6337_p10, %p6334_p6 }
  0x81   : > { %6342 = shalt.err (!%p6339_p3)
}
  0x82   : > { %s6343_s18 = scalar_lea.vmem %s393_s26, 2048  ;;  %p6351_p12 = scmp.lt.s32.totalorder %s393_s26, %s393_s26 }
  0x83   : > { %p6344_p5 = scmp.ne.s32.totalorder %s393_s26, %s6343_s18  ;;  %p6352_p0 = scmp.lt.s32.totalorder %s6343_s18, %s6343_s18 }
  0x85   : > { %p6346_p7 = pnand %p6344_p5, %p6657_p13  ;;  %p6353_p1 = por %p6352_p0, %p6351_p12 }
  0x87   : > { %p6347_p9 = pneg %p6346_p7 }
  0x89   : > { %p6354_p2 = pnand %p6353_p1, %p6347_p9 }
  0x8b   : > { %6357 = shalt.err (!%p6354_p2)
}
  0x8c   : > { %s8278_s16 = smov 8   ;;  %s8279_s7 = smov 128  }
  0x8d   : > { %5702 = dma.hbm_to_vmem [thread:$0]  (!%p6641_p11), %s8277_s10, 2048, %s393_s26, [#allocation12], %s8279_s7, %s8279_s7, %s8278_s16  }
  0x8e   : > { %s6748_s21 = sadd.s32 1, %s6500_s24   ;;  %s40_s14 = sadd.s32 1, %s6496_s23 }
  0x8f   : > { %s37_s9 = ssub.s32 %s6500_s24, %s6748_s21  ;;  %p47_p13 = scmp.ne.s32.totalorder %s6496_s23, %s6492_s22 }
  0x90   : > { %p38_p4 = scmp.eq.s32.totalorder %s37_s9, 0  ;;  %p48_p8 = scmp.eq.s32.totalorder %s6500_s24, 0 }
  0x91   : > { %p8280_p6 = scmp.eq.s32.totalorder %s6611_s25, 1  ;;  %p5718_p3 = scmp.lt.s32.totalorder %s6500_s24, 2 }
  0x92   : > { %s6764_s12 = scalar_select %p38_p4, %s6496_s23, %s40_s14  }
  0x93   : > { %p6758_p10 = por %p8280_p6, %p47_p13  ;;  %p49_p5 = por %p48_p8, %p47_p13 }
  0x94   : > { %s409_s30 = sand.u32 1, %s6496_s23   ;;  %s4797_s26 = sshll.u32 %s6500_s24, 10 }
  0x95   : > { %s4629_s15 = sshll.u32 %s409_s30, 6  ;;  %s6771_s13 = scalar_lea.hbm %s8208_s0, %s4797_s26 }
  0x96   : > { %s413_s18 = scalar_lea.vmem [#allocation2], %s4629_s15  ;;  %p6775_p11 = pnand %p5718_p3, %p49_p5 }
  0x97   : > { %s420_s19 = sshll.u32 %s413_s18, 4  ;;  %s6782_s17 = scalar_lea.hbm %s8209_s1, %s4797_s26  ;;  %s6773_s19 = int_to_ptr.vmem [resolvable:$true] %s420_s19 }
  0x98   : > { %s434_s28 = scalar_lea.vmem [#allocation5], %s4629_s15  ;;  %s6786_s4 = scalar_lea.sflag [#allocation3], %s409_s30 }
  0x99   : > { %s6784_s2 = sshll.u32 %s434_s28, 4  ;;  %s6358_s18 = scalar_lea.hbm %s6771_s13, 1024  ;;  %s6818_s2 = int_to_ptr.vmem [resolvable:$true] %s6784_s2 }
  0x9a   : > { %p6359_p7 = scmp.ne.s32.totalorder %s6771_s13, %s6358_s18  ;;  %p6360_p9 = pneg %p6775_p11 }
  0x9b   : > { %s6363_s14 = scalar_lea.hbm %s8208_s0, 2048  ;;  %p6364_p1 = scmp.lt.u32.totalorder %s6771_s13, %s8208_s0 }
  0x9c   : > { %p6361_p12 = pnand %p6360_p9, %p6359_p7  ;;  %p6365_p2 = scmp.lt.u32.totalorder %s6363_s14, %s6358_s18 }
  0x9d   : > { %p6367_p4 = scmp.lt.u32.totalorder %s6358_s18, %s6771_s13 }
  0x9e   : > { %p6362_p0 = pneg %p6361_p12  ;;  %p6366_p13 = por %p6365_p2, %p6364_p1 }
  0xa0   : > { %p6368_p8 = por %p6367_p4, %p6366_p13 }
  0xa2   : > { %p6369_p6 = pnand %p6368_p8, %p6362_p0 }
  0xa4   : > { %6372 = shalt.err (!%p6369_p6)
}
  0xa5   : > { %s6373_s30 = scalar_lea.vmem %s6773_s19, 1024  ;;  %s6510_s8 = smov [#allocation2]  }
  0xa6   : > { %p6374_p3 = scmp.ne.s32.totalorder %s6773_s19, %s6373_s30  ;;  %s6378_s10 = sshll.u32 %s6510_s8, 4  ;;  %s6379_s10 = int_to_ptr.vmem [resolvable:$false] %s6378_s10 }
  0xa7   : > { %s6380_s15 = scalar_lea.vmem %s6379_s10, 2048  ;;  %p6381_p12 = scmp.lt.s32.totalorder %s6773_s19, %s6379_s10 }
  0xa8   : > { %p6376_p5 = pnand %p6374_p3, %p6360_p9  ;;  %p6382_p1 = scmp.lt.s32.totalorder %s6380_s15, %s6373_s30 }
  0xaa   : > { %p6377_p7 = pneg %p6376_p5  ;;  %p6383_p2 = por %p6382_p1, %p6381_p12 }
  0xac   : > { %p6384_p13 = pnand %p6383_p2, %p6377_p7 }
  0xae   : > { %6387 = shalt.err (!%p6384_p13)
}
  0xaf   : > { %5706 = dma.hbm_to_vmem [thread:$0]  (!%p6775_p11), %s6771_s13, 1024, %s6773_s19, %s6786_s4, %s8279_s7, %s8279_s7, %s8278_s16  }
  0xb0   : > { %s430_s28 = sand.u32 1, %s6500_s24   ;;  %s6388_s14 = scalar_lea.hbm %s6782_s17, 1024 }
  0xb1   : > { %s6821_s18 = scalar_lea.sflag [#allocation6], %s430_s28  ;;  %p6389_p0 = scmp.ne.s32.totalorder %s6782_s17, %s6388_s14 }
  0xb2   : > { %s6393_s30 = scalar_lea.hbm %s8209_s1, 2048  ;;  %p6394_p6 = scmp.lt.u32.totalorder %s6782_s17, %s8209_s1 }
  0xb3   : > { %p6391_p4 = pnand %p6389_p0, %p6360_p9  ;;  %p6395_p3 = scmp.lt.u32.totalorder %s6393_s30, %s6388_s14 }
  0xb4   : > { %p6397_p7 = scmp.lt.u32.totalorder %s6388_s14, %s6782_s17 }
  0xb5   : > { %p6392_p8 = pneg %p6391_p4  ;;  %p6396_p5 = por %p6395_p3, %p6394_p6 }
  0xb7   : > { %p6398_p12 = por %p6397_p7, %p6396_p5 }
  0xb9   : > { %p6399_p1 = pnand %p6398_p12, %p6392_p8 }
  0xbb   : > { %6402 = shalt.err (!%p6399_p1)
}
  0xbc   : > { %s6403_s4 = scalar_lea.vmem %s6818_s2, 1024  ;;  %s6511_s16 = smov [#allocation5]  }
  0xbd   : > { %p6404_p2 = scmp.ne.s32.totalorder %s6818_s2, %s6403_s4  ;;  %s6408_s7 = sshll.u32 %s6511_s16, 4  ;;  %s6409_s7 = int_to_ptr.vmem [resolvable:$false] %s6408_s7 }
  0xbe   : > { %s6410_s13 = scalar_lea.vmem %s6409_s7, 2048  ;;  %p6411_p4 = scmp.lt.s32.totalorder %s6818_s2, %s6409_s7 }
  0xbf   : > { %p6406_p13 = pnand %p6404_p2, %p6360_p9  ;;  %p6412_p6 = scmp.lt.s32.totalorder %s6410_s13, %s6403_s4 }
  0xc1   : > { %p6407_p0 = pneg %p6406_p13  ;;  %p6413_p3 = por %p6412_p6, %p6411_p4 }
  0xc3   : > { %p6414_p5 = pnand %p6413_p3, %p6407_p0 }
  0xc5   : > { %6417 = shalt.err (!%p6414_p5)
}
  0xc6   : > { %s6512_s19 = smov 512   ;;  %s6513_s15 = smov 32  }
  0xc7   : > { %5709 = dma.hbm_to_vmem [thread:$0]  (!%p6775_p11), %s6782_s17, 1024, %s6818_s2, %s6821_s18, %s6512_s19, %s6512_s19, %s6513_s15  }
  0xc8   : > { %p8283_p9 = scmp.ne.s32.totalorder %s8271_s29, 0 }
  0xca   : > { %453 = sbr.rel (%p8283_p9) target bundleno = 2458 (0x99a), region = 68 }
  0xd1   : > { %s6850_s28 = sand.u32 1, %s6492_s22   ;;  %p8284_p8 = scmp.ne.s32.totalorder %s8268_s27, 0 }
  0xd2   : > { %s6853_s14 = sshll.u32 %s6850_s28, 6  ;;  %s456_s9 = scalar_lea.sflag [#allocation3], %s6850_s28 }
  0xd3   : > { %s6857_s26 = scalar_lea.vmem [#allocation2], %s6853_s14 }
  0xd4   : > { %6463 = dma.done.wait (%p8284_p8), %s456_s9, 1024  }
  0xd5   : > { %6465 = vsyncadd (%p8284_p8), %s456_s9, 4294966272  ;;  %s464_s2 = sand.u32 1, %s6611_s25   ;;  %s6865_s20 = scalar_lea.vmem [#allocation5], %s6853_s14 }
  0xd6   : > { %s465_s29 = scalar_lea.sflag [#allocation6], %s464_s2 }
  0xd7   : > { %6467 = dma.done.wait (%p8284_p8), %s465_s29, 1024  }
  0xd8   : > { %6469 = vsyncadd (%p8284_p8), %s465_s29, 4294966272  ;;  %p8285_p11 = scmp.eq.s32.totalorder %s6611_s25, 0 }
  0xda   : > { %6471 = dma.done.wait (%p8285_p11), [#allocation6], 2048   ;;  %p8286_p7 = pmov %p8285_p11 }
  0xdc   : > { %6473 = vsyncadd (%p8286_p7), [#allocation6], 4294965248  ;;  %p8287_p12 = pmov %p8286_p7 }
  0xdd   : > { %p8288_p1 = pmov %p8286_p7 }
  0xde   : > { %6475 = dma.done.wait (%p8287_p12), [#allocation9], 12288  }
  0xdf   : > { %6477 = vsyncadd (%p8288_p1), [#allocation9], 4294955008  ;;  %p8289_p2 = pmov %p8288_p1 }
  0xe0   : > { %p8290_p13 = pmov %p8288_p1 }
  0xe1   : > { %6479 = dma.done.wait (%p8289_p2), [#allocation12], 2048  }
  0xe2   : > { %6481 = vsyncadd (%p8290_p13), [#allocation12], 4294965248  ;;  %v538_v0 = vld [vmem:[#allocation7] sm:$0xff]  ;;  %v539_v1 = vld [vmem:[#allocation7 + $0x8] sm:$0xff]  ;;  %s6514_s8 = smov 112   ;;  %vm1057_vm0 = vcmask 130048  }
  0xe3   : > { %v540_v2 = vld [vmem:[#allocation7 + $0x10] sm:$0xff]  ;;  %v5428_v3 = vpack.c.bf16 %v539_v1, %v538_v0  ;;  %v541_v4 = vld [vmem:[#allocation7 + $0x18] sm:$0xff]  ;;  %v542_v6 = vld [vmem:[#allocation7 + $0x20] sm:$0xff]  ;;  %s8291_s13 = sld [smem:[#allocation45_spill]]  ;;  %s8292_s9 = sld [smem:[#allocation47_spill]]  ;;  %vm4284_vm2 = vcmask 261120  }
  0xe4   : > { %v5432_v5 = vpack.c.bf16 %v541_v4, %v540_v2  ;;  %v543_v7 = vld [vmem:[#allocation7 + $0x28] sm:$0xff]  ;;  %v544_v8 = vld [vmem:[#allocation7 + $0x30] sm:$0xff]  ;;  %v545_v10 = vld [vmem:[#allocation7 + $0x38] sm:$0xff]  ;;  %s6517_s2 = smov 80   ;;  %s6518_s29 = smov 64   ;;  %vm4293_vm3 = vcmask 392192  }
  0xe5   : > { %5429 = vmatprep.subr.bf16.mxu0 %v5428_v3  ;;  %v5436_v9 = vpack.c.bf16 %v543_v7, %v542_v6  ;;  %v690_v11 = vld [vmem:[#allocation8 + $0x80] sm:$0xff]  ;;  %v691_v12 = vld [vmem:[#allocation8 + $0x88] sm:$0xff]  ;;  %v692_v18 = vld [vmem:[#allocation8 + $0x90] sm:$0xff]  ;;  %v5440_v20 = vpack.c.bf16 %v545_v10, %v544_v8  ;;  %s6520_s27 = smov 32   ;;  %s6521_s17 = smov 16   ;;  %vm4302_vm4 = vcmask 523264  }
  0xe6   : > { %5431 = vmatpush3.bf16.msra.mxu0 %v5428_v3  ;;  %v5460_v13 = vpack.c.bf16 %v691_v12, %v690_v11  ;;  %v674_v14 = vld [vmem:[#allocation8] sm:$0xff]  ;;  %v675_v15 = vld [vmem:[#allocation8 + $0x8] sm:$0xff]  ;;  %v693_v19 = vld [vmem:[#allocation8 + $0x98] sm:$0xff]  ;;  %vm4311_vm5 = vcmask 654336   ;;  %vm4320_vm6 = vcmask 785408   ;;  %vm4329_vm7 = vcmask 916480  }
  0xe7   : > { %5433 = vmatprep.subr.bf16.mxu0 %v5432_v5  ;;  %v530_v16 = vld [vmem:[%s6857_s26] sm:$0xff]  ;;  %v5462_v17 = vpack.c.bf16 %v675_v15, %v674_v14  ;;  %v5464_v21 = vpack.c.bf16 %v693_v19, %v692_v18  ;;  %v676_v22 = vld [vmem:[#allocation8 + $0x10] sm:$0xff]  ;;  %v677_v23 = vld [vmem:[#allocation8 + $0x18] sm:$0xff]  ;;  %s529_s10 = scalar_lea.vmem [#allocation13], %s6853_s14  ;;  %s4799_s16 = sshll.u32 %s6611_s25, 10 }
  0xe8   : > { %5116 = vmatprep.mubr.f32.mxu0 %v530_v16  ;;  %5461 = vmatprep.subr.bf16.mxu1 %v5460_v13  ;;  %v546_v24 = vld [vmem:[#allocation7 + $0x40] sm:$0xff]  ;;  %v547_v25 = vld [vmem:[#allocation7 + $0x48] sm:$0xff]  ;;  %v5466_v26 = vpack.c.bf16 %v677_v23, %v676_v22  ;;  %v696_v34 = vld [vmem:[#allocation8 + $0xb0] sm:$0xff]  ;;  %s4488_s4 = sshll.u32 %s529_s10, 4  ;;  %s4475_s15 = scalar_lea.sflag [#allocation4], %s6850_s28  ;;  %s8159_s4 = int_to_ptr.vmem [resolvable:$true] %s4488_s4 }
  0xe9   : > { %5463 = vmatpush3.bf16.msra.mxu1 %v5462_v17  ;;  %v694_v27 = vld [vmem:[#allocation8 + $0xa0] sm:$0xff]  ;;  %v695_v28 = vld [vmem:[#allocation8 + $0xa8] sm:$0xff]  ;;  %v5444_v32 = vpack.c.bf16 %v547_v25, %v546_v24  ;;  %v697_v35 = vld [vmem:[#allocation8 + $0xb8] sm:$0xff]  ;;  %s6418_s25 = scalar_lea.vmem %s8159_s4, 1024 }
  0xea   : > { %5435 = vmatpush3.bf16.msra.mxu0 %v5432_v5  ;;  %5465 = vmatprep.subr.bf16.mxu1 %v5464_v21  ;;  %v5468_v29 = vpack.c.bf16 %v695_v28, %v694_v27  ;;  %v678_v30 = vld [vmem:[#allocation8 + $0x20] sm:$0xff]  ;;  %v679_v31 = vld [vmem:[#allocation8 + $0x28] sm:$0xff]  ;;  %v548_v36 = vld [vmem:[#allocation7 + $0x50] sm:$0xff]  ;;  %v5472_v38 = vpack.c.bf16 %v697_v35, %v696_v34  ;;  %p6419_p0 = scmp.ne.s32.totalorder %s8159_s4, %s6418_s25 }
  0xeb   : > { %5437 = vmatprep.subr.bf16.mxu0 %v5436_v9  ;;  %v5470_v33 = vpack.c.bf16 %v679_v31, %v678_v30  ;;  %v549_v37 = vld [vmem:[#allocation7 + $0x58] sm:$0xff]  ;;  %v680_v39 = vld [vmem:[#allocation8 + $0x30] sm:$0xff]  ;;  %v698_v41 = vld [vmem:[#allocation8 + $0xc0] sm:$0xff] }
  0xec   : > { %v681_v40 = vld [vmem:[#allocation8 + $0x38] sm:$0xff]  ;;  %v699_v42 = vld [vmem:[#allocation8 + $0xc8] sm:$0xff]  ;;  %v5448_v43 = vpack.c.bf16 %v549_v37, %v548_v36  ;;  %v550_v44 = vld [vmem:[#allocation7 + $0x60] sm:$0xff]  ;;  %p6420_p4 = pnand %p6419_p0, %p6758_p10 }
  0xed   : > { %5467 = vmatpush3.bf16.msra.mxu1 %v5466_v26  ;;  %v5474_v45 = vpack.c.bf16 %v681_v40, %v680_v39  ;;  %v551_v46 = vld [vmem:[#allocation7 + $0x68] sm:$0xff]  ;;  %v5476_v47 = vpack.c.bf16 %v699_v42, %v698_v41  ;;  %v682_v48 = vld [vmem:[#allocation8 + $0x40] sm:$0xff]  ;;  %v700_v50 = vld [vmem:[#allocation8 + $0xd0] sm:$0xff] }
  0xee   : > { %5439 = vmatpush3.bf16.msra.mxu0 %v5436_v9  ;;  %5469 = vmatprep.subr.bf16.mxu1 %v5468_v29  ;;  %v683_v49 = vld [vmem:[#allocation8 + $0x48] sm:$0xff]  ;;  %v701_v51 = vld [vmem:[#allocation8 + $0xd8] sm:$0xff]  ;;  %v5452_v52 = vpack.c.bf16 %v551_v46, %v550_v44  ;;  %v552_v53 = vld [vmem:[#allocation7 + $0x70] sm:$0xff]  ;;  %p6421_p6 = pneg %p6420_p4 }
  0xef   : > { %5441 = vmatprep.subr.bf16.mxu0 %v5440_v20  ;;  %v5478_v54 = vpack.c.bf16 %v683_v49, %v682_v48  ;;  %v553_v55 = vld [vmem:[#allocation7 + $0x78] sm:$0xff]  ;;  %v5480_v56 = vpack.c.bf16 %v701_v51, %v700_v50  ;;  %v684_v57 = vld [vmem:[#allocation8 + $0x50] sm:$0xff]  ;;  %v702_v59 = vld [vmem:[#allocation8 + $0xe0] sm:$0xff] }
  0xf0   : > { %v685_v58 = vld [vmem:[#allocation8 + $0x58] sm:$0xff]  ;;  %v703_v60 = vld [vmem:[#allocation8 + $0xe8] sm:$0xff]  ;;  %v5456_v61 = vpack.c.bf16 %v553_v55, %v552_v53  ;;  %v722_v62 = vld [vmem:[#allocation8 + $0x180] sm:$0xff] }
  0xf1   : > { %5471 = vmatpush3.bf16.msra.mxu1 %v5470_v33  ;;  %v5482_v63 = vpack.c.bf16 %v685_v58, %v684_v57  ;;  %v723_v0 = vld [vmem:[#allocation8 + $0x188] sm:$0xff]  ;;  %v5484_v1 = vpack.c.bf16 %v703_v60, %v702_v59  ;;  %v686_v2 = vld [vmem:[#allocation8 + $0x60] sm:$0xff]  ;;  %v704_v4 = vld [vmem:[#allocation8 + $0xf0] sm:$0xff] }
  0xf2   : > { %5443 = vmatpush3.bf16.msra.mxu0 %v5440_v20  ;;  %5473 = vmatprep.subr.bf16.mxu1 %v5472_v38  ;;  %v687_v3 = vld [vmem:[#allocation8 + $0x68] sm:$0xff]  ;;  %v705_v5 = vld [vmem:[#allocation8 + $0xf8] sm:$0xff]  ;;  %v5492_v7 = vpack.c.bf16 %v723_v0, %v722_v62  ;;  %v706_v8 = vld [vmem:[#allocation8 + $0x100] sm:$0xff] }
  0xf3   : > { %5445 = vmatprep.subr.bf16.mxu0 %v5444_v32  ;;  %v667_v6 = vld [vmem:[%s6865_s20 + $0x8] sm:$0xff]  ;;  %v724_v10 = vld [vmem:[#allocation8 + $0x190] sm:$0xff]  ;;  %v5486_v11 = vpack.c.bf16 %v687_v3, %v686_v2  ;;  %v725_v12 = vld [vmem:[#allocation8 + $0x198] sm:$0xff]  ;;  %v5488_v13 = vpack.c.bf16 %v705_v5, %v704_v4 }
  0xf4   : > { %v707_v9 = vld [vmem:[#allocation8 + $0x108] sm:$0xff]  ;;  %v688_v14 = vld [vmem:[#allocation8 + $0x70] sm:$0xff]  ;;  %v689_v15 = vld [vmem:[#allocation8 + $0x78] sm:$0xff]  ;;  %809 = vmatprep.mubr.f32.mxu1 %v667_v6  ;;  %v5496_v18 = vpack.c.bf16 %v725_v12, %v724_v10 }
  0xf5   : > { %5475 = vmatpush3.bf16.msra.mxu1 %v5474_v45  ;;  %v531_v16 = vld [vmem:[%s6857_s26 + $0x8] sm:$0xff]  ;;  %v5494_v17 = vpack.c.bf16 %v707_v9, %v706_v8  ;;  %v708_v19 = vld [vmem:[#allocation8 + $0x110] sm:$0xff]  ;;  %v709_v20 = vld [vmem:[#allocation8 + $0x118] sm:$0xff]  ;;  %v5490_v22 = vpack.c.bf16 %v689_v15, %v688_v14 }
  0xf6   : > { %5447 = vmatpush3.bf16.msra.mxu0 %v5444_v32  ;;  %5477 = vmatprep.subr.bf16.mxu1 %v5476_v47  ;;  %v532_v21 = vld [vmem:[%s6857_s26 + $0x10] sm:$0xff]  ;;  %v726_v23 = vld [vmem:[#allocation8 + $0x1a0] sm:$0xff]  ;;  %v727_v24 = vld [vmem:[#allocation8 + $0x1a8] sm:$0xff]  ;;  %v5498_v25 = vpack.c.bf16 %v709_v20, %v708_v19 }
  0xf7   : > { %5449 = vmatprep.subr.bf16.mxu0 %v5448_v43  ;;  %v533_v26 = vld [vmem:[%s6857_s26 + $0x18] sm:$0xff]  ;;  %v5500_v27 = vpack.c.bf16 %v727_v24, %v726_v23  ;;  %v710_v28 = vld [vmem:[#allocation8 + $0x120] sm:$0xff]  ;;  %v711_v29 = vld [vmem:[#allocation8 + $0x128] sm:$0xff] }
  0xf8   : > { %v534_v30 = vld [vmem:[%s6857_s26 + $0x20] sm:$0xff]  ;;  %v728_v31 = vld [vmem:[#allocation8 + $0x1b0] sm:$0xff]  ;;  %v729_v32 = vld [vmem:[#allocation8 + $0x1b8] sm:$0xff]  ;;  %v5502_v35 = vpack.c.bf16 %v711_v29, %v710_v28 }
  0xf9   : > { %5479 = vmatpush3.bf16.msra.mxu1 %v5478_v54  ;;  %v666_v33 = vld [vmem:[%s6865_s20] sm:$0xff]  ;;  %v671_v34 = vld [vmem:[%s6865_s20 + $0x28] sm:$0xff]  ;;  %v5504_v37 = vpack.c.bf16 %v729_v32, %v728_v31  ;;  %v712_v38 = vld [vmem:[#allocation8 + $0x130] sm:$0xff] }
  0xfa   : > { %5451 = vmatpush3.bf16.msra.mxu0 %v5448_v43  ;;  %5481 = vmatprep.subr.bf16.mxu1 %v5480_v56  ;;  %v535_v36 = vld [vmem:[%s6857_s26 + $0x28] sm:$0xff]  ;;  %v713_v39 = vld [vmem:[#allocation8 + $0x138] sm:$0xff]  ;;  %v536_v40 = vld [vmem:[%s6857_s26 + $0x30] sm:$0xff] }
  0xfb   : > { %5453 = vmatprep.subr.bf16.mxu0 %v5452_v52  ;;  %v730_v41 = vld [vmem:[#allocation8 + $0x1c0] sm:$0xff]  ;;  %v731_v42 = vld [vmem:[#allocation8 + $0x1c8] sm:$0xff]  ;;  %v5506_v44 = vpack.c.bf16 %v713_v39, %v712_v38  ;;  %v537_v45 = vld [vmem:[%s6857_s26 + $0x38] sm:$0xff]  ;;  %s6516_s26 = smov 96  }
  0xfc   : > { %v670_v43 = vld [vmem:[%s6865_s20 + $0x20] sm:$0xff]  ;;  %v5508_v46 = vpack.c.bf16 %v731_v42, %v730_v41  ;;  %v715_v48 = vld [vmem:[#allocation8 + $0x148] sm:$0xff]  ;;  %v669_v49 = vld [vmem:[%s6865_s20 + $0x18] sm:$0xff] }
  0xfd   : > { %5483 = vmatpush3.bf16.msra.mxu1 %v5482_v63  ;;  %v714_v47 = vld [vmem:[#allocation8 + $0x140] sm:$0xff]  ;;  %v732_v50 = vld [vmem:[#allocation8 + $0x1d0] sm:$0xff]  ;;  %v733_v51 = vld [vmem:[#allocation8 + $0x1d8] sm:$0xff] }
  0xfe   : > { %5455 = vmatpush3.bf16.msra.mxu0 %v5452_v52  ;;  %5485 = vmatprep.subr.bf16.mxu1 %v5484_v1  ;;  %v5510_v52 = vpack.c.bf16 %v715_v48, %v714_v47  ;;  %v5512_v53 = vpack.c.bf16 %v733_v51, %v732_v50  ;;  %v716_v54 = vld [vmem:[#allocation8 + $0x150] sm:$0xff]  ;;  %v717_v55 = vld [vmem:[#allocation8 + $0x158] sm:$0xff]  ;;  %v734_v56 = vld [vmem:[#allocation8 + $0x1e0] sm:$0xff] }
  0xff   : > { %5457 = vmatprep.subr.bf16.mxu0 %v5456_v61  ;;  %v735_v57 = vld [vmem:[#allocation8 + $0x1e8] sm:$0xff]  ;;  %v5514_v58 = vpack.c.bf16 %v717_v55, %v716_v54  ;;  %v718_v60 = vld [vmem:[#allocation8 + $0x160] sm:$0xff]  ;;  %v736_v62 = vld [vmem:[#allocation8 + $0x1f0] sm:$0xff] }
 0x100   : > { %v5516_v59 = vpack.c.bf16 %v735_v57, %v734_v56  ;;  %v737_v63 = vld [vmem:[#allocation8 + $0x1f8] sm:$0xff]  ;;  %v720_v2 = vld [vmem:[#allocation8 + $0x170] sm:$0xff]  ;;  %v6906_v10 = vld [vmem:[%s8211_s3] ss:$0 sm:$0xff] }
 0x101   : > { %5487 = vmatpush3.bf16.msra.mxu1 %v5486_v11  ;;  %v5520_v1 = vpack.c.bf16 %v737_v63, %v736_v62  ;;  %v721_v3 = vld [vmem:[#allocation8 + $0x178] sm:$0xff]  ;;  %v668_v5 = vld [vmem:[%s6865_s20 + $0x10] sm:$0xff]  ;;  %v936_v39 = vld [vmem:[#allocation10] sm:$0xff] }
 0x102   : > { %5459 = vmatpush3.bf16.msra.mxu0 %v5456_v61  ;;  %5489 = vmatprep.subr.bf16.mxu1 %v5488_v13  ;;  %v719_v61 = vld [vmem:[#allocation8 + $0x168] sm:$0xff]  ;;  %v5522_v4 = vpack.c.bf16 %v721_v3, %v720_v2  ;;  %v673_v6 = vld [vmem:[%s6865_s20 + $0x38] sm:$0xff]  ;;  %v938_v41 = vld [vmem:[#allocation10 + $0x10] sm:$0xff] }
 0x103   : > { %5493 = vmatprep.subr.bf16.mxu0 %v5492_v7  ;;  %v5518_v0 = vpack.c.bf16 %v719_v61, %v718_v60  ;;  %v672_v7 = vld [vmem:[%s6865_s20 + $0x30] sm:$0xff]  ;;  %v939_v38 = vld [vmem:[#allocation10 + $0x18] sm:$0xff]  ;;  %v941_v42 = vld [vmem:[#allocation10 + $0x28] sm:$0xff]  ;;  %s6519_s20 = smov 48  }
 0x104   : > { %v942_v47 = vld [vmem:[#allocation10 + $0x30] sm:$0xff]  ;;  %v945_v48 = vld [vmem:[#allocation10 + $0x48] sm:$0xff]  ;;  %v948_v2 = vld [vmem:[#allocation10 + $0x60] sm:$0xff] }
 0x105   : > { %5117 = vmatmul.mubr.f32.vlgmr.msra.gmra.mrb[0].mxu0 %v531_v16  ;;  %5491 = vmatpush3.bf16.msra.mxu1 %v5490_v22  ;;  %v949_v63 = vld [vmem:[#allocation10 + $0x68] sm:$0xff]  ;;  %v950_v3 = vld [vmem:[#allocation10 + $0x70] sm:$0xff]  ;;  %vm6980_vm1 = vmpackc.low %vm1057_vm0, %vm1057_vm0 }
 0x106   : > { %5495 = vmatpush3.bf16.msra.mxu0 %v5494_v17  ;;  %5119 = vmatprep.mubr.f32.mxu0 %v532_v21 }
 0x107   : > { %5497 = vmatprep.subr.bf16.mxu0 %v5496_v18 }
 0x108   : > { %810 = vmatmul.mubr.f32.vlgmr.msra.gmra.mrb[0].mxu1 %v666_v33 }
 0x109   : > { %5120 = vmatmul.mubr.f32.gmra.mrb[2].mxu0 %v533_v26  ;;  %814 = vmatprep.mubr.f32.mxu1 %v671_v34  ;;  %v4644_v26 = vld [vmem:[%s8213_s5] ss:$0 sm:$0xff] }
 0x10a   : > { %5499 = vmatpush3.bf16.msra.mxu0 %v5498_v25  ;;  %5122 = vmatprep.mubr.f32.mxu0 %v534_v30 }
 0x10b   : > { %5501 = vmatprep.subr.bf16.mxu0 %v5500_v27 }
 0x10c   : > { %815 = vmatmul.mubr.f32.gmra.mrb[2].mxu1 %v670_v43  ;;  %v943_v43 = vld [vmem:[#allocation10 + $0x38] sm:$0xff] }
 0x10d   : > { %5123 = vmatmul.mubr.f32.gmra.mrb[4].mxu0 %v535_v36 }
 0x10e   : > { %5503 = vmatpush3.bf16.msra.mxu0 %v5502_v35  ;;  %5125 = vmatprep.mubr.f32.mxu0 %v536_v40 }
 0x10f   : > { %5505 = vmatprep.subr.bf16.mxu0 %v5504_v37  ;;  %v937_v37 = vld [vmem:[#allocation10 + $0x8] sm:$0xff] }
 0x110   : > { %v5524_v40 = vpack.c.bf16 %v939_v38, %v937_v37  ;;  %v966_v37 = vld [vmem:[#allocation10 + $0xf0] sm:$0xff] }
 0x111   : > { %5126 = vmatmul.mubr.f32.gmra.mrb[6].mxu0 %v537_v45  ;;  %v5528_v45 = vpack.c.bf16 %v943_v43, %v941_v42 }
 0x112   : > { %5507 = vmatpush3.bf16.msra.mxu0 %v5506_v44  ;;  %884 = vmatprep.mubr.f32.mxu0 %v669_v49  ;;  %v5526_v44 = vpack.c.bf16 %v938_v41, %v936_v39  ;;  %v947_v49 = vld [vmem:[#allocation10 + $0x58] sm:$0xff] }
 0x113   : > { %5509 = vmatprep.subr.bf16.mxu0 %v5508_v46  ;;  %v940_v46 = vld [vmem:[#allocation10 + $0x20] sm:$0xff]  ;;  %5525 = vmatprep.subr.bf16.mxu1 %v5524_v40  ;;  %v5532_v51 = vpack.c.bf16 %v947_v49, %v945_v48 }
 0x114   : > { %5527 = vmatpush1.bf16.msra.mxu1 %v5526_v44  ;;  %v5530_v50 = vpack.c.bf16 %v942_v47, %v940_v46  ;;  %v4646_v48 = vld [vmem:[%s8291_s13] ss:$0 sm:$0xff]  ;;  %s8350_s13 = sld [smem:[#allocation50_spill]] }
 0x115   : > { %5529 = vmatprep.subr.bf16.mxu1 %v5528_v45 }
 0x116   : > { %5511 = vmatpush3.bf16.msra.mxu0 %v5510_v52  ;;  %v944_v52 = vld [vmem:[#allocation10 + $0x40] sm:$0xff] }
 0x117   : > { %5513 = vmatprep.subr.bf16.mxu0 %v5512_v53  ;;  %v946_v53 = vld [vmem:[#allocation10 + $0x50] sm:$0xff] }
 0x118   : > { %5531 = vmatpush1.bf16.msra.mxu1 %v5530_v50  ;;  %v5534_v54 = vpack.c.bf16 %v946_v53, %v944_v52 }
 0x119   : > { %5533 = vmatprep.subr.bf16.mxu1 %v5532_v51 }
 0x11a   : > { %5515 = vmatpush3.bf16.msra.mxu0 %v5514_v58  ;;  %s8164_s19 = scalar_lea.hbm %s8350_s13, %s4799_s16 }
 0x11b   : > { %5517 = vmatprep.subr.bf16.mxu0 %v5516_v59 }
 0x11c   : > { %5535 = vmatpush1.bf16.msra.mxu1 %v5534_v54 }
 0x11e   : > { %5519 = vmatpush3.bf16.msra.mxu0 %v5518_v0  ;;  %v951_v0 = vld [vmem:[#allocation10 + $0x78] sm:$0xff] }
 0x11f   : > { %5521 = vmatprep.subr.bf16.mxu0 %v5520_v1  ;;  %v5536_v1 = vpack.c.bf16 %v951_v0, %v949_v63 }
 0x121   : > { %5537 = vmatprep.subr.bf16.mxu1 %v5536_v1 }
 0x122   : > { %5523 = vmatpush3.bf16.msra.mxu0 %v5522_v4  ;;  %v5538_v4 = vpack.c.bf16 %v950_v3, %v948_v2 }
 0x124   : > { %5539 = vmatpush1.bf16.msra.mxu1 %v5538_v4 }
 0x125   : > { %885 = vmatmul.mubr.f32.vlgmr.msra.gmra.mrb[8].mxu0 %v668_v5  ;;  %v953_v5 = vld [vmem:[#allocation10 + $0x88] sm:$0xff] }
 0x126   : > { %889 = vmatprep.mubr.f32.mxu0 %v673_v6  ;;  %v955_v6 = vld [vmem:[#allocation10 + $0x98] sm:$0xff] }
 0x129   : > { %890 = vmatmul.mubr.f32.gmra.mrb[10].mxu0 %v672_v7  ;;  %v5540_v7 = vpack.c.bf16 %v955_v6, %v953_v5 }
 0x12b   : > { %5541 = vmatprep.subr.bf16.mxu1 %v5540_v7 }
 0x1d8   : > { %v6899_v8 = vpop.f32.mrb[0].mxu0 }
 0x1d9   : > { %v6901_v9 = vpop.f32.mrb[1].mxu0 }
 0x1db   : > { %v4856_v14 = vpop.f32.mrb[0].mxu1 }
 0x1dc   : > { %v5121_v11 = vpop.f32.mrb[2].mxu0  ;;  %v4857_v15 = vpop.f32.mrb[1].mxu1 }
 0x1dd   : > { %v6909_v12 = vadd.f32 %v5121_v11, %v6906_v10  ;;  %v6911_v13 = vpop.f32.mrb[3].mxu0  ;;  %v4858_v17 = vadd.f32 %v4857_v15, %v4856_v14  ;;  %v952_v11 = vld [vmem:[#allocation10 + $0x80] sm:$0xff]  ;;  %v954_v14 = vld [vmem:[#allocation10 + $0x90] sm:$0xff] }
 0x1de   : > { %v5542_v15 = vpack.c.bf16 %v954_v14, %v952_v11 }
 0x1df   : > { %v4859_v20 = vpop.f32.mrb[2].mxu1  ;;  %v812_v27 = vadd.f32 %v4858_v17, %v4644_v26  ;;  %v6936_v17 = vadd.f32 %v6906_v10, %v6901_v9  ;;  %v961_v9 = vld [vmem:[#allocation10 + $0xc8] sm:$0xff] }
 0x1e0   : > { %v6913_v16 = vpop.f32.mrb[4].mxu0  ;;  %v4860_v21 = vpop.f32.mrb[3].mxu1  ;;  %5543 = vmatpush1.bf16.msra.mxu1 %v5542_v15 }
 0x1e1   : > { %v647_v18 = vpop.f32.mrb[5].mxu0  ;;  %v4861_v23 = vadd.f32 %v4860_v21, %v4859_v20  ;;  %v959_v20 = vld [vmem:[#allocation10 + $0xb8] sm:$0xff]  ;;  %v6954_v39 = vadd.f32 %v6913_v16, %v6906_v10 }
 0x1e2   : > { %v6916_v19 = vadd.f32 %v6906_v10, %v647_v18  ;;  %v957_v18 = vld [vmem:[#allocation10 + $0xa8] sm:$0xff] }
 0x1e3   : > { %v817_v31 = vadd.f32 %v4861_v23, %v4644_v26  ;;  %v5544_v21 = vpack.c.bf16 %v959_v20, %v957_v18  ;;  %v956_v23 = vld [vmem:[#allocation10 + $0xa0] sm:$0xff] }
 0x1e4   : > { %v6918_v22 = vpop.f32.mrb[6].mxu0 }
 0x1e5   : > { %v657_v24 = vpop.f32.mrb[7].mxu0  ;;  %5545 = vmatprep.subr.bf16.mxu1 %v5544_v21  ;;  %v6960_v40 = vadd.f32 %v6918_v22, %v6906_v10 }
 0x1e6   : > { %v6921_v25 = vadd.f32 %v6906_v10, %v657_v24  ;;  %v958_v24 = vld [vmem:[#allocation10 + $0xb0] sm:$0xff] }
 0x1e7   : > { %v5546_v26 = vpack.c.bf16 %v958_v24, %v956_v23 }
 0x1e9   : > { %5547 = vmatpush1.bf16.msra.mxu1 %v5546_v26 }
 0x1f8   : > { %v4894_v28 = vpop.f32.mrb[8].mxu0 }
 0x1f9   : > { %v4895_v29 = vpop.f32.mrb[9].mxu0 }
 0x1fa   : > { %v4896_v30 = vadd.f32 %v4895_v29, %v4894_v28  ;;  %v963_v28 = vld [vmem:[#allocation10 + $0xd8] sm:$0xff] }
 0x1fb   : > { %v5548_v29 = vpack.c.bf16 %v963_v28, %v961_v9 }
 0x1fc   : > { %v4897_v32 = vpop.f32.mrb[10].mxu0  ;;  %v887_v33 = vadd.f32 %v4896_v30, %v812_v27  ;;  %v6942_v27 = vadd.f32 %v6899_v8, %v6906_v10  ;;  %v960_v30 = vld [vmem:[#allocation10 + $0xc0] sm:$0xff]  ;;  %v967_v8 = vld [vmem:[#allocation10 + $0xf8] sm:$0xff] }
 0x1fd   : > { %v4898_v34 = vpop.f32.mrb[11].mxu0  ;;  %5549 = vmatprep.subr.bf16.mxu1 %v5548_v29 }
 0x1fe   : > { %v4899_v35 = vadd.f32 %v4898_v34, %v4897_v32  ;;  %895 = vadd.xlane.f32.xlu0 %v887_v33  ;;  %v965_v34 = vld [vmem:[#allocation10 + $0xe8] sm:$0xff] }
 0x200   : > { %v892_v36 = vadd.f32 %v4899_v35, %v817_v31  ;;  %v962_v31 = vld [vmem:[#allocation10 + $0xd0] sm:$0xff]  ;;  %v5552_v35 = vpack.c.bf16 %v967_v8, %v965_v34 }
 0x201   : > { %v5550_v32 = vpack.c.bf16 %v962_v31, %v960_v30 }
 0x202   : > { %897 = vadd.xlane.f32.xlu0 %v892_v36 }
 0x203   : > { %5551 = vmatpush1.bf16.msra.mxu1 %v5550_v32 }
 0x204   : > { %5553 = vmatprep.subr.bf16.mxu1 %v5552_v35 }
 0x28b   : > { %v896_v55 = vpop.xlane.xlu0 %895 }
 0x28c   : > { %v900_v56 = vmul.f32 0.0078125, %v896_v55  ;;  %v970_v55 = vlaneseq }
 0x28e   : > { %v6926_v57 = vsub.f32 %v887_v33, %v900_v56  ;;  %v6948_v33 = vadd.f32 %v6906_v10, %v6911_v13  ;;  %v6515_v13 = vmov 0.0   ;;  %v4645_v10 = vld [vmem:[%s8214_s6] ss:$0 sm:$0xff]  ;;  %v971_v56 = vshrl.u32 %v970_v55, 7 }
 0x28f   : > { %v898_v58 = vpop.xlane.xlu0 %897  ;;  %1044 = vmatprep.mubr.f32.mxu1 %v6515_v13 }
 0x290   : > { %v901_v59 = vmul.f32 0.0078125, %v898_v58  ;;  %v904_v60 = vmul.f32 %v6926_v57, %v6926_v57  ;;  %v968_v58 = vld [vmem:[%s8292_s9] sm:$0x3]  ;;  %s6522_s9 = smov [#allocation13]  }
 0x292   : > { %906 = vadd.xlane.f32.xlu1 %v904_v60  ;;  %v6930_v61 = vsub.f32 %v892_v36, %v901_v59  ;;  %v964_v36 = vld [vmem:[#allocation10 + $0xe0] sm:$0xff]  ;;  %v976_v59 = vsub.s32 1, %v971_v56 }
 0x293   : > { %v5554_v38 = vpack.c.bf16 %v966_v37, %v964_v36 }
 0x294   : > { %v905_v62 = vmul.f32 %v6930_v61, %v6930_v61 }
 0x295   : > { %5555 = vmatpush1.bf16.msra.mxu1 %v5554_v38 }
 0x296   : > { %908 = vadd.xlane.f32.xlu1 %v905_v62 }
 0x2a7   : > { %1418 = vrot.lane.b32.xlu1 %v6936_v17, %s6514_s8 }
 0x2ab   : > { %1420 = vrot.lane.b32.xlu1 %v6942_v27, %s6514_s8 }
 0x2af   : > { %1422 = vrot.lane.b32.xlu1 %v6948_v33, %s6514_s8 }
 0x2b3   : > { %1428 = vrot.lane.b32.xlu1 %v6954_v39, %s6514_s8 }
 0x2b7   : > { %1432 = vrot.lane.b32.xlu1 %v6960_v40, %s6514_s8 }
 0x31f   : > { %v907_v41 = vpop.xlane.xlu1 %906 }
 0x320   : > { %v910_v42 = vmul.f32 0.0078125, %v907_v41 }
 0x322   : > { %v912_v43 = vadd.f32 1e-05, %v910_v42 }
 0x323   : > { %v909_v44 = vpop.xlane.xlu1 %908 }
 0x324   : > { %5986 = vrsqrt.f32 %v912_v43  ;;  %v911_v16 = vmul.f32 0.0078125, %v909_v44 }
 0x326   : > { %v913_v45 = vadd.f32 1e-05, %v911_v16 }
 0x327   : > { %v1419_v46 = vpop.permute.xlu1 %1418 }
 0x328   : > { %5988 = vrsqrt.f32 %v913_v45  ;;  %5164 = vmatprep.mubr.msk.f32.mxu0 %vm1057_vm0, %v1419_v46 }
 0x32b   : > { %v1421_v18 = vpop.permute.xlu1 %1420 }
 0x32e   : > { %v5987_v47 = vpop.eup %5986 }
 0x32f   : > { %v916_v22 = vmul.f32 %v5987_v47, %v6926_v57  ;;  %v972_v57 = vsub.s32 0, %v971_v56  ;;  %v1423_v20 = vpop.permute.xlu1 %1422 }
 0x331   : > { %v925_v49 = vmul.f32 %v4645_v10, %v916_v22  ;;  %v973_v62 = vrot.slane %v968_v58, %v972_v57 }
 0x332   : > { %v5989_v50 = vpop.eup %5988 }
 0x333   : > { %v934_v51 = vadd.f32 %v4646_v48, %v925_v49  ;;  %v917_v52 = vmul.f32 %v5989_v50, %v6930_v61  ;;  %v977_v61 = vrot.slane %v968_v58, %v976_v59  ;;  %v1429_v21 = vpop.permute.xlu1 %1428 }
 0x335   : > { %1045 = vmatmul.mubr.f32.vlgmr.msra.gmra.mrb[4].mxu1 %v934_v51  ;;  %v926_v53 = vmul.f32 %v4645_v10, %v917_v52 }
 0x336   : > { %1050 = vmatprep.mubr.f32.mxu1 %v6515_v13 }
 0x337   : > { %v935_v54 = vadd.f32 %v4646_v48, %v926_v53 }
 0x339   : > { %1051 = vmatmul.mubr.f32.gmra.mrb[6].mxu1 %v935_v54 }
 0x33a   : > { %5132 = vmatprep.mubr.msk.f32.mxu1 %vm1057_vm0, %v6936_v17 }
 0x408   : > { %v1046_v60 = vpop.f32.mrb[4].mxu1 }
 0x409   : > { %v1048_v63 = vpop.f32.mrb[5].mxu1  ;;  %v1047_v1 = vadd.f32 %v1046_v60, %v973_v62 }
 0x40a   : > { %v1049_v4 = vadd.f32 %v1048_v63, %v977_v61 }
 0x40c   : > { %v1052_v0 = vpop.f32.mrb[6].mxu1 }
 0x40d   : > { %v1053_v2 = vadd.f32 %v1052_v0, %v973_v62  ;;  %v1054_v3 = vpop.f32.mrb[7].mxu1 }
 0x40e   : > { %v1055_v5 = vadd.f32 %v1054_v3, %v977_v61 }
 0x40f   : > { %v6984_v7 = vpack.i.bf16 %v1053_v2, %v1047_v1  ;;  %v5556_v11 = vpack.c.bf16 %v1053_v2, %v1047_v1 }
 0x410   : > { %v5562_v14 = vpack.c.bf16 %v1055_v5, %v1049_v4  ;;  %v6990_v15 = vpack.i.bf16 %v1055_v5, %v1049_v4 }
 0x411   : > { %5777 = vrot.lane.b32.xlu0 %v6984_v7, %s6514_s8  ;;  %5558 = vmatprep.subr.msk.bf16.mxu1 %vm6980_vm1, %v5556_v11 }
 0x412   : > { %8295 = vst [vmem:[#allocation22_spill] sm:$0xff] %v6990_v15  ;;  %5782 = vrot.lane.b32.xlu1 %v6984_v7, %s6516_s26  ;;  %5561 = vmatpush3.bf16.xpose.msk.msra.mxu1 %vm6980_vm1, %v5556_v11 }
 0x413   : > { %5563 = vmatprep.subr.bf16.mxu1 %v5562_v14 }
 0x415   : > { %1424 = vrot.lane.b32.xlu0 %v6909_v12, %s6514_s8 }
 0x416   : > { %1798 = vrot.lane.b32.xlu1 %v6942_v27, %s6516_s26 }
 0x419   : > { %1426 = vrot.lane.b32.xlu0 %v6916_v19, %s6514_s8  ;;  %5133 = vmatmul.mubr.msk.f32.vlgmr.msra.gmra.mrb[8].mxu1 %vm1057_vm0, %v6942_v27 }
 0x41a   : > { %1802 = vrot.lane.b32.xlu1 %v6909_v12, %s6516_s26  ;;  %5135 = vmatprep.mubr.msk.f32.mxu1 %vm1057_vm0, %v6948_v33 }
 0x41b   : > { %5565 = vmatpush3.bf16.msra.mxu1 %v5562_v14 }
 0x41d   : > { %1430 = vrot.lane.b32.xlu0 %v6921_v25, %s6514_s8  ;;  %5136 = vmatmul.mubr.msk.f32.gmra.mrb[10].mxu1 %vm1057_vm0, %v6909_v12 }
 0x41e   : > { %1804 = vrot.lane.b32.xlu1 %v6916_v19, %s6516_s26  ;;  %5138 = vmatprep.mubr.msk.f32.mxu1 %vm1057_vm0, %v6916_v19 }
 0x421   : > { %1796 = vrot.lane.b32.xlu0 %v6936_v17, %s6516_s26  ;;  %5139 = vmatmul.mubr.msk.f32.gmra.mrb[12].mxu1 %vm1057_vm0, %v6954_v39 }
 0x422   : > { %1808 = vrot.lane.b32.xlu1 %v6921_v25, %s6516_s26  ;;  %5141 = vmatprep.mubr.msk.f32.mxu1 %vm1057_vm0, %v6921_v25 }
 0x425   : > { %1800 = vrot.lane.b32.xlu0 %v6948_v33, %s6516_s26  ;;  %5142 = vmatmul.mubr.msk.f32.gmra.mrb[14].mxu1 %vm1057_vm0, %v6960_v40 }
 0x426   : > { %2172 = vrot.lane.b32.xlu1 %v6936_v17, %s6517_s2 }
 0x429   : > { %1806 = vrot.lane.b32.xlu0 %v6954_v39, %s6516_s26 }
 0x42a   : > { %2176 = vrot.lane.b32.xlu1 %v6948_v33, %s6517_s2 }
 0x42d   : > { %1810 = vrot.lane.b32.xlu0 %v6960_v40, %s6516_s26 }
 0x42e   : > { %2182 = vrot.lane.b32.xlu1 %v6954_v39, %s6517_s2 }
 0x431   : > { %5787 = vrot.lane.b32.xlu0 %v6984_v7, %s6517_s2 }
 0x432   : > { %5792 = vrot.lane.b32.xlu1 %v6984_v7, %s6518_s29 }
 0x435   : > { %2174 = vrot.lane.b32.xlu0 %v6942_v27, %s6517_s2 }
 0x436   : > { %2186 = vrot.lane.b32.xlu1 %v6960_v40, %s6517_s2 }
 0x439   : > { %2178 = vrot.lane.b32.xlu0 %v6909_v12, %s6517_s2 }
 0x43a   : > { %2550 = vrot.lane.b32.xlu1 %v6942_v27, %s6518_s29 }
 0x43d   : > { %2180 = vrot.lane.b32.xlu0 %v6916_v19, %s6517_s2 }
 0x43e   : > { %2554 = vrot.lane.b32.xlu1 %v6909_v12, %s6518_s29 }
 0x441   : > { %2184 = vrot.lane.b32.xlu0 %v6921_v25, %s6517_s2 }
 0x442   : > { %2556 = vrot.lane.b32.xlu1 %v6916_v19, %s6518_s29 }
 0x445   : > { %2548 = vrot.lane.b32.xlu0 %v6936_v17, %s6518_s29 }
 0x446   : > { %2560 = vrot.lane.b32.xlu1 %v6921_v25, %s6518_s29 }
 0x449   : > { %2552 = vrot.lane.b32.xlu0 %v6948_v33, %s6518_s29 }
 0x44a   : > { %2924 = vrot.lane.b32.xlu1 %v6936_v17, %s6519_s20 }
 0x44d   : > { %2558 = vrot.lane.b32.xlu0 %v6954_v39, %s6518_s29 }
 0x44e   : > { %2928 = vrot.lane.b32.xlu1 %v6948_v33, %s6519_s20 }
 0x451   : > { %5797 = vrot.lane.b32.xlu0 %v6984_v7, %s6519_s20 }
 0x452   : > { %5802 = vrot.lane.b32.xlu1 %v6984_v7, %s6520_s27 }
 0x455   : > { %2562 = vrot.lane.b32.xlu0 %v6960_v40, %s6518_s29 }
 0x456   : > { %2934 = vrot.lane.b32.xlu1 %v6954_v39, %s6519_s20 }
 0x459   : > { %2926 = vrot.lane.b32.xlu0 %v6942_v27, %s6519_s20 }
 0x45a   : > { %2938 = vrot.lane.b32.xlu1 %v6960_v40, %s6519_s20 }
 0x45d   : > { %2930 = vrot.lane.b32.xlu0 %v6909_v12, %s6519_s20 }
 0x45e   : > { %3302 = vrot.lane.b32.xlu1 %v6942_v27, %s6520_s27 }
 0x461   : > { %2932 = vrot.lane.b32.xlu0 %v6916_v19, %s6519_s20 }
 0x462   : > { %3306 = vrot.lane.b32.xlu1 %v6909_v12, %s6520_s27 }
 0x465   : > { %2936 = vrot.lane.b32.xlu0 %v6921_v25, %s6519_s20 }
 0x466   : > { %3308 = vrot.lane.b32.xlu1 %v6916_v19, %s6520_s27 }
 0x469   : > { %3300 = vrot.lane.b32.xlu0 %v6936_v17, %s6520_s27 }
 0x46a   : > { %3312 = vrot.lane.b32.xlu1 %v6921_v25, %s6520_s27 }
 0x46d   : > { %3304 = vrot.lane.b32.xlu0 %v6948_v33, %s6520_s27 }
 0x46e   : > { %3676 = vrot.lane.b32.xlu1 %v6936_v17, %s6521_s17  ;;  %v1433_v17 = vpop.permute.xlu1 %1432 }
 0x471   : > { %5807 = vrot.lane.b32.xlu0 %v6984_v7, %s6521_s17 }
 0x472   : > { %3680 = vrot.lane.b32.xlu1 %v6948_v33, %s6521_s17 }
 0x475   : > { %3310 = vrot.lane.b32.xlu0 %v6954_v39, %s6520_s27 }
 0x476   : > { %3684 = vrot.lane.b32.xlu1 %v6916_v19, %s6521_s17 }
 0x479   : > { %3314 = vrot.lane.b32.xlu0 %v6960_v40, %s6520_s27 }
 0x47a   : > { %3688 = vrot.lane.b32.xlu1 %v6921_v25, %s6521_s17 }
 0x47d   : > { %3678 = vrot.lane.b32.xlu0 %v6942_v27, %s6521_s17 }
 0x47e   : > { %5812 = vrot.lane.b32.xlu1 %v6990_v15, %s6514_s8 }
 0x481   : > { %3682 = vrot.lane.b32.xlu0 %v6909_v12, %s6521_s17 }
 0x482   : > { %5822 = vrot.lane.b32.xlu1 %v6990_v15, %s6517_s2 }
 0x483   : > { %v5778_v19 = vpop.permute.xlu0 %5777 }
 0x484   : > { %v5780_v23 = vunpack.i.h.bf16 %v5778_v19  ;;  %v5779_v24 = vunpack.i.l.bf16 %v5778_v19  ;;  %v5783_v26 = vpop.permute.xlu1 %5782 }
 0x485   : > { %v5785_v9 = vunpack.i.h.bf16 %v5783_v26  ;;  %v5784_v28 = vunpack.i.l.bf16 %v5783_v26  ;;  %3686 = vrot.lane.b32.xlu0 %v6954_v39, %s6521_s17 }
 0x486   : > { %v5566_v25 = vpack.c.bf16 %v5780_v23, %v5779_v24  ;;  %5832 = vrot.lane.b32.xlu1 %v6990_v15, %s6519_s20 }
 0x487   : > { %v1425_v27 = vpop.permute.xlu0 %1424  ;;  %v5576_v29 = vpack.c.bf16 %v5785_v9, %v5784_v28 }
 0x488   : > { %v1799_v30 = vpop.permute.xlu1 %1798  ;;  %5568 = vmatprep.subr.msk.bf16.mxu0 %vm6980_vm1, %v5566_v25 }
 0x489   : > { %5571 = vmatpush3.bf16.xpose.msk.msra.mxu0 %vm6980_vm1, %v5566_v25  ;;  %3690 = vrot.lane.b32.xlu0 %v6960_v40, %s6521_s17 }
 0x48a   : > { %5578 = vmatprep.subr.msk.bf16.mxu0 %vm6980_vm1, %v5576_v29 }
 0x48b   : > { %v1427_v12 = vpop.permute.xlu0 %1426 }
 0x48c   : > { %v1803_v31 = vpop.permute.xlu1 %1802 }
 0x48d   : > { %5817 = vrot.lane.b32.xlu0 %v6990_v15, %s6516_s26 }
 0x48f   : > { %v1431_v32 = vpop.permute.xlu0 %1430 }
 0x490   : > { %v1805_v33 = vpop.permute.xlu1 %1804  ;;  %5165 = vmatmul.mubr.msk.f32.vlgmr.msra.gmra.mrb[12].mxu0 %vm1057_vm0, %v1421_v18 }
 0x491   : > { %5827 = vrot.lane.b32.xlu0 %v6990_v15, %s6518_s29  ;;  %5167 = vmatprep.mubr.msk.f32.mxu0 %vm1057_vm0, %v1423_v20 }
 0x492   : > { %5581 = vmatpush3.bf16.xpose.msk.msra.mxu0 %vm6980_vm1, %v5576_v29 }
 0x493   : > { %v1797_v34 = vpop.permute.xlu0 %1796 }
 0x494   : > { %v1809_v8 = vpop.permute.xlu1 %1808  ;;  %5168 = vmatmul.mubr.msk.f32.gmra.mrb[14].mxu0 %vm1057_vm0, %v1425_v27 }
 0x495   : > { %5170 = vmatprep.mubr.msk.f32.mxu0 %vm1057_vm0, %v1427_v12 }
 0x497   : > { %v1801_v35 = vpop.permute.xlu0 %1800 }
 0x498   : > { %v2173_v36 = vpop.permute.xlu1 %2172  ;;  %5171 = vmatmul.mubr.msk.f32.gmra.mrb[16].mxu0 %vm1057_vm0, %v1429_v21 }
 0x499   : > { %5173 = vmatprep.mubr.msk.f32.mxu0 %vm1057_vm0, %v1431_v32 }
 0x49b   : > { %v1807_v37 = vpop.permute.xlu0 %1806 }
 0x49c   : > { %v2177_v38 = vpop.permute.xlu1 %2176  ;;  %5174 = vmatmul.mubr.msk.f32.gmra.mrb[18].mxu0 %vm1057_vm0, %v1433_v17 }
 0x49d   : > { %5196 = vmatprep.mubr.msk.f32.mxu0 %vm1057_vm0, %v1797_v34 }
 0x49f   : > { %v1811_v39 = vpop.permute.xlu0 %1810 }
 0x4a0   : > { %v2183_v13 = vpop.permute.xlu1 %2182  ;;  %5197 = vmatmul.mubr.msk.f32.vlgmr.msra.gmra.mrb[20].mxu0 %vm1057_vm0, %v1799_v30 }
 0x4a1   : > { %5199 = vmatprep.mubr.msk.f32.mxu0 %vm1057_vm0, %v1801_v35 }
 0x4a3   : > { %v5788_v40 = vpop.permute.xlu0 %5787 }
 0x4a4   : > { %v5790_v41 = vunpack.i.h.bf16 %v5788_v40  ;;  %v5789_v42 = vunpack.i.l.bf16 %v5788_v40  ;;  %v5793_v43 = vpop.permute.xlu1 %5792  ;;  %5200 = vmatmul.mubr.msk.f32.gmra.mrb[22].mxu0 %vm1057_vm0, %v1803_v31 }
 0x4a5   : > { %v5795_v44 = vunpack.i.h.bf16 %v5793_v43  ;;  %v5794_v16 = vunpack.i.l.bf16 %v5793_v43  ;;  %5202 = vmatprep.mubr.msk.f32.mxu0 %vm1057_vm0, %v1805_v33 }
 0x4a6   : > { %v5586_v45 = vpack.c.bf16 %v5790_v41, %v5789_v42 }
 0x4a7   : > { %v2175_v46 = vpop.permute.xlu0 %2174  ;;  %v5596_v47 = vpack.c.bf16 %v5795_v44, %v5794_v16 }
 0x4a8   : > { %v2187_v10 = vpop.permute.xlu1 %2186  ;;  %5203 = vmatmul.mubr.msk.f32.gmra.mrb[24].mxu0 %vm1057_vm0, %v1807_v37  ;;  %5588 = vmatprep.subr.msk.bf16.mxu0 %vm6980_vm1, %v5586_v45 }
 0x4a9   : > { %5205 = vmatprep.mubr.msk.f32.mxu0 %vm1057_vm0, %v1809_v8  ;;  %5591 = vmatpush3.bf16.xpose.msk.msra.mxu0 %vm6980_vm1, %v5586_v45 }
 0x4aa   : > { %5598 = vmatprep.subr.msk.bf16.mxu0 %vm6980_vm1, %v5596_v47 }
 0x4ab   : > { %v2179_v22 = vpop.permute.xlu0 %2178 }
 0x4ac   : > { %v2551_v48 = vpop.permute.xlu1 %2550  ;;  %5206 = vmatmul.mubr.msk.f32.gmra.mrb[26].mxu0 %vm1057_vm0, %v1811_v39 }
 0x4ad   : > { %5228 = vmatprep.mubr.msk.f32.mxu0 %vm1057_vm0, %v2173_v36 }
 0x4af   : > { %v2181_v49 = vpop.permute.xlu0 %2180 }
 0x4b0   : > { %v2555_v50 = vpop.permute.xlu1 %2554  ;;  %5229 = vmatmul.mubr.msk.f32.vlgmr.msra.gmra.mrb[28].mxu0 %vm1057_vm0, %v2175_v46 }
 0x4b1   : > { %5231 = vmatprep.mubr.msk.f32.mxu0 %vm1057_vm0, %v2177_v38  ;;  %5601 = vmatpush3.bf16.xpose.msk.msra.mxu0 %vm6980_vm1, %v5596_v47 }
 0x4b3   : > { %v2185_v51 = vpop.permute.xlu0 %2184 }
 0x4b4   : > { %v2557_v52 = vpop.permute.xlu1 %2556  ;;  %5232 = vmatmul.mubr.msk.f32.gmra.mrb[30].mxu0 %vm1057_vm0, %v2179_v22 }
 0x4b5   : > { %5234 = vmatprep.mubr.msk.f32.mxu0 %vm1057_vm0, %v2181_v49 }
 0x4b7   : > { %v2549_v53 = vpop.permute.xlu0 %2548 }
 0x4b8   : > { %v2561_v54 = vpop.permute.xlu1 %2560  ;;  %5235 = vmatmul.mubr.msk.f32.gmra.mrb[32].mxu0 %vm1057_vm0, %v2183_v13 }
 0x4b9   : > { %5237 = vmatprep.mubr.msk.f32.mxu0 %vm1057_vm0, %v2185_v51 }
 0x4bb   : > { %v2553_v55 = vpop.permute.xlu0 %2552 }
 0x4bc   : > { %v2925_v56 = vpop.permute.xlu1 %2924  ;;  %5238 = vmatmul.mubr.msk.f32.gmra.mrb[34].mxu0 %vm1057_vm0, %v2187_v10 }
 0x4bd   : > { %5260 = vmatprep.mubr.msk.f32.mxu0 %vm1057_vm0, %v2549_v53 }
 0x4bf   : > { %v2559_v57 = vpop.permute.xlu0 %2558 }
 0x4c0   : > { %v2929_v58 = vpop.permute.xlu1 %2928  ;;  %5261 = vmatmul.mubr.msk.f32.vlgmr.msra.gmra.mrb[36].mxu0 %vm1057_vm0, %v2551_v48 }
 0x4c1   : > { %5263 = vmatprep.mubr.msk.f32.mxu0 %vm1057_vm0, %v2553_v55 }
 0x4c3   : > { %v5798_v59 = vpop.permute.xlu0 %5797 }
 0x4c4   : > { %v5800_v60 = vunpack.i.h.bf16 %v5798_v59  ;;  %v5799_v62 = vunpack.i.l.bf16 %v5798_v59  ;;  %v5803_v63 = vpop.permute.xlu1 %5802  ;;  %5264 = vmatmul.mubr.msk.f32.gmra.mrb[38].mxu0 %vm1057_vm0, %v2555_v50 }
 0x4c5   : > { %v5805_v61 = vunpack.i.h.bf16 %v5803_v63  ;;  %v5804_v0 = vunpack.i.l.bf16 %v5803_v63  ;;  %5266 = vmatprep.mubr.msk.f32.mxu0 %vm1057_vm0, %v2557_v52 }
 0x4c6   : > { %v5606_v1 = vpack.c.bf16 %v5800_v60, %v5799_v62 }
 0x4c7   : > { %v2563_v2 = vpop.permute.xlu0 %2562  ;;  %v5616_v3 = vpack.c.bf16 %v5805_v61, %v5804_v0 }
 0x4c8   : > { %v2935_v4 = vpop.permute.xlu1 %2934  ;;  %5267 = vmatmul.mubr.msk.f32.gmra.mrb[40].mxu0 %vm1057_vm0, %v2559_v57  ;;  %5608 = vmatprep.subr.msk.bf16.mxu0 %vm6980_vm1, %v5606_v1 }
 0x4c9   : > { %5269 = vmatprep.mubr.msk.f32.mxu0 %vm1057_vm0, %v2561_v54  ;;  %5611 = vmatpush3.bf16.xpose.msk.msra.mxu0 %vm6980_vm1, %v5606_v1 }
 0x4ca   : > { %5618 = vmatprep.subr.msk.bf16.mxu0 %vm6980_vm1, %v5616_v3 }
 0x4cb   : > { %v2927_v5 = vpop.permute.xlu0 %2926 }
 0x4cc   : > { %v2939_v7 = vpop.permute.xlu1 %2938  ;;  %5270 = vmatmul.mubr.msk.f32.gmra.mrb[42].mxu0 %vm1057_vm0, %v2563_v2 }
 0x4cd   : > { %5292 = vmatprep.mubr.msk.f32.mxu0 %vm1057_vm0, %v2925_v56 }
 0x4cf   : > { %v2931_v11 = vpop.permute.xlu0 %2930 }
 0x4d0   : > { %v3303_v14 = vpop.permute.xlu1 %3302  ;;  %5293 = vmatmul.mubr.msk.f32.vlgmr.msra.gmra.mrb[44].mxu0 %vm1057_vm0, %v2927_v5 }
 0x4d1   : > { %5295 = vmatprep.mubr.msk.f32.mxu0 %vm1057_vm0, %v2929_v58  ;;  %5621 = vmatpush3.bf16.xpose.msk.msra.mxu0 %vm6980_vm1, %v5616_v3 }
 0x4d3   : > { %v2933_v18 = vpop.permute.xlu0 %2932 }
 0x4d4   : > { %v3307_v20 = vpop.permute.xlu1 %3306  ;;  %5296 = vmatmul.mubr.msk.f32.gmra.mrb[46].mxu0 %vm1057_vm0, %v2931_v11 }
 0x4d5   : > { %5298 = vmatprep.mubr.msk.f32.mxu0 %vm1057_vm0, %v2933_v18 }
 0x4d7   : > { %v2937_v21 = vpop.permute.xlu0 %2936 }
 0x4d8   : > { %v3309_v17 = vpop.permute.xlu1 %3308  ;;  %5299 = vmatmul.mubr.msk.f32.gmra.mrb[48].mxu0 %vm1057_vm0, %v2935_v4 }
 0x4d9   : > { %5301 = vmatprep.mubr.msk.f32.mxu0 %vm1057_vm0, %v2937_v21 }
 0x4db   : > { %v3301_v19 = vpop.permute.xlu0 %3300 }
 0x4dc   : > { %v3313_v23 = vpop.permute.xlu1 %3312  ;;  %5302 = vmatmul.mubr.msk.f32.gmra.mrb[50].mxu0 %vm1057_vm0, %v2939_v7 }
 0x4dd   : > { %5324 = vmatprep.mubr.msk.f32.mxu0 %vm1057_vm0, %v3301_v19 }
 0x4df   : > { %v3305_v24 = vpop.permute.xlu0 %3304 }
 0x4e0   : > { %v3677_v26 = vpop.permute.xlu1 %3676  ;;  %5325 = vmatmul.mubr.msk.f32.vlgmr.msra.gmra.mrb[52].mxu0 %vm1057_vm0, %v3303_v14 }
 0x4e1   : > { %5327 = vmatprep.mubr.msk.f32.mxu0 %vm1057_vm0, %v3305_v24 }
 0x4e3   : > { %v5808_v9 = vpop.permute.xlu0 %5807 }
 0x4e4   : > { %v5810_v28 = vunpack.i.h.bf16 %v5808_v9  ;;  %v5809_v25 = vunpack.i.l.bf16 %v5808_v9  ;;  %v3681_v27 = vpop.permute.xlu1 %3680  ;;  %5328 = vmatmul.mubr.msk.f32.gmra.mrb[54].mxu0 %vm1057_vm0, %v3307_v20 }
 0x4e5   : > { %5330 = vmatprep.mubr.msk.f32.mxu0 %vm1057_vm0, %v3309_v17 }
 0x4e6   : > { %v5626_v29 = vpack.c.bf16 %v5810_v28, %v5809_v25 }
 0x4e7   : > { %v3311_v30 = vpop.permute.xlu0 %3310 }
 0x4e8   : > { %v3685_v12 = vpop.permute.xlu1 %3684  ;;  %5331 = vmatmul.mubr.msk.f32.gmra.mrb[56].mxu0 %vm1057_vm0, %v3311_v30  ;;  %5628 = vmatprep.subr.msk.bf16.mxu0 %vm6980_vm1, %v5626_v29 }
 0x4e9   : > { %5333 = vmatprep.mubr.msk.f32.mxu0 %vm1057_vm0, %v3313_v23  ;;  %5631 = vmatpush3.bf16.xpose.msk.msra.mxu0 %vm6980_vm1, %v5626_v29 }
 0x4eb   : > { %v3315_v31 = vpop.permute.xlu0 %3314 }
 0x4ec   : > { %v3689_v32 = vpop.permute.xlu1 %3688  ;;  %v5134_v33 = vpop.f32.mrb[8].mxu1  ;;  %5334 = vmatmul.mubr.msk.f32.gmra.mrb[58].mxu0 %vm1057_vm0, %v3315_v31 }
 0x4ed   : > { %v7207_v34 = vmul.f32 0.25, %v5134_v33  ;;  %v1154_v8 = vpop.f32.mrb[9].mxu1  ;;  %5356 = vmatprep.mubr.msk.f32.mxu0 %vm1057_vm0, %v3677_v26 }
 0x4ee   : > { %v7210_v35 = vmul.f32 0.25, %v1154_v8 }
 0x4ef   : > { %v3679_v36 = vpop.permute.xlu0 %3678  ;;  %v1204_v37 = vsel %vm1057_vm0, %v7207_v34, -inf }
 0x4f0   : > { %v5813_v38 = vpop.permute.xlu1 %5812  ;;  %5357 = vmatmul.mubr.msk.f32.vlgmr.msra.gmra.mrb[60].mxu0 %vm1057_vm0, %v3679_v36  ;;  %1205 = vmax.xlane.f32.xlu0 %v1204_v37  ;;  %v5137_v6 = vpop.f32.mrb[10].mxu1  ;;  %v1201_v39 = vsel %vm1057_vm0, %v7210_v35, -inf }
 0x4f1   : > { %v5815_v13 = vunpack.i.h.bf16 %v5813_v38  ;;  %v5814_v40 = vunpack.i.l.bf16 %v5813_v38  ;;  %v7217_v41 = vmul.f32 0.25, %v5137_v6  ;;  %5359 = vmatprep.mubr.msk.f32.mxu0 %vm1057_vm0, %v3681_v27  ;;  %1202 = vmax.xlane.f32.xlu1 %v1201_v39  ;;  %v1164_v42 = vpop.f32.mrb[11].mxu1 }
 0x4f2   : > { %v7220_v43 = vmul.f32 0.25, %v1164_v42 }
 0x4f3   : > { %v3683_v44 = vpop.permute.xlu0 %3682  ;;  %v7222_v16 = vpack.c.bf16 %v5815_v13, %v5814_v40  ;;  %v1210_v45 = vsel %vm1057_vm0, %v7217_v41, -inf }
 0x4f4   : > { %5360 = vmatmul.mubr.msk.f32.gmra.mrb[62].mxu0 %vm1057_vm0, %v3683_v44  ;;  %1211 = vmax.xlane.f32.xlu0 %v1210_v45  ;;  %v5140_v46 = vpop.f32.mrb[12].mxu1  ;;  %v1207_v49 = vsel %vm1057_vm0, %v7220_v43, -inf }
 0x4f5   : > { %5573 = vmatprep.subr.bf16.mxu1 %v7222_v16  ;;  %v1174_v47 = vpop.f32.mrb[13].mxu1  ;;  %5362 = vmatprep.mubr.msk.f32.mxu0 %vm1057_vm0, %v3685_v12  ;;  %v7231_v22 = vmul.f32 0.25, %v5140_v46  ;;  %v7286_v12 = vpop.permute.xlu1 %5822 }
 0x4f6   : > { %v7229_v10 = vmul.f32 0.25, %v1174_v47  ;;  %8296 = vst [vmem:[#allocation23_spill] sm:$0xff] %v7286_v12 }
 0x4f7   : > { %v3687_v48 = vpop.permute.xlu0 %3686  ;;  %v1216_v56 = vsel %vm1057_vm0, %v7231_v22, -inf }
 0x4f8   : > { %5363 = vmatmul.mubr.msk.f32.gmra.mrb[64].mxu0 %vm1057_vm0, %v3687_v48  ;;  %1208 = vmax.xlane.f32.xlu0 %v1207_v49  ;;  %v5143_v50 = vpop.f32.mrb[14].mxu1  ;;  %v1213_v51 = vsel %vm1057_vm0, %v7229_v10, -inf }
 0x4f9   : > { %5365 = vmatprep.mubr.msk.f32.mxu0 %vm1057_vm0, %v3689_v32  ;;  %1214 = vmax.xlane.f32.xlu1 %v1213_v51  ;;  %v1184_v52 = vpop.f32.mrb[15].mxu1  ;;  %v7241_v54 = vmul.f32 0.25, %v5143_v50  ;;  %v7302_v13 = vpop.permute.xlu1 %5832 }
 0x4fa   : > { %v7239_v53 = vmul.f32 0.25, %v1184_v52  ;;  %8298 = vst [vmem:[#allocation25_spill] sm:$0xff] %v7302_v13 }
 0x4fb   : > { %v3691_v55 = vpop.permute.xlu0 %3690  ;;  %v1222_v58 = vsel %vm1057_vm0, %v7241_v54, -inf }
 0x4fc   : > { %5366 = vmatmul.mubr.msk.f32.gmra.mrb[66].mxu0 %vm1057_vm0, %v3691_v55  ;;  %1217 = vmax.xlane.f32.xlu0 %v1216_v56  ;;  %v1219_v57 = vsel %vm1057_vm0, %v7239_v53, -inf }
 0x4fd   : > { %1220 = vmax.xlane.f32.xlu1 %v1219_v57 }
 0x4ff   : > { %v7280_v28 = vpop.permute.xlu0 %5817 }
 0x500   : > { %1223 = vmax.xlane.f32.xlu0 %v1222_v58 }
 0x503   : > { %v7296_v38 = vpop.permute.xlu0 %5827 }
 0x504   : > { %8297 = vst [vmem:[#allocation24_spill] sm:$0xff] %v7296_v38 }
 0x563   : > { %v5166_v59 = vpop.f32.mrb[12].mxu0 }
 0x564   : > { %v7250_v60 = vmul.f32 0.25, %v5166_v59  ;;  %v1524_v62 = vpop.f32.mrb[13].mxu0 }
 0x565   : > { %v7252_v63 = vmul.f32 0.25, %v1524_v62 }
 0x566   : > { %v1574_v61 = vsel %vm1057_vm0, %v7250_v60, -inf }
 0x567   : > { %v5169_v0 = vpop.f32.mrb[14].mxu0  ;;  %1575 = vmax.xlane.f32.xlu0 %v1574_v61  ;;  %v1571_v1 = vsel %vm1057_vm0, %v7252_v63, -inf }
 0x568   : > { %v7258_v2 = vmul.f32 0.25, %v5169_v0  ;;  %v1534_v3 = vpop.f32.mrb[15].mxu0  ;;  %1572 = vmax.xlane.f32.xlu1 %v1571_v1 }
 0x569   : > { %v7260_v4 = vmul.f32 0.25, %v1534_v3 }
 0x56a   : > { %v1580_v5 = vsel %vm1057_vm0, %v7258_v2, -inf }
 0x56b   : > { %v5172_v7 = vpop.f32.mrb[16].mxu0  ;;  %1581 = vmax.xlane.f32.xlu0 %v1580_v5  ;;  %v1577_v11 = vsel %vm1057_vm0, %v7260_v4, -inf }
 0x56c   : > { %v7266_v14 = vmul.f32 0.25, %v5172_v7  ;;  %v1544_v18 = vpop.f32.mrb[17].mxu0  ;;  %1578 = vmax.xlane.f32.xlu1 %v1577_v11 }
 0x56d   : > { %v7268_v20 = vmul.f32 0.25, %v1544_v18 }
 0x56e   : > { %v1586_v21 = vsel %vm1057_vm0, %v7266_v14, -inf }
 0x56f   : > { %v5175_v17 = vpop.f32.mrb[18].mxu0  ;;  %1587 = vmax.xlane.f32.xlu0 %v1586_v21  ;;  %v1583_v19 = vsel %vm1057_vm0, %v7268_v20, -inf }
 0x570   : > { %v7274_v23 = vmul.f32 0.25, %v5175_v17  ;;  %v1554_v24 = vpop.f32.mrb[19].mxu0  ;;  %1584 = vmax.xlane.f32.xlu1 %v1583_v19 }
 0x571   : > { %v7276_v26 = vmul.f32 0.25, %v1554_v24 }
 0x572   : > { %v1592_v9 = vsel %vm1057_vm0, %v7274_v23, -inf }
 0x573   : > { %v5198_v25 = vpop.f32.mrb[20].mxu0  ;;  %1593 = vmax.xlane.f32.xlu0 %v1592_v9  ;;  %v1589_v27 = vsel %vm1057_vm0, %v7276_v26, -inf }
 0x574   : > { %v7284_v29 = vmul.f32 0.25, %v5198_v25  ;;  %v1902_v30 = vpop.f32.mrb[21].mxu0  ;;  %1590 = vmax.xlane.f32.xlu1 %v1589_v27 }
 0x575   : > { %v7288_v31 = vmul.f32 0.25, %v1902_v30 }
 0x576   : > { %v1952_v32 = vsel %vm1057_vm0, %v7284_v29, -inf }
 0x577   : > { %v5201_v33 = vpop.f32.mrb[22].mxu0  ;;  %1953 = vmax.xlane.f32.xlu0 %v1952_v32  ;;  %v1949_v8 = vsel %vm1057_vm0, %v7288_v31, -inf }
 0x578   : > { %v7294_v36 = vmul.f32 0.25, %v5201_v33  ;;  %v1912_v37 = vpop.f32.mrb[23].mxu0  ;;  %1950 = vmax.xlane.f32.xlu1 %v1949_v8 }
 0x579   : > { %v7298_v6 = vmul.f32 0.25, %v1912_v37 }
 0x57a   : > { %v1958_v39 = vsel %vm1057_vm0, %v7294_v36, -inf }
 0x57b   : > { %v5204_v40 = vpop.f32.mrb[24].mxu0  ;;  %1959 = vmax.xlane.f32.xlu0 %v1958_v39  ;;  %v1955_v42 = vsel %vm1057_vm0, %v7298_v6, -inf }
 0x57c   : > { %v7306_v44 = vmul.f32 0.25, %v5204_v40  ;;  %v1922_v45 = vpop.f32.mrb[25].mxu0  ;;  %1956 = vmax.xlane.f32.xlu1 %v1955_v42 }
 0x57d   : > { %v7308_v46 = vmul.f32 0.25, %v1922_v45  ;;  %v1206_v47 = vpop.xlane.xlu0 %1205 }
 0x57e   : > { %v1226_v48 = vsub.f32 %v7207_v34, %v1206_v47  ;;  %v1964_v49 = vsel %vm1057_vm0, %v7306_v44, -inf  ;;  %v1203_v50 = vpop.xlane.xlu1 %1202 }
 0x57f   : > { %v5207_v51 = vpop.f32.mrb[26].mxu0  ;;  %1965 = vmax.xlane.f32.xlu0 %v1964_v49  ;;  %v1961_v52 = vsel %vm1057_vm0, %v7308_v46, -inf  ;;  %v1225_v59 = vsub.f32 %v7210_v35, %v1203_v50 }
 0x580   : > { %v7315_v55 = vmul.f32 0.25, %v5207_v51  ;;  %v1932_v56 = vpop.f32.mrb[27].mxu0  ;;  %1962 = vmax.xlane.f32.xlu1 %v1961_v52  ;;  %v1235_v58 = vmul.f32 1.442695, %v1226_v48 }
 0x581   : > { %v7317_v57 = vmul.f32 0.25, %v1932_v56  ;;  %v1212_v3 = vpop.xlane.xlu0 %1211  ;;  %v1233_v7 = vmul.f32 1.442695, %v1225_v59 }
 0x582   : > { %v1970_v34 = vsel %vm1057_vm0, %v7315_v55, -inf  ;;  %5990 = vpow2.f32 %v1235_v58  ;;  %v1228_v24 = vsub.f32 %v7217_v41, %v1212_v3 }
 0x583   : > { %v5230_v62 = vpop.f32.mrb[28].mxu0  ;;  %1971 = vmax.xlane.f32.xlu0 %v1970_v34  ;;  %v1967_v61 = vsel %vm1057_vm0, %v7317_v57, -inf  ;;  %5992 = vpow2.f32 %v1233_v7 }
 0x584   : > { %v7324_v0 = vmul.f32 0.25, %v5230_v62  ;;  %v2278_v1 = vpop.f32.mrb[29].mxu0  ;;  %1968 = vmax.xlane.f32.xlu1 %v1967_v61  ;;  %v1239_v37 = vmul.f32 1.442695, %v1228_v24 }
 0x585   : > { %v7326_v5 = vmul.f32 0.25, %v2278_v1  ;;  %v1209_v25 = vpop.xlane.xlu0 %1208 }
 0x586   : > { %v2328_v35 = vsel %vm1057_vm0, %v7324_v0, -inf  ;;  %v1227_v39 = vsub.f32 %v7220_v43, %v1209_v25  ;;  %5994 = vpow2.f32 %v1239_v37  ;;  %v1215_v61 = vpop.xlane.xlu1 %1214 }
 0x587   : > { %v5233_v11 = vpop.f32.mrb[30].mxu0  ;;  %2329 = vmax.xlane.f32.xlu0 %v2328_v35  ;;  %v2325_v18 = vsel %vm1057_vm0, %v7326_v5, -inf }
 0x588   : > { %v7332_v21 = vmul.f32 0.25, %v5233_v11  ;;  %v2288_v17 = vpop.f32.mrb[31].mxu0  ;;  %2326 = vmax.xlane.f32.xlu1 %v2325_v18  ;;  %v1237_v49 = vmul.f32 1.442695, %v1227_v39  ;;  %v1229_v18 = vsub.f32 %v7229_v10, %v1215_v61 }
 0x589   : > { %v7334_v19 = vmul.f32 0.25, %v2288_v17  ;;  %v1218_v43 = vpop.xlane.xlu0 %1217 }
 0x58a   : > { %v2334_v9 = vsel %vm1057_vm0, %v7332_v21, -inf  ;;  %5996 = vpow2.f32 %v1237_v49  ;;  %v1230_v34 = vsub.f32 %v7231_v22, %v1218_v43  ;;  %v1221_v43 = vpop.xlane.xlu1 %1220 }
 0x58b   : > { %v5236_v27 = vpop.f32.mrb[32].mxu0  ;;  %2335 = vmax.xlane.f32.xlu0 %v2334_v9  ;;  %v2331_v30 = vsel %vm1057_vm0, %v7334_v19, -inf }
 0x58c   : > { %v7341_v32 = vmul.f32 0.25, %v5236_v27  ;;  %v2298_v33 = vpop.f32.mrb[33].mxu0  ;;  %2332 = vmax.xlane.f32.xlu1 %v2331_v30  ;;  %v7350_v45 = vpop.eup %5990  ;;  %v1243_v17 = vmul.f32 1.442695, %v1230_v34 }
 0x58d   : > { %v7343_v8 = vmul.f32 0.25, %v2298_v33  ;;  %v1252_v52 = vsel %vm1057_vm0, %v7350_v45, 0.0  ;;  %v7358_v56 = vpop.eup %5992  ;;  %v1241_v33 = vmul.f32 1.442695, %v1229_v18  ;;  %v1224_v37 = vpop.xlane.xlu0 %1223 }
 0x58e   : > { %v2340_v41 = vsel %vm1057_vm0, %v7341_v32, -inf  ;;  %v1249_v7 = vsel %vm1057_vm0, %v7358_v56, 0.0  ;;  %5998 = vpow2.f32 %v1243_v17  ;;  %v1232_v49 = vsub.f32 %v7241_v54, %v1224_v37 }
 0x58f   : > { %v5239_v40 = vpop.f32.mrb[34].mxu0  ;;  %2341 = vmax.xlane.f32.xlu0 %v2340_v41  ;;  %v2337_v42 = vsel %vm1057_vm0, %v7343_v8, -inf  ;;  %6000 = vpow2.f32 %v1241_v33 }
 0x590   : > { %v7352_v47 = vmul.f32 0.25, %v5239_v40  ;;  %v2308_v48 = vpop.f32.mrb[35].mxu0  ;;  %2338 = vmax.xlane.f32.xlu1 %v2337_v42  ;;  %v7376_v25 = vpop.eup %5994 }
 0x591   : > { %v7365_v1 = vmul.f32 0.25, %v2308_v48  ;;  %v1258_v41 = vsel %vm1057_vm0, %v7376_v25, 0.0 }
 0x592   : > { %v2346_v50 = vsel %vm1057_vm0, %v7352_v47, -inf }
 0x593   : > { %v5262_v51 = vpop.f32.mrb[36].mxu0  ;;  %2347 = vmax.xlane.f32.xlu0 %v2346_v50  ;;  %v2343_v9 = vsel %vm1057_vm0, %v7365_v1, -inf }
 0x594   : > { %v7360_v58 = vmul.f32 0.25, %v5262_v51  ;;  %v2654_v59 = vpop.f32.mrb[37].mxu0  ;;  %1253 = vadd.xlane.f32.xlu1 %v1252_v52  ;;  %v7386_v40 = vpop.eup %5996 }
 0x595   : > { %v7395_v51 = vmul.f32 0.25, %v2654_v59  ;;  %v1255_v34 = vsel %vm1057_vm0, %v7386_v40, 0.0 }
 0x596   : > { %v2704_v62 = vsel %vm1057_vm0, %v7360_v58, -inf }
 0x597   : > { %v5265_v3 = vpop.f32.mrb[38].mxu0  ;;  %2705 = vmax.xlane.f32.xlu0 %v2704_v62  ;;  %v2701_v59 = vsel %vm1057_vm0, %v7395_v51, -inf }
 0x598   : > { %v7369_v35 = vmul.f32 0.25, %v5265_v3  ;;  %v2664_v11 = vpop.f32.mrb[39].mxu0  ;;  %1250 = vadd.xlane.f32.xlu1 %v1249_v7  ;;  %v1231_v3 = vsub.f32 %v7239_v53, %v1221_v43  ;;  %v1247_v7 = vmul.f32 1.442695, %v1232_v49  ;;  %v7408_v17 = vpop.eup %5998 }
 0x599   : > { %v7418_v37 = vpop.eup %6000  ;;  %v7426_v43 = vmul.f32 0.25, %v2664_v11 }
 0x59a   : > { %v2710_v22 = vsel %vm1057_vm0, %v7369_v35, -inf  ;;  %6002 = vpow2.f32 %v1247_v7 }
 0x59b   : > { %v5268_v24 = vpop.f32.mrb[40].mxu0  ;;  %2711 = vmax.xlane.f32.xlu0 %v2710_v22 }
 0x59c   : > { %v7378_v27 = vmul.f32 0.25, %v5268_v24  ;;  %v7380_v30 = vpop.f32.mrb[41].mxu0  ;;  %2344 = vmax.xlane.f32.xlu1 %v2343_v9  ;;  %v1245_v9 = vmul.f32 1.442695, %v1231_v3 }
 0x59e   : > { %v2716_v10 = vsel %vm1057_vm0, %v7378_v27, -inf  ;;  %6004 = vpow2.f32 %v1245_v9 }
 0x59f   : > { %v5271_v39 = vpop.f32.mrb[42].mxu0  ;;  %2717 = vmax.xlane.f32.xlu0 %v2716_v10  ;;  %v1264_v10 = vsel %vm1057_vm0, %v7408_v17, 0.0 }
 0x5a0   : > { %v7388_v42 = vmul.f32 0.25, %v5271_v39  ;;  %v7390_v48 = vpop.f32.mrb[43].mxu0  ;;  %1259 = vadd.xlane.f32.xlu1 %v1258_v41 }
 0x5a2   : > { %v2722_v50 = vsel %vm1057_vm0, %v7388_v42, -inf }
 0x5a3   : > { %v5294_v52 = vpop.f32.mrb[44].mxu0  ;;  %2723 = vmax.xlane.f32.xlu0 %v2722_v50 }
 0x5a4   : > { %v7399_v62 = vmul.f32 0.25, %v5294_v52  ;;  %v7401_v61 = vpop.f32.mrb[45].mxu0  ;;  %1256 = vadd.xlane.f32.xlu1 %v1255_v34  ;;  %v1261_v34 = vsel %vm1057_vm0, %v7418_v37, 0.0  ;;  %v7436_v9 = vpop.eup %6002 }
 0x5a6   : > { %v3080_v54 = vsel %vm1057_vm0, %v7399_v62, -inf }
 0x5a7   : > { %v5297_v18 = vpop.f32.mrb[46].mxu0  ;;  %3081 = vmax.xlane.f32.xlu0 %v3080_v54 }
 0x5a8   : > { %v7410_v22 = vmul.f32 0.25, %v5297_v18  ;;  %v7412_v24 = vpop.f32.mrb[47].mxu0  ;;  %2702 = vmax.xlane.f32.xlu1 %v2701_v59  ;;  %v2707_v59 = vsel %vm1057_vm0, %v7426_v43, -inf }
 0x5aa   : > { %8299 = vst [vmem:[#allocation26_spill] sm:$0xff] %v7410_v22  ;;  %v3086_v53 = vsel %vm1057_vm0, %v7410_v22, -inf }
 0x5ab   : > { %v5300_v33 = vpop.f32.mrb[48].mxu0  ;;  %3087 = vmax.xlane.f32.xlu0 %v3086_v53 }
 0x5ac   : > { %v7420_v39 = vmul.f32 0.25, %v5300_v33  ;;  %v3050_v41 = vpop.f32.mrb[49].mxu0  ;;  %1265 = vadd.xlane.f32.xlu1 %v1264_v10 }
 0x5ad   : > { %v7422_v49 = vmul.f32 0.25, %v3050_v41  ;;  %v1270_v41 = vsel %vm1057_vm0, %v7436_v9, 0.0 }
 0x5ae   : > { %8300 = vst [vmem:[#allocation27_spill] sm:$0xff] %v7420_v39  ;;  %v3092_v50 = vsel %vm1057_vm0, %v7420_v39, -inf }
 0x5af   : > { %v5303_v52 = vpop.f32.mrb[50].mxu0  ;;  %3093 = vmax.xlane.f32.xlu0 %v3092_v50  ;;  %v3089_v54 = vsel %vm1057_vm0, %v7422_v49, -inf  ;;  %v7444_v50 = vpop.eup %6004 }
 0x5b0   : > { %v3060_v3 = vpop.f32.mrb[51].mxu0  ;;  %1262 = vadd.xlane.f32.xlu1 %v1261_v34  ;;  %v7430_v7 = vmul.f32 0.25, %v5303_v52 }
 0x5b1   : > { %v7438_v53 = vmul.f32 0.25, %v3060_v3  ;;  %v7451_v3 = vmul.f32 0.25, %v7380_v30 }
 0x5b2   : > { %8301 = vst [vmem:[#allocation28_spill] sm:$0xff] %v7430_v7  ;;  %v3098_v33 = vsel %vm1057_vm0, %v7430_v7, -inf }
 0x5b3   : > { %v5326_v18 = vpop.f32.mrb[52].mxu0  ;;  %3090 = vmax.xlane.f32.xlu0 %v3089_v54  ;;  %8302 = vst [vmem:[#allocation29_spill] sm:$0xff] %v7438_v53  ;;  %v3095_v54 = vsel %vm1057_vm0, %v7438_v53, -inf  ;;  %v2713_v30 = vsel %vm1057_vm0, %v7451_v3, -inf }
 0x5b4   : > { %v3406_v11 = vpop.f32.mrb[53].mxu0  ;;  %2708 = vmax.xlane.f32.xlu1 %v2707_v59  ;;  %v7446_v34 = vmul.f32 0.25, %v5326_v18  ;;  %v7460_v18 = vmul.f32 0.25, %v7390_v48 }
 0x5b5   : > { %v7455_v38 = vmul.f32 0.25, %v3406_v11  ;;  %v7469_v11 = vmul.f32 0.25, %v7401_v61 }
 0x5b6   : > { %8303 = vst [vmem:[#allocation30_spill] sm:$0xff] %v7446_v34  ;;  %v2719_v48 = vsel %vm1057_vm0, %v7460_v18, -inf }
 0x5b7   : > { %v5329_v10 = vpop.f32.mrb[54].mxu0  ;;  %3099 = vmax.xlane.f32.xlu0 %v3098_v33  ;;  %v1267_v33 = vsel %vm1057_vm0, %v7444_v50, 0.0  ;;  %8304 = vst [vmem:[#allocation31_spill] sm:$0xff] %v7455_v38  ;;  %v3077_v61 = vsel %vm1057_vm0, %v7469_v11, -inf }
 0x5b8   : > { %v3416_v52 = vpop.f32.mrb[55].mxu0  ;;  %1271 = vadd.xlane.f32.xlu1 %v1270_v41  ;;  %v3456_v41 = vsel %vm1057_vm0, %v7446_v34, -inf }
 0x5bb   : > { %v5332_v59 = vpop.f32.mrb[56].mxu0  ;;  %3096 = vmax.xlane.f32.xlu0 %v3095_v54  ;;  %v7464_v54 = vmul.f32 0.25, %v5329_v10  ;;  %v7478_v10 = vmul.f32 0.25, %v7412_v24 }
 0x5bc   : > { %v3426_v13 = vpop.f32.mrb[57].mxu0  ;;  %1268 = vadd.xlane.f32.xlu1 %v1267_v33  ;;  %v3453_v33 = vsel %vm1057_vm0, %v7455_v38, -inf }
 0x5bd   : > { %8305 = vst [vmem:[#allocation32_spill] sm:$0xff] %v7464_v54  ;;  %8307 = vst [vmem:[#allocation34_spill] sm:$0xff] %v7478_v10  ;;  %v7488_v24 = vmul.f32 0.25, %v3426_v13 }
 0x5bf   : > { %v5335_v15 = vpop.f32.mrb[58].mxu0  ;;  %3457 = vmax.xlane.f32.xlu0 %v3456_v41  ;;  %v7473_v41 = vmul.f32 0.25, %v3416_v52  ;;  %8308 = vst [vmem:[#allocation35_spill] sm:$0xff] %v7488_v24 }
 0x5c0   : > { %v3436_v12 = vpop.f32.mrb[59].mxu0  ;;  %2714 = vmax.xlane.f32.xlu1 %v2713_v30  ;;  %v3462_v30 = vsel %vm1057_vm0, %v7464_v54, -inf  ;;  %v3083_v54 = vsel %vm1057_vm0, %v7478_v10, -inf }
 0x5c1   : > { %8306 = vst [vmem:[#allocation33_spill] sm:$0xff] %v7473_v41 }
 0x5c3   : > { %v5358_v39 = vpop.f32.mrb[60].mxu0  ;;  %3454 = vmax.xlane.f32.xlu0 %v3453_v33  ;;  %v7482_v33 = vmul.f32 0.25, %v5332_v59  ;;  %v7492_v59 = vmul.f32 0.25, %v5335_v15 }
 0x5c4   : > { %v3782_v34 = vpop.f32.mrb[61].mxu0  ;;  %2720 = vmax.xlane.f32.xlu1 %v2719_v48  ;;  %v3459_v48 = vsel %vm1057_vm0, %v7473_v41, -inf  ;;  %v3465_v41 = vsel %vm1057_vm0, %v7488_v24, -inf  ;;  %v7500_v13 = vmul.f32 0.25, %v5358_v39 }
 0x5c5   : > { %v3474_v10 = vsel %vm1057_vm0, %v7492_v59, -inf }
 0x5c6   : > { %v3832_v15 = vsel %vm1057_vm0, %v7500_v13, -inf }
 0x5c7   : > { %v5361_v53 = vpop.f32.mrb[62].mxu0  ;;  %3463 = vmax.xlane.f32.xlu0 %v3462_v30  ;;  %v3468_v30 = vsel %vm1057_vm0, %v7482_v33, -inf }
 0x5c8   : > { %v3792_v38 = vpop.f32.mrb[63].mxu0  ;;  %3078 = vmax.xlane.f32.xlu1 %v3077_v61  ;;  %v7508_v24 = vmul.f32 0.25, %v5361_v53 }
 0x5ca   : > { %8309 = vst [vmem:[#allocation36_spill] sm:$0xff] %v7508_v24  ;;  %v3838_v39 = vsel %vm1057_vm0, %v7508_v24, -inf }
 0x5cb   : > { %v5364_v52 = vpop.f32.mrb[64].mxu0  ;;  %3460 = vmax.xlane.f32.xlu0 %v3459_v48  ;;  %v7496_v48 = vmul.f32 0.25, %v3436_v12 }
 0x5cc   : > { %v3802_v7 = vpop.f32.mrb[65].mxu0  ;;  %3084 = vmax.xlane.f32.xlu1 %v3083_v54 }
 0x5cd   : > { %v3471_v54 = vsel %vm1057_vm0, %v7496_v48, -inf }
 0x5cf   : > { %v5367_v22 = vpop.f32.mrb[66].mxu0  ;;  %3469 = vmax.xlane.f32.xlu0 %v3468_v30  ;;  %v7504_v30 = vmul.f32 0.25, %v3782_v34 }
 0x5d0   : > { %v3812_v61 = vpop.f32.mrb[67].mxu0 }
 0x5d1   : > { %v3829_v12 = vsel %vm1057_vm0, %v7504_v30, -inf  ;;  %v7529_v24 = vmul.f32 0.25, %v3812_v61 }
 0x5d3   : > { %3466 = vmax.xlane.f32.xlu0 %v3465_v41  ;;  %v7512_v41 = vmul.f32 0.25, %v3792_v38  ;;  %8313 = vst [vmem:[#allocation40_spill] sm:$0xff] %v7529_v24 }
 0x5d5   : > { %8310 = vst [vmem:[#allocation37_spill] sm:$0xff] %v7512_v41  ;;  %v3835_v34 = vsel %vm1057_vm0, %v7512_v41, -inf }
 0x5d7   : > { %3475 = vmax.xlane.f32.xlu0 %v3474_v10  ;;  %v7516_v10 = vmul.f32 0.25, %v5364_v52 }
 0x5d9   : > { %8311 = vst [vmem:[#allocation38_spill] sm:$0xff] %v7516_v10  ;;  %v3844_v53 = vsel %vm1057_vm0, %v7516_v10, -inf }
 0x5db   : > { %3472 = vmax.xlane.f32.xlu0 %v3471_v54  ;;  %v7520_v54 = vmul.f32 0.25, %v3802_v7 }
 0x5dd   : > { %8312 = vst [vmem:[#allocation39_spill] sm:$0xff] %v7520_v54  ;;  %v3841_v38 = vsel %vm1057_vm0, %v7520_v54, -inf }
 0x5df   : > { %3833 = vmax.xlane.f32.xlu0 %v3832_v15  ;;  %v7524_v15 = vmul.f32 0.25, %v5367_v22 }
 0x5e1   : > { %v3850_v7 = vsel %vm1057_vm0, %v7524_v15, -inf }
 0x5e3   : > { %3830 = vmax.xlane.f32.xlu0 %v3829_v12 }
 0x5e7   : > { %3839 = vmax.xlane.f32.xlu0 %v3838_v39 }
 0x5eb   : > { %3836 = vmax.xlane.f32.xlu0 %v3835_v34 }
 0x5ef   : > { %3845 = vmax.xlane.f32.xlu0 %v3844_v53 }
 0x5f3   : > { %3842 = vmax.xlane.f32.xlu0 %v3841_v38  ;;  %v3847_v38 = vsel %vm1057_vm0, %v7529_v24, -inf }
 0x5f4   : > { %v1576_v12 = vpop.xlane.xlu0 %1575 }
 0x5f5   : > { %v1596_v52 = vsub.f32 %v7250_v60, %v1576_v12  ;;  %v1573_v39 = vpop.xlane.xlu1 %1572 }
 0x5f6   : > { %v1595_v34 = vsub.f32 %v7252_v63, %v1573_v39 }
 0x5f7   : > { %v1605_v41 = vmul.f32 1.442695, %v1596_v52  ;;  %3851 = vmax.xlane.f32.xlu0 %v3850_v7 }
 0x5f8   : > { %v1603_v53 = vmul.f32 1.442695, %v1595_v34  ;;  %v1582_v22 = vpop.xlane.xlu0 %1581 }
 0x5f9   : > { %6006 = vpow2.f32 %v1605_v41  ;;  %v1598_v10 = vsub.f32 %v7258_v2, %v1582_v22  ;;  %v1579_v54 = vpop.xlane.xlu1 %1578 }
 0x5fa   : > { %6008 = vpow2.f32 %v1603_v53  ;;  %v1597_v61 = vsub.f32 %v7260_v4, %v1579_v54 }
 0x5fb   : > { %v1609_v60 = vmul.f32 1.442695, %v1598_v10  ;;  %3848 = vmax.xlane.f32.xlu0 %v3847_v38 }
 0x5fc   : > { %v1588_v63 = vpop.xlane.xlu0 %1587  ;;  %v1607_v39 = vmul.f32 1.442695, %v1597_v61 }
 0x5fd   : > { %v1585_v12 = vpop.xlane.xlu1 %1584  ;;  %6010 = vpow2.f32 %v1609_v60  ;;  %v1600_v52 = vsub.f32 %v7266_v14, %v1588_v63 }
 0x5fe   : > { %6012 = vpow2.f32 %v1607_v39  ;;  %v1599_v22 = vsub.f32 %v7268_v20, %v1585_v12 }
 0x5ff   : > { %v1613_v2 = vmul.f32 1.442695, %v1600_v52 }
 0x600   : > { %v1594_v34 = vpop.xlane.xlu0 %1593  ;;  %v1611_v53 = vmul.f32 1.442695, %v1599_v22 }
 0x601   : > { %v1591_v7 = vpop.xlane.xlu1 %1590  ;;  %6014 = vpow2.f32 %v1613_v2  ;;  %v1602_v14 = vsub.f32 %v7274_v23, %v1594_v34 }
 0x602   : > { %v1601_v63 = vsub.f32 %v7276_v26, %v1591_v7  ;;  %6016 = vpow2.f32 %v1611_v53 }
 0x603   : > { %v7539_v41 = vpop.eup %6006  ;;  %v1617_v12 = vmul.f32 1.442695, %v1602_v14 }
 0x604   : > { %8314 = vst [vmem:[#allocation41_spill] sm:$0xff] %v7539_v41  ;;  %v1954_v24 = vpop.xlane.xlu0 %1953  ;;  %v1622_v10 = vsel %vm1057_vm0, %v7539_v41, 0.0  ;;  %v7544_v4 = vpop.eup %6008  ;;  %v1615_v22 = vmul.f32 1.442695, %v1601_v63 }
 0x605   : > { %1623 = vadd.xlane.f32.xlu1 %v1622_v10  ;;  %v1951_v54 = vpop.xlane.xlu1 %1950  ;;  %v1619_v60 = vsel %vm1057_vm0, %v7544_v4, 0.0  ;;  %v1974_v10 = vsub.f32 %v7284_v29, %v1954_v24  ;;  %6018 = vpow2.f32 %v1617_v12 }
 0x606   : > { %v1973_v29 = vsub.f32 %v7288_v31, %v1951_v54 }
 0x607   : > { %v7549_v61 = vpop.eup %6010  ;;  %v1983_v63 = vmul.f32 1.442695, %v1974_v10 }
 0x608   : > { %v1960_v38 = vpop.xlane.xlu0 %1959  ;;  %8315 = vst [vmem:[#allocation42_spill] sm:$0xff] %v7549_v61  ;;  %v1628_v52 = vsel %vm1057_vm0, %v7549_v61, 0.0  ;;  %v7554_v2 = vpop.eup %6012 }
 0x609   : > { %1620 = vadd.xlane.f32.xlu1 %v1619_v60  ;;  %v1957_v20 = vpop.xlane.xlu1 %1956  ;;  %v1625_v53 = vsel %vm1057_vm0, %v7554_v2, 0.0 }
 0x60b   : > { %v7561_v14 = vpop.eup %6014 }
 0x60c   : > { %v1966_v39 = vpop.xlane.xlu0 %1965 }
 0x60d   : > { %v1978_v23 = vsub.f32 %v7306_v44, %v1966_v39  ;;  %1629 = vadd.xlane.f32.xlu1 %v1628_v52  ;;  %v1963_v34 = vpop.xlane.xlu1 %1962  ;;  %v1634_v39 = vsel %vm1057_vm0, %v7561_v14, 0.0  ;;  %v7568_v52 = vpop.eup %6016 }
 0x60e   : > { %v1977_v60 = vsub.f32 %v7308_v46, %v1963_v34 }
 0x60f   : > { %v1991_v41 = vmul.f32 1.442695, %v1978_v23  ;;  %v1976_v23 = vsub.f32 %v7294_v36, %v1960_v38 }
 0x610   : > { %v1989_v26 = vmul.f32 1.442695, %v1977_v60  ;;  %v1972_v7 = vpop.xlane.xlu0 %1971  ;;  %v1975_v60 = vsub.f32 %v7298_v6, %v1957_v20 }
 0x611   : > { %6020 = vpow2.f32 %v1991_v41  ;;  %v1980_v61 = vsub.f32 %v7315_v55, %v1972_v7  ;;  %1626 = vadd.xlane.f32.xlu1 %v1625_v53  ;;  %v1969_v44 = vpop.xlane.xlu1 %1968  ;;  %v1981_v55 = vmul.f32 1.442695, %v1973_v29  ;;  %v1987_v10 = vmul.f32 1.442695, %v1976_v23 }
 0x612   : > { %6022 = vpow2.f32 %v1615_v22  ;;  %v1979_v24 = vsub.f32 %v7317_v57, %v1969_v44  ;;  %v1631_v57 = vsel %vm1057_vm0, %v7568_v52, 0.0  ;;  %v1985_v20 = vmul.f32 1.442695, %v1975_v60 }
 0x613   : > { %6024 = vpow2.f32 %v1989_v26  ;;  %v1995_v46 = vmul.f32 1.442695, %v1980_v61  ;;  %v7574_v61 = vpop.eup %6018 }
 0x614   : > { %v2330_v12 = vpop.xlane.xlu0 %2329  ;;  %6026 = vpow2.f32 %v1983_v63  ;;  %v1993_v34 = vmul.f32 1.442695, %v1979_v24  ;;  %v1640_v44 = vsel %vm1057_vm0, %v7574_v61, 0.0 }
 0x615   : > { %1635 = vadd.xlane.f32.xlu1 %v1634_v39  ;;  %v2327_v41 = vpop.xlane.xlu1 %2326  ;;  %6028 = vpow2.f32 %v1995_v46  ;;  %v2350_v31 = vsub.f32 %v7324_v0, %v2330_v12 }
 0x616   : > { %6030 = vpow2.f32 %v1981_v55  ;;  %v2349_v29 = vsub.f32 %v7326_v5, %v2327_v41 }
 0x617   : > { %6032 = vpow2.f32 %v1993_v34  ;;  %v2359_v36 = vmul.f32 1.442695, %v2350_v31 }
 0x618   : > { %v2336_v54 = vpop.xlane.xlu0 %2335  ;;  %6034 = vpow2.f32 %v1987_v10  ;;  %v2357_v31 = vmul.f32 1.442695, %v2349_v29 }
 0x619   : > { %1632 = vadd.xlane.f32.xlu1 %v1631_v57  ;;  %v2333_v22 = vpop.xlane.xlu1 %2332  ;;  %v2352_v38 = vsub.f32 %v7332_v21, %v2336_v54  ;;  %6036 = vpow2.f32 %v2359_v36 }
 0x61a   : > { %v2351_v24 = vsub.f32 %v7334_v19, %v2333_v22  ;;  %6038 = vpow2.f32 %v1985_v20 }
 0x61b   : > { %v7577_v26 = vpop.eup %6020  ;;  %v2363_v21 = vmul.f32 1.442695, %v2352_v38 }
 0x61c   : > { %v7580_v7 = vpop.eup %6022  ;;  %v2342_v0 = vpop.xlane.xlu0 %2341  ;;  %v2012_v53 = vsel %vm1057_vm0, %v7577_v26, 0.0  ;;  %v2361_v19 = vmul.f32 1.442695, %v2351_v24 }
 0x61d   : > { %v7586_v63 = vpop.eup %6024  ;;  %2013 = vadd.xlane.f32.xlu0 %v2012_v53  ;;  %1641 = vadd.xlane.f32.xlu1 %v1640_v44  ;;  %v2339_v6 = vpop.xlane.xlu1 %2338  ;;  %v1637_v39 = vsel %vm1057_vm0, %v7580_v7, 0.0  ;;  %6040 = vpow2.f32 %v2363_v21  ;;  %v2354_v54 = vsub.f32 %v7341_v32, %v2342_v0 }
 0x61e   : > { %v7589_v46 = vpop.eup %6026  ;;  %v2009_v55 = vsel %vm1057_vm0, %v7586_v63, 0.0  ;;  %v2353_v5 = vsub.f32 %v7343_v8, %v2339_v6 }
 0x61f   : > { %v7596_v23 = vpop.eup %6028  ;;  %v2000_v22 = vsel %vm1057_vm0, %v7589_v46, 0.0  ;;  %v2367_v32 = vmul.f32 1.442695, %v2354_v54 }
 0x620   : > { %v2348_v12 = vpop.xlane.xlu0 %2347  ;;  %v7599_v41 = vpop.eup %6030  ;;  %v2018_v10 = vsel %vm1057_vm0, %v7596_v23, 0.0  ;;  %v2365_v8 = vmul.f32 1.442695, %v2353_v5 }
 0x621   : > { %1638 = vadd.xlane.f32.xlu1 %v1637_v39  ;;  %2010 = vadd.xlane.f32.xlu0 %v2009_v55  ;;  %v1254_v34 = vpop.xlane.xlu1 %1253  ;;  %v7606_v60 = vpop.eup %6032  ;;  %v2356_v38 = vsub.f32 %v7352_v47, %v2348_v12  ;;  %v1997_v44 = vsel %vm1057_vm0, %v7599_v41, 0.0 }
 0x622   : > { %6042 = vrcp.f32 %v1254_v34  ;;  %v7609_v53 = vpop.eup %6034  ;;  %v2015_v6 = vsel %vm1057_vm0, %v7606_v60, 0.0 }
 0x623   : > { %v7617_v20 = vpop.eup %6036  ;;  %v2371_v21 = vmul.f32 1.442695, %v2356_v38  ;;  %v2006_v39 = vsel %vm1057_vm0, %v7609_v53, 0.0 }
 0x624   : > { %v2706_v57 = vpop.xlane.xlu0 %2705  ;;  %v7620_v24 = vpop.eup %6038  ;;  %v2376_v55 = vsel %vm1057_vm0, %v7617_v20, 0.0 }
 0x625   : > { %2001 = vadd.xlane.f32.xlu1 %v2000_v22  ;;  %2019 = vadd.xlane.f32.xlu0 %v2018_v10  ;;  %v1251_v36 = vpop.xlane.xlu1 %1250  ;;  %v2726_v54 = vsub.f32 %v7360_v58, %v2706_v57 }
 0x626   : > { %6044 = vrcp.f32 %v1251_v36 }
 0x627   : > { %6046 = vpow2.f32 %v2357_v31  ;;  %v7626_v34 = vpop.eup %6040 }
 0x628   : > { %6048 = vpow2.f32 %v2361_v19  ;;  %v7611_v0 = vpop.xlane.xlu0 %2711  ;;  %v5820_v19 = vunpack.i.h.bf16 %v7280_v28 }
 0x629   : > { %1998 = vadd.xlane.f32.xlu1 %v1997_v44  ;;  %2016 = vadd.xlane.f32.xlu0 %v2015_v6  ;;  %v2345_v29 = vpop.xlane.xlu1 %2344  ;;  %6050 = vpow2.f32 %v2365_v8  ;;  %v5819_v8 = vunpack.i.l.bf16 %v7280_v28 }
 0x62a   : > { %v2355_v47 = vsub.f32 %v7365_v1, %v2345_v29  ;;  %6052 = vpow2.f32 %v2367_v32  ;;  %v2382_v32 = vsel %vm1057_vm0, %v7626_v34, 0.0  ;;  %v2735_v29 = vmul.f32 1.442695, %v2726_v54 }
 0x62b   : > { %6054 = vpow2.f32 %v2371_v21 }
 0x62c   : > { %v2718_v12 = vpop.xlane.xlu0 %2717  ;;  %v6043_v1 = vpop.eup %6042  ;;  %v2369_v22 = vmul.f32 1.442695, %v2355_v47 }
 0x62d   : > { %v2730_v31 = vsub.f32 %v7378_v27, %v2718_v12  ;;  %2007 = vadd.xlane.f32.xlu1 %v2006_v39  ;;  %2377 = vadd.xlane.f32.xlu0 %v2376_v55  ;;  %v1260_v5 = vpop.xlane.xlu1 %1259  ;;  %v2003_v27 = vsel %vm1057_vm0, %v7620_v24, 0.0  ;;  %v1276_v28 = vmul.f32 %v6043_v1, %v7350_v45  ;;  %v7650_v12 = vpack.c.bf16 %v5820_v19, %v5819_v8 }
 0x62e   : > { %6056 = vrcp.f32 %v1260_v5  ;;  %v2728_v5 = vsub.f32 %v7369_v35, %v7611_v0 }
 0x62f   : > { %v2743_v10 = vmul.f32 1.442695, %v2730_v31 }
 0x630   : > { %v6045_v36 = vpop.eup %6044  ;;  %v7632_v38 = vpop.xlane.xlu0 %2723  ;;  %v2739_v8 = vmul.f32 1.442695, %v2728_v5 }
 0x631   : > { %v7638_v44 = vpop.eup %6046  ;;  %6058 = vpow2.f32 %v2743_v10  ;;  %2004 = vadd.xlane.f32.xlu1 %v2003_v27  ;;  %2383 = vadd.xlane.f32.xlu0 %v2382_v32  ;;  %v1257_v58 = vpop.xlane.xlu1 %1256  ;;  %v1274_v57 = vmul.f32 %v6045_v36, %v7358_v56 }
 0x632   : > { %v7641_v6 = vpop.eup %6048  ;;  %6060 = vrcp.f32 %v1257_v58  ;;  %v2373_v47 = vsel %vm1057_vm0, %v7638_v44, 0.0 }
 0x633   : > { %6062 = vpow2.f32 %v2369_v22  ;;  %5148 = vmatprep.mubr.msk.f32.mxu1 %vm1057_vm0, %v1274_v57  ;;  %v7652_v39 = vpop.eup %6050  ;;  %v2379_v45 = vsel %vm1057_vm0, %v7641_v6, 0.0 }
 0x634   : > { %v7645_v21 = vpop.xlane.xlu0 %3081  ;;  %5149 = vmatmul.mubr.msk.f32.vlgmr.msra.gmra.mrb[16].mxu1 %vm1057_vm0, %v1276_v28  ;;  %v7657_v55 = vpop.eup %6052  ;;  %6064 = vpow2.f32 %v2735_v29 }
 0x635   : > { %5575 = vmatpush3.bf16.msra.mxu1 %v7222_v16  ;;  %2374 = vadd.xlane.f32.xlu1 %v2373_v47  ;;  %v2703_v56 = vpop.xlane.xlu1 %2702  ;;  %v2385_v16 = vsel %vm1057_vm0, %v7652_v39, 0.0  ;;  %v7667_v54 = vpop.eup %6054  ;;  %v2388_v22 = vsel %vm1057_vm0, %v7657_v55, 0.0 }
 0x636   : > { %2380 = vadd.xlane.f32.xlu0 %v2379_v45  ;;  %5583 = vmatprep.subr.bf16.mxu1 %v7650_v12  ;;  %v2725_v31 = vsub.f32 %v7395_v51, %v2703_v56  ;;  %v2394_v32 = vsel %vm1057_vm0, %v7667_v54, 0.0 }
 0x638   : > { %v2733_v19 = vmul.f32 1.442695, %v2725_v31  ;;  %v7663_v1 = vpop.xlane.xlu0 %3087  ;;  %v6057_v36 = vpop.eup %6056 }
 0x639   : > { %2386 = vadd.xlane.f32.xlu1 %v2385_v16  ;;  %v1266_v10 = vpop.xlane.xlu1 %1265  ;;  %v1280_v29 = vmul.f32 %v6057_v36, %v7376_v25 }
 0x63a   : > { %2389 = vadd.xlane.f32.xlu0 %v2388_v22  ;;  %6066 = vpow2.f32 %v2733_v19 }
 0x63b   : > { %v7671_v51 = vpop.eup %6058  ;;  %6068 = vrcp.f32 %v1266_v10 }
 0x63c   : > { %v6061_v35 = vpop.eup %6060  ;;  %v7673_v0 = vpop.xlane.xlu0 %3093  ;;  %v2764_v27 = vsel %vm1057_vm0, %v7671_v51, 0.0 }
 0x63d   : > { %v7679_v58 = vpop.eup %6062  ;;  %2395 = vadd.xlane.f32.xlu1 %v2394_v32  ;;  %v1263_v57 = vpop.xlane.xlu1 %1262  ;;  %v1278_v28 = vmul.f32 %v6061_v35, %v7386_v40 }
 0x63e   : > { %2765 = vadd.xlane.f32.xlu0 %v2764_v27  ;;  %6070 = vrcp.f32 %v1263_v57  ;;  %v2391_v45 = vsel %vm1057_vm0, %v7679_v58, 0.0  ;;  %v7687_v56 = vpop.eup %6064 }
 0x63f   : > { %6072 = vpow2.f32 %v2739_v8  ;;  %5151 = vmatprep.mubr.msk.f32.mxu1 %vm1057_vm0, %v1278_v28  ;;  %v2752_v25 = vsel %vm1057_vm0, %v7687_v56, 0.0  ;;  %v2732_v28 = vsub.f32 %v7388_v42, %v7632_v38 }
 0x640   : > { %v3091_v47 = vpop.xlane.xlu0 %3090  ;;  %5152 = vmatmul.mubr.msk.f32.gmra.mrb[18].mxu1 %vm1057_vm0, %v1280_v29 }
 0x641   : > { %2392 = vadd.xlane.f32.xlu1 %v2391_v45  ;;  %v2709_v31 = vpop.xlane.xlu1 %2708 }
 0x642   : > { %v2727_v5 = vsub.f32 %v7426_v43, %v2709_v31 }
 0x644   : > { %v2737_v40 = vmul.f32 1.442695, %v2727_v5  ;;  %v3100_v19 = vpop.xlane.xlu0 %3099  ;;  %v7692_v16 = vpop.eup %6066 }
 0x645   : > { %2753 = vadd.xlane.f32.xlu1 %v2752_v25  ;;  %v1272_v22 = vpop.xlane.xlu1 %1271  ;;  %v6069_v10 = vpop.eup %6068  ;;  %v2749_v35 = vsel %vm1057_vm0, %v7692_v16, 0.0 }
 0x646   : > { %6074 = vpow2.f32 %v2737_v40  ;;  %v1284_v57 = vmul.f32 %v6069_v10, %v7408_v17 }
 0x647   : > { %6076 = vrcp.f32 %v1272_v22 }
 0x648   : > { %v6071_v36 = vpop.eup %6070  ;;  %v3097_v8 = vpop.xlane.xlu0 %3096 }
 0x649   : > { %v7696_v27 = vpop.eup %6072  ;;  %2750 = vadd.xlane.f32.xlu1 %v2749_v35  ;;  %v1269_v43 = vpop.xlane.xlu1 %1268  ;;  %v1282_v32 = vmul.f32 %v6071_v36, %v7418_v37  ;;  %v2747_v37 = vmul.f32 1.442695, %v2732_v28  ;;  %v3102_v36 = vsub.f32 %v7399_v62, %v7645_v21  ;;  %v8317_v21 = vld [vmem:[#allocation28_spill] sm:$0xff] }
 0x64a   : > { %6078 = vrcp.f32 %v1269_v43  ;;  %v2758_v45 = vsel %vm1057_vm0, %v7696_v27, 0.0 }
 0x64b   : > { %5154 = vmatprep.mubr.msk.f32.mxu1 %vm1057_vm0, %v1282_v32 }
 0x64c   : > { %v3458_v29 = vpop.xlane.xlu0 %3457  ;;  %5155 = vmatmul.mubr.msk.f32.gmra.mrb[20].mxu1 %vm1057_vm0, %v1284_v57 }
 0x64d   : > { %2759 = vadd.xlane.f32.xlu1 %v2758_v45  ;;  %v2715_v31 = vpop.xlane.xlu1 %2714 }
 0x64e   : > { %v2729_v5 = vsub.f32 %v7451_v3, %v2715_v31  ;;  %v3105_v3 = vsub.f32 %v7422_v49, %v3091_v47 }
 0x650   : > { %v7707_v40 = vpop.eup %6074  ;;  %v2741_v25 = vmul.f32 1.442695, %v2729_v5  ;;  %v7709_v17 = vpop.xlane.xlu0 %3454  ;;  %v8316_v5 = vld [vmem:[#allocation26_spill] sm:$0xff]  ;;  %v3117_v62 = vmul.f32 1.442695, %v3105_v3  ;;  %v8320_v3 = vld [vmem:[#allocation27_spill] sm:$0xff] }
 0x651   : > { %v2721_v22 = vpop.xlane.xlu1 %2720  ;;  %v2755_v42 = vsel %vm1057_vm0, %v7707_v40, 0.0  ;;  %v6077_v10 = vpop.eup %6076 }
 0x652   : > { %6080 = vpow2.f32 %v2741_v25  ;;  %v2731_v38 = vsub.f32 %v7460_v18, %v2721_v22  ;;  %2756 = vadd.xlane.f32.xlu1 %v2755_v42  ;;  %v1288_v31 = vmul.f32 %v6077_v10, %v7436_v9  ;;  %v3111_v18 = vmul.f32 1.442695, %v3102_v36  ;;  %v8318_v9 = vld [vmem:[#allocation29_spill] sm:$0xff] }
 0x653   : > { %6082 = vpow2.f32 %v2747_v37  ;;  %v3104_v25 = vsub.f32 %v8316_v5, %v7663_v1  ;;  %v3108_v37 = vsub.f32 %v8317_v21, %v3100_v19  ;;  %v3107_v22 = vsub.f32 %v8318_v9, %v3097_v8  ;;  %v8321_v8 = vld [vmem:[#allocation30_spill] sm:$0xff] }
 0x654   : > { %v6079_v35 = vpop.eup %6078  ;;  %v2745_v43 = vmul.f32 1.442695, %v2731_v38  ;;  %v7717_v32 = vpop.xlane.xlu0 %3463  ;;  %v8319_v38 = vld [vmem:[#allocation34_spill] sm:$0xff] }
 0x655   : > { %v3079_v57 = vpop.xlane.xlu1 %3078  ;;  %v1286_v28 = vmul.f32 %v6079_v35, %v7444_v50  ;;  %v3123_v1 = vmul.f32 1.442695, %v3108_v37 }
 0x656   : > { %v3101_v45 = vsub.f32 %v7469_v11, %v3079_v57  ;;  %6084 = vpow2.f32 %v2745_v43  ;;  %v3115_v11 = vmul.f32 1.442695, %v3104_v25  ;;  %v3106_v43 = vsub.f32 %v8320_v3, %v7673_v0 }
 0x657   : > { %5157 = vmatprep.mubr.msk.f32.mxu1 %vm1057_vm0, %v1286_v28  ;;  %v3121_v57 = vmul.f32 1.442695, %v3107_v22  ;;  %v3478_v28 = vsub.f32 %v8321_v8, %v3458_v29 }
 0x658   : > { %v3109_v49 = vmul.f32 1.442695, %v3101_v45  ;;  %v7726_v47 = vpop.xlane.xlu0 %3460  ;;  %5158 = vmatmul.mubr.msk.f32.gmra.mrb[22].mxu1 %vm1057_vm0, %v1288_v31  ;;  %v3119_v25 = vmul.f32 1.442695, %v3106_v43 }
 0x659   : > { %v3085_v50 = vpop.xlane.xlu1 %3084  ;;  %v3487_v0 = vmul.f32 1.442695, %v3478_v28 }
 0x65a   : > { %6086 = vpow2.f32 %v3109_v49  ;;  %v3103_v10 = vsub.f32 %v8319_v38, %v3085_v50 }
 0x65b   : > { %6088 = vpow2.f32 %v3111_v18 }
 0x65c   : > { %v7730_v42 = vpop.eup %6080  ;;  %6090 = vpow2.f32 %v3117_v62  ;;  %v3470_v36 = vpop.xlane.xlu0 %3469  ;;  %v3113_v45 = vmul.f32 1.442695, %v3103_v10  ;;  %v8322_v62 = vld [vmem:[#allocation31_spill] sm:$0xff] }
 0x65d   : > { %v2761_v19 = vsel %vm1057_vm0, %v7730_v42, 0.0  ;;  %v7735_v35 = vpop.eup %6082  ;;  %6092 = vpow2.f32 %v3115_v11  ;;  %v3477_v21 = vsub.f32 %v8322_v62, %v7709_v17  ;;  %v3482_v49 = vsub.f32 %v7482_v33, %v3470_v36  ;;  %v8324_v10 = vld [vmem:[#allocation35_spill] sm:$0xff] }
 0x65e   : > { %2762 = vadd.xlane.f32.xlu0 %v2761_v19  ;;  %6094 = vpow2.f32 %v3123_v1  ;;  %v2770_v18 = vsel %vm1057_vm0, %v7735_v35, 0.0  ;;  %v8323_v1 = vld [vmem:[#allocation32_spill] sm:$0xff] }
 0x65f   : > { %6096 = vpow2.f32 %v3121_v57  ;;  %v3485_v17 = vmul.f32 1.442695, %v3477_v21  ;;  %v3480_v38 = vsub.f32 %v8323_v1, %v7717_v32  ;;  %v3495_v33 = vmul.f32 1.442695, %v3482_v49  ;;  %v8325_v32 = vld [vmem:[#allocation33_spill] sm:$0xff] }
 0x660   : > { %v3467_v31 = vpop.xlane.xlu0 %3466  ;;  %v7742_v5 = vpop.eup %6084  ;;  %6098 = vpow2.f32 %v3113_v45  ;;  %v3479_v45 = vsub.f32 %v8325_v32, %v7726_v47 }
 0x661   : > { %v2767_v11 = vsel %vm1057_vm0, %v7742_v5, 0.0  ;;  %6100 = vpow2.f32 %v3119_v25  ;;  %v3481_v36 = vsub.f32 %v8324_v10, %v3467_v31  ;;  %v3491_v28 = vmul.f32 1.442695, %v3480_v38 }
 0x662   : > { %2771 = vadd.xlane.f32.xlu0 %v2770_v18  ;;  %6102 = vpow2.f32 %v3487_v0 }
 0x663   : > { %6104 = vpow2.f32 %v3485_v17  ;;  %v3493_v31 = vmul.f32 1.442695, %v3481_v36 }
 0x664   : > { %v7746_v37 = vpop.eup %6086  ;;  %v3476_v29 = vpop.xlane.xlu0 %3475  ;;  %6106 = vpow2.f32 %v3495_v33 }
 0x665   : > { %v7749_v50 = vpop.eup %6088  ;;  %v3125_v9 = vsel %vm1057_vm0, %v7746_v37, 0.0  ;;  %v3484_v18 = vsub.f32 %v7492_v59, %v3476_v29  ;;  %6108 = vpow2.f32 %v3491_v28 }
 0x666   : > { %v7755_v22 = vpop.eup %6090  ;;  %2768 = vadd.xlane.f32.xlu0 %v2767_v11  ;;  %3126 = vadd.xlane.f32.xlu1 %v3125_v9  ;;  %v3128_v43 = vsel %vm1057_vm0, %v7749_v50, 0.0  ;;  %v3489_v11 = vmul.f32 1.442695, %v3479_v45  ;;  %6110 = vpow2.f32 %v3493_v31  ;;  %v8326_v45 = vld [vmem:[#allocation36_spill] sm:$0xff] }
 0x667   : > { %v7760_v3 = vpop.eup %6092  ;;  %v3137_v57 = vsel %vm1057_vm0, %v7755_v22, 0.0  ;;  %v3499_v9 = vmul.f32 1.442695, %v3484_v18 }
 0x668   : > { %v3473_v19 = vpop.xlane.xlu0 %3472  ;;  %v7766_v8 = vpop.eup %6094  ;;  %v3134_v21 = vsel %vm1057_vm0, %v7760_v3, 0.0  ;;  %6112 = vpow2.f32 %v3489_v11 }
 0x669   : > { %v7771_v62 = vpop.eup %6096  ;;  %v3146_v0 = vsel %vm1057_vm0, %v7766_v8, 0.0  ;;  %v3483_v47 = vsub.f32 %v7496_v48, %v3473_v19  ;;  %6114 = vpow2.f32 %v3499_v9 }
 0x66a   : > { %3129 = vadd.xlane.f32.xlu0 %v3128_v43  ;;  %3138 = vadd.xlane.f32.xlu1 %v3137_v57  ;;  %v7777_v49 = vpop.eup %6098  ;;  %v3143_v1 = vsel %vm1057_vm0, %v7771_v62, 0.0 }
 0x66b   : > { %v7780_v29 = vpop.eup %6100  ;;  %v3131_v38 = vsel %vm1057_vm0, %v7777_v49, 0.0  ;;  %v3497_v10 = vmul.f32 1.442695, %v3483_v47  ;;  %v8327_v47 = vld [vmem:[#allocation37_spill] sm:$0xff] }
 0x66c   : > { %v3834_v25 = vpop.xlane.xlu0 %3833  ;;  %v7787_v33 = vpop.eup %6102  ;;  %v3140_v57 = vsel %vm1057_vm0, %v7780_v29, 0.0 }
 0x66d   : > { %v3854_v48 = vsub.f32 %v7500_v13, %v3834_v25  ;;  %v7790_v43 = vpop.eup %6104  ;;  %6116 = vpow2.f32 %v3497_v10 }
 0x66e   : > { %3135 = vadd.xlane.f32.xlu0 %v3134_v21  ;;  %3147 = vadd.xlane.f32.xlu1 %v3146_v0  ;;  %v7796_v28 = vpop.eup %6106  ;;  %v3501_v25 = vsel %vm1057_vm0, %v7790_v43, 0.0 }
 0x66f   : > { %v3863_v32 = vmul.f32 1.442695, %v3854_v48  ;;  %v7799_v18 = vpop.eup %6108  ;;  %v3516_v21 = vsel %vm1057_vm0, %v7796_v28, 0.0 }
 0x670   : > { %v3831_v59 = vpop.xlane.xlu0 %3830  ;;  %v7805_v0 = vpop.eup %6110 }
 0x671   : > { %v3853_v17 = vsub.f32 %v7504_v30, %v3831_v59  ;;  %v3504_v30 = vsel %vm1057_vm0, %v7787_v33, 0.0 }
 0x672   : > { %3144 = vadd.xlane.f32.xlu1 %v3143_v1  ;;  %3132 = vadd.xlane.f32.xlu0 %v3131_v38  ;;  %v3510_v1 = vsel %vm1057_vm0, %v7799_v18, 0.0  ;;  %v3513_v38 = vsel %vm1057_vm0, %v7805_v0, 0.0 }
 0x673   : > { %v3861_v36 = vmul.f32 1.442695, %v3853_v17  ;;  %v7810_v17 = vpop.eup %6112 }
 0x674   : > { %v3840_v19 = vpop.xlane.xlu0 %3839  ;;  %v7816_v10 = vpop.eup %6114 }
 0x675   : > { %6118 = vpow2.f32 %v3861_v36  ;;  %v3856_v31 = vsub.f32 %v8326_v45, %v3840_v19  ;;  %v3522_v45 = vsel %vm1057_vm0, %v7816_v10, 0.0 }
 0x676   : > { %3505 = vadd.xlane.f32.xlu1 %v3504_v30  ;;  %3141 = vadd.xlane.f32.xlu0 %v3140_v57  ;;  %6120 = vpow2.f32 %v3863_v32  ;;  %v8328_v30 = vld [vmem:[#allocation39_spill] sm:$0xff]  ;;  %v3507_v32 = vsel %vm1057_vm0, %v7810_v17, 0.0 }
 0x677   : > { %v3867_v11 = vmul.f32 1.442695, %v3856_v31  ;;  %v7818_v19 = vpop.eup %6116 }
 0x678   : > { %v3837_v13 = vpop.xlane.xlu0 %3836 }
 0x679   : > { %v3855_v9 = vsub.f32 %v8327_v47, %v3837_v13  ;;  %6122 = vpow2.f32 %v3867_v11  ;;  %v3519_v47 = vsel %vm1057_vm0, %v7818_v19, 0.0 }
 0x67a   : > { %3502 = vadd.xlane.f32.xlu1 %v3501_v25  ;;  %3517 = vadd.xlane.f32.xlu0 %v3516_v21 }
 0x67b   : > { %v3865_v48 = vmul.f32 1.442695, %v3855_v9 }
 0x67c   : > { %v7808_v59 = vpop.xlane.xlu0 %3845 }
 0x67d   : > { %6124 = vpow2.f32 %v3865_v48 }
 0x67e   : > { %3511 = vadd.xlane.f32.xlu1 %v3510_v1  ;;  %3514 = vadd.xlane.f32.xlu0 %v3513_v38 }
 0x67f   : > { %v7825_v31 = vpop.eup %6118 }
 0x680   : > { %v3843_v36 = vpop.xlane.xlu0 %3842  ;;  %v3877_v11 = vsel %vm1057_vm0, %v7825_v31, 0.0  ;;  %v7832_v9 = vpop.eup %6120 }
 0x681   : > { %v3857_v57 = vsub.f32 %v8328_v30, %v3843_v36  ;;  %8329 = vst [vmem:[#allocation26_spill] sm:$0xff] %v7832_v9  ;;  %v8330_v36 = vld [vmem:[#allocation40_spill] sm:$0xff]  ;;  %v3880_v48 = vsel %vm1057_vm0, %v7832_v9, 0.0 }
 0x682   : > { %3508 = vadd.xlane.f32.xlu1 %v3507_v32  ;;  %3523 = vadd.xlane.f32.xlu0 %v3522_v45 }
 0x683   : > { %v3869_v13 = vmul.f32 1.442695, %v3857_v57  ;;  %v7837_v57 = vpop.eup %6122 }
 0x684   : > { %v3852_v25 = vpop.xlane.xlu0 %3851  ;;  %8331 = vst [vmem:[#allocation28_spill] sm:$0xff] %v7837_v57  ;;  %v3886_v32 = vsel %vm1057_vm0, %v7837_v57, 0.0  ;;  %v8337_v57 = vld [vmem:[#allocation41_spill] sm:$0xff] }
 0x685   : > { %6126 = vpow2.f32 %v3869_v13  ;;  %v3860_v21 = vsub.f32 %v7524_v15, %v3852_v25 }
 0x686   : > { %3878 = vadd.xlane.f32.xlu1 %v3877_v11  ;;  %3520 = vadd.xlane.f32.xlu0 %v3519_v47 }
 0x687   : > { %v3875_v1 = vmul.f32 1.442695, %v3860_v21  ;;  %v7841_v45 = vpop.eup %6124 }
 0x688   : > { %v3849_v38 = vpop.xlane.xlu0 %3848  ;;  %8332 = vst [vmem:[#allocation29_spill] sm:$0xff] %v7841_v45  ;;  %v3883_v21 = vsel %vm1057_vm0, %v7841_v45, 0.0 }
 0x689   : > { %6128 = vpow2.f32 %v3875_v1  ;;  %v3859_v30 = vsub.f32 %v8330_v36, %v3849_v38 }
 0x68a   : > { %3881 = vadd.xlane.f32.xlu0 %v3880_v48 }
 0x68b   : > { %v3873_v15 = vmul.f32 1.442695, %v3859_v30 }
 0x68d   : > { %6130 = vpow2.f32 %v3873_v15 }
 0x68e   : > { %3887 = vadd.xlane.f32.xlu0 %v3886_v32 }
 0x68f   : > { %v7843_v13 = vpop.eup %6126 }
 0x690   : > { %8333 = vst [vmem:[#allocation34_spill] sm:$0xff] %v7843_v13  ;;  %v3889_v25 = vsel %vm1057_vm0, %v7843_v13, 0.0 }
 0x691   : > { %3890 = vadd.xlane.f32.xlu1 %v3889_v25 }
 0x692   : > { %3884 = vadd.xlane.f32.xlu0 %v3883_v21  ;;  %v1624_v11 = vpop.xlane.xlu1 %1623  ;;  %v8336_v21 = vld [vmem:[#allocation23_spill] sm:$0xff] }
 0x693   : > { %v7849_v47 = vpop.eup %6128  ;;  %6132 = vrcp.f32 %v1624_v11  ;;  %v5825_v13 = vunpack.i.h.bf16 %v8336_v21 }
 0x694   : > { %8334 = vst [vmem:[#allocation27_spill] sm:$0xff] %v7849_v47  ;;  %v3898_v1 = vsel %vm1057_vm0, %v7849_v47, 0.0  ;;  %v5824_v47 = vunpack.i.l.bf16 %v8336_v21 }
 0x695   : > { %3899 = vadd.xlane.f32.xlu1 %v3898_v1 }
 0x696   : > { %v1621_v38 = vpop.xlane.xlu1 %1620 }
 0x697   : > { %v7853_v36 = vpop.eup %6130  ;;  %6134 = vrcp.f32 %v1621_v38  ;;  %v7863_v38 = vpack.c.bf16 %v5825_v13, %v5824_v47  ;;  %v8339_v13 = vld [vmem:[#allocation42_spill] sm:$0xff] }
 0x698   : > { %8335 = vst [vmem:[#allocation30_spill] sm:$0xff] %v7853_v36  ;;  %v3895_v30 = vsel %vm1057_vm0, %v7853_v36, 0.0 }
 0x699   : > { %3896 = vadd.xlane.f32.xlu1 %v3895_v30 }
 0x69a   : > { %v1630_v48 = vpop.xlane.xlu1 %1629 }
 0x69b   : > { %6136 = vrcp.f32 %v1630_v48 }
 0x69d   : > { %v6133_v32 = vpop.eup %6132 }
 0x69e   : > { %v1627_v15 = vpop.xlane.xlu1 %1626  ;;  %v1646_v45 = vmul.f32 %v6133_v32, %v8337_v57 }
 0x69f   : > { %6138 = vrcp.f32 %v1627_v15  ;;  %v8338_v15 = vld [vmem:[#allocation22_spill] sm:$0xff] }
 0x6a1   : > { %v6135_v25 = vpop.eup %6134 }
 0x6a2   : > { %v1636_v1 = vpop.xlane.xlu1 %1635  ;;  %v1644_v11 = vmul.f32 %v6135_v25, %v7544_v4 }
 0x6a3   : > { %6140 = vrcp.f32 %v1636_v1 }
 0x6a4   : > { %5180 = vmatprep.mubr.msk.f32.mxu1 %vm1057_vm0, %v1644_v11  ;;  %v8340_v11 = vld [vmem:[#allocation38_spill] sm:$0xff] }
 0x6a5   : > { %5181 = vmatmul.mubr.msk.f32.vlgmr.msra.gmra.mrb[24].mxu1 %vm1057_vm0, %v1646_v45  ;;  %v6137_v48 = vpop.eup %6136 }
 0x6a6   : > { %5585 = vmatpush3.bf16.msra.mxu1 %v7650_v12  ;;  %v1633_v30 = vpop.xlane.xlu1 %1632  ;;  %v1650_v47 = vmul.f32 %v6137_v48, %v8339_v13 }
 0x6a7   : > { %5593 = vmatprep.subr.bf16.mxu1 %v7863_v38  ;;  %6142 = vrcp.f32 %v1633_v30  ;;  %v3858_v30 = vsub.f32 %v8340_v11, %v7808_v59 }
 0x6a8   : > { %5837 = vrot.lane.b32.xlu0 %v8338_v15, %s6520_s27 }
 0x6a9   : > { %v6139_v4 = vpop.eup %6138  ;;  %v3871_v48 = vmul.f32 1.442695, %v3858_v30 }
 0x6aa   : > { %v2014_v25 = vpop.xlane.xlu0 %2013  ;;  %5842 = vrot.lane.b32.xlu1 %v8338_v15, %s6521_s17  ;;  %v1642_v57 = vpop.xlane.xlu1 %1641  ;;  %v1648_v45 = vmul.f32 %v6139_v4, %v7554_v2 }
 0x6ab   : > { %6144 = vrcp.f32 %v1642_v57 }
 0x6ac   : > { %5183 = vmatprep.mubr.msk.f32.mxu1 %vm1057_vm0, %v1648_v45 }
 0x6ad   : > { %5184 = vmatmul.mubr.msk.f32.gmra.mrb[26].mxu1 %vm1057_vm0, %v1650_v47  ;;  %v6141_v21 = vpop.eup %6140 }
 0x6ae   : > { %v2011_v12 = vpop.xlane.xlu0 %2010  ;;  %v1639_v32 = vpop.xlane.xlu1 %1638  ;;  %v1654_v2 = vmul.f32 %v6141_v21, %v7561_v14 }
 0x6af   : > { %6146 = vrcp.f32 %v1639_v32 }
 0x6b1   : > { %v6143_v1 = vpop.eup %6142 }
 0x6b2   : > { %v2020_v36 = vpop.xlane.xlu0 %2019  ;;  %v2002_v15 = vpop.xlane.xlu1 %2001  ;;  %v1652_v9 = vmul.f32 %v6143_v1, %v7568_v52  ;;  %v8341_v1 = vld [vmem:[#allocation24_spill] sm:$0xff] }
 0x6b3   : > { %6148 = vrcp.f32 %v2002_v15  ;;  %v5830_v11 = vunpack.i.h.bf16 %v8341_v1  ;;  %v5829_v30 = vunpack.i.l.bf16 %v8341_v1 }
 0x6b4   : > { %5186 = vmatprep.mubr.msk.f32.mxu1 %vm1057_vm0, %v1652_v9 }
 0x6b5   : > { %5187 = vmatmul.mubr.msk.f32.gmra.mrb[28].mxu1 %vm1057_vm0, %v1654_v2  ;;  %v6145_v45 = vpop.eup %6144 }
 0x6b6   : > { %v1999_v4 = vpop.xlane.xlu1 %1998  ;;  %v2017_v57 = vpop.xlane.xlu0 %2016  ;;  %v1658_v32 = vmul.f32 %v6145_v45, %v7574_v61 }
 0x6b7   : > { %6150 = vrcp.f32 %v1999_v4 }
 0x6b8   : > { %6152 = vpow2.f32 %v3871_v48  ;;  %v5602_v48 = vpack.c.bf16 %v5830_v11, %v5829_v30 }
 0x6b9   : > { %v6147_v13 = vpop.eup %6146  ;;  %6154 = vrcp.f32 %v2011_v12 }
 0x6ba   : > { %v2008_v47 = vpop.xlane.xlu1 %2007  ;;  %v1656_v59 = vmul.f32 %v6147_v13, %v7580_v7  ;;  %v2378_v52 = vpop.xlane.xlu0 %2377 }
 0x6bb   : > { %6156 = vrcp.f32 %v2008_v47 }
 0x6bc   : > { %5189 = vmatprep.mubr.msk.f32.mxu1 %vm1057_vm0, %v1656_v59 }
 0x6bd   : > { %5190 = vmatmul.mubr.msk.f32.gmra.mrb[30].mxu1 %vm1057_vm0, %v1658_v32  ;;  %v6149_v9 = vpop.eup %6148 }
 0x6be   : > { %v2005_v14 = vpop.xlane.xlu1 %2004  ;;  %v2384_v61 = vpop.xlane.xlu0 %2383  ;;  %v2024_v12 = vmul.f32 %v6149_v9, %v7589_v46 }
 0x6bf   : > { %6158 = vrcp.f32 %v2005_v14 }
 0x6c0   : > { %6160 = vrcp.f32 %v2014_v25 }
 0x6c1   : > { %v6151_v21 = vpop.eup %6150  ;;  %6162 = vrcp.f32 %v2017_v57 }
 0x6c2   : > { %v2375_v15 = vpop.xlane.xlu1 %2374  ;;  %v7887_v2 = vpop.eup %6152  ;;  %v2022_v7 = vmul.f32 %v6151_v21, %v7599_v41  ;;  %6164 = vrcp.f32 %v2020_v36 }
 0x6c3   : > { %v3892_v45 = vsel %vm1057_vm0, %v7887_v2, 0.0  ;;  %v6155_v25 = vpop.eup %6154  ;;  %6166 = vrcp.f32 %v2375_v15  ;;  %v2381_v13 = vpop.xlane.xlu0 %2380 }
 0x6c4   : > { %5212 = vmatprep.mubr.msk.f32.mxu1 %vm1057_vm0, %v2022_v7  ;;  %6168 = vrcp.f32 %v2378_v52  ;;  %v2030_v36 = vmul.f32 %v6155_v25, %v7586_v63 }
 0x6c5   : > { %5213 = vmatmul.mubr.msk.f32.vlgmr.msra.gmra.mrb[32].mxu1 %vm1057_vm0, %v2024_v12  ;;  %v6157_v41 = vpop.eup %6156  ;;  %6170 = vrcp.f32 %v2381_v13 }
 0x6c6   : > { %v2387_v4 = vpop.xlane.xlu1 %2386  ;;  %5595 = vmatpush3.bf16.msra.mxu1 %v7863_v38  ;;  %v2028_v59 = vmul.f32 %v6157_v41, %v7609_v53  ;;  %6172 = vrcp.f32 %v2384_v61  ;;  %v8342_v61 = vld [vmem:[#allocation25_spill] sm:$0xff] }
 0x6c7   : > { %3893 = vadd.xlane.f32.xlu0 %v3892_v45  ;;  %5603 = vmatprep.subr.bf16.mxu1 %v5602_v48  ;;  %v2390_v9 = vpop.xlane.xlu0 %2389  ;;  %6174 = vrcp.f32 %v2387_v4  ;;  %v5835_v7 = vunpack.i.h.bf16 %v8342_v61 }
 0x6c8   : > { %6176 = vrcp.f32 %v2390_v9 }
 0x6c9   : > { %v6159_v46 = vpop.eup %6158 }
 0x6ca   : > { %v2396_v57 = vpop.xlane.xlu1 %2395  ;;  %v2026_v47 = vmul.f32 %v6159_v46, %v7620_v24  ;;  %v6161_v32 = vpop.eup %6160 }
 0x6cb   : > { %v6163_v38 = vpop.eup %6162  ;;  %v2032_v52 = vmul.f32 %v6161_v32, %v7577_v26  ;;  %v5834_v26 = vunpack.i.l.bf16 %v8342_v61 }
 0x6cc   : > { %5215 = vmatprep.mubr.msk.f32.mxu1 %vm1057_vm0, %v2026_v47  ;;  %v6165_v24 = vpop.eup %6164  ;;  %v2034_v21 = vmul.f32 %v6163_v38, %v7606_v60 }
 0x6cd   : > { %5216 = vmatmul.mubr.msk.f32.gmra.mrb[34].mxu1 %vm1057_vm0, %v2028_v59  ;;  %v6167_v53 = vpop.eup %6166  ;;  %v2036_v63 = vmul.f32 %v6165_v24, %v7596_v23 }
 0x6ce   : > { %v2393_v14 = vpop.xlane.xlu1 %2392  ;;  %5218 = vmatprep.mubr.msk.f32.mxu1 %vm1057_vm0, %v2030_v36  ;;  %v6169_v11 = vpop.eup %6168  ;;  %v2398_v30 = vmul.f32 %v6167_v53, %v7638_v44  ;;  %v5612_v44 = vpack.c.bf16 %v5835_v7, %v5834_v26 }
 0x6cf   : > { %6178 = vrcp.f32 %v2393_v14  ;;  %v6171_v15 = vpop.eup %6170  ;;  %v2400_v12 = vmul.f32 %v6169_v11, %v7617_v20  ;;  %v2766_v36 = vpop.xlane.xlu0 %2765 }
 0x6d0   : > { %6180 = vrcp.f32 %v2396_v57  ;;  %v6173_v4 = vpop.eup %6172  ;;  %v2402_v23 = vmul.f32 %v6171_v15, %v7641_v6 }
 0x6d1   : > { %5219 = vmatmul.mubr.msk.f32.gmra.mrb[36].mxu1 %vm1057_vm0, %v2032_v52  ;;  %v6175_v45 = vpop.eup %6174  ;;  %v2404_v41 = vmul.f32 %v6173_v4, %v7626_v34 }
 0x6d2   : > { %v2754_v1 = vpop.xlane.xlu1 %2753  ;;  %5221 = vmatprep.mubr.msk.f32.mxu1 %vm1057_vm0, %v2034_v21  ;;  %v6177_v13 = vpop.eup %6176  ;;  %v2406_v46 = vmul.f32 %v6175_v45, %v7652_v39 }
 0x6d3   : > { %v2408_v57 = vmul.f32 %v6177_v13, %v7657_v55 }
 0x6d5   : > { %5222 = vmatmul.mubr.msk.f32.gmra.mrb[38].mxu1 %vm1057_vm0, %v2036_v63 }
 0x6d6   : > { %v2751_v60 = vpop.xlane.xlu1 %2750  ;;  %5244 = vmatprep.mubr.msk.f32.mxu1 %vm1057_vm0, %v2398_v30 }
 0x6d7   : > { %6182 = vrcp.f32 %v2751_v60 }
 0x6d8   : > { %6184 = vrcp.f32 %v2754_v1 }
 0x6d9   : > { %5245 = vmatmul.mubr.msk.f32.vlgmr.msra.gmra.mrb[40].mxu1 %vm1057_vm0, %v2400_v12  ;;  %v6179_v20 = vpop.eup %6178 }
 0x6da   : > { %v2760_v25 = vpop.xlane.xlu1 %2759  ;;  %5605 = vmatpush3.bf16.msra.mxu1 %v5602_v48  ;;  %5247 = vmatprep.mubr.msk.f32.mxu1 %vm1057_vm0, %v2402_v23  ;;  %v6181_v47 = vpop.eup %6180  ;;  %v2410_v48 = vmul.f32 %v6179_v20, %v7679_v58 }
 0x6db   : > { %5613 = vmatprep.subr.bf16.mxu1 %v5612_v44  ;;  %6186 = vrcp.f32 %v2760_v25  ;;  %v2412_v34 = vmul.f32 %v6181_v47, %v7667_v54 }
 0x6dd   : > { %5248 = vmatmul.mubr.msk.f32.gmra.mrb[42].mxu1 %vm1057_vm0, %v2404_v41 }
 0x6de   : > { %5250 = vmatprep.mubr.msk.f32.mxu1 %vm1057_vm0, %v2406_v46 }
 0x6df   : > { %v2757_v6 = vpop.xlane.xlu1 %2756 }
 0x6e0   : > { %6188 = vrcp.f32 %v2757_v6 }
 0x6e1   : > { %v6183_v59 = vpop.eup %6182  ;;  %5251 = vmatmul.mubr.msk.f32.gmra.mrb[44].mxu1 %vm1057_vm0, %v2408_v57  ;;  %6190 = vrcp.f32 %v2766_v36 }
 0x6e2   : > { %5253 = vmatprep.mubr.msk.f32.mxu1 %vm1057_vm0, %v2410_v48  ;;  %v6185_v39 = vpop.eup %6184  ;;  %v2774_v32 = vmul.f32 %v6183_v59, %v7692_v16 }
 0x6e3   : > { %v2776_v55 = vmul.f32 %v6185_v39, %v7687_v56 }
 0x6e5   : > { %5254 = vmatmul.mubr.msk.f32.gmra.mrb[46].mxu1 %vm1057_vm0, %v2412_v34  ;;  %v6187_v38 = vpop.eup %6186 }
 0x6e6   : > { %5276 = vmatprep.mubr.msk.f32.mxu1 %vm1057_vm0, %v2774_v32  ;;  %v2780_v54 = vmul.f32 %v6187_v38, %v7696_v27 }
 0x6e9   : > { %5277 = vmatmul.mubr.msk.f32.vlgmr.msra.gmra.mrb[48].mxu1 %vm1057_vm0, %v2776_v55 }
 0x6ea   : > { %v6189_v14 = vpop.eup %6188  ;;  %5615 = vmatpush3.bf16.msra.mxu1 %v5612_v44 }
 0x6eb   : > { %v2763_v58 = vpop.xlane.xlu0 %2762  ;;  %v2778_v9 = vmul.f32 %v6189_v14, %v7707_v40  ;;  %v6191_v24 = vpop.eup %6190 }
 0x6ec   : > { %6192 = vrcp.f32 %v2763_v58  ;;  %v2784_v40 = vmul.f32 %v6191_v24, %v7671_v51 }
 0x6ed   : > { %5279 = vmatprep.mubr.msk.f32.mxu1 %vm1057_vm0, %v2778_v9 }
 0x6ee   : > { %5280 = vmatmul.mubr.msk.f32.gmra.mrb[50].mxu1 %vm1057_vm0, %v2780_v54 }
 0x6ef   : > { %v2772_v16 = vpop.xlane.xlu0 %2771 }
 0x6f0   : > { %6194 = vrcp.f32 %v2772_v16 }
 0x6f3   : > { %v2769_v52 = vpop.xlane.xlu0 %2768  ;;  %v3127_v56 = vpop.xlane.xlu1 %3126 }
 0x6f4   : > { %6196 = vrcp.f32 %v2769_v52 }
 0x6f5   : > { %6198 = vrcp.f32 %v3127_v56 }
 0x6f6   : > { %v6193_v21 = vpop.eup %6192 }
 0x6f7   : > { %v3130_v53 = vpop.xlane.xlu0 %3129  ;;  %v3139_v1 = vpop.xlane.xlu1 %3138  ;;  %v2782_v63 = vmul.f32 %v6193_v21, %v7730_v42 }
 0x6f8   : > { %6200 = vrcp.f32 %v3130_v53 }
 0x6f9   : > { %5282 = vmatprep.mubr.msk.f32.mxu1 %vm1057_vm0, %v2782_v63  ;;  %6202 = vrcp.f32 %v3139_v1 }
 0x6fa   : > { %5283 = vmatmul.mubr.msk.f32.gmra.mrb[52].mxu1 %vm1057_vm0, %v2784_v40  ;;  %v6195_v30 = vpop.eup %6194 }
 0x6fb   : > { %v3136_v27 = vpop.xlane.xlu0 %3135  ;;  %v3148_v11 = vpop.xlane.xlu1 %3147  ;;  %v2788_v42 = vmul.f32 %v6195_v30, %v7735_v35 }
 0x6fc   : > { %6204 = vrcp.f32 %v3136_v27 }
 0x6fe   : > { %v6197_v15 = vpop.eup %6196 }
 0x6ff   : > { %v6199_v61 = vpop.eup %6198  ;;  %v3133_v7 = vpop.xlane.xlu0 %3132  ;;  %v2786_v60 = vmul.f32 %v6197_v15, %v7742_v5 }
 0x700   : > { %v3145_v26 = vpop.xlane.xlu1 %3144  ;;  %6206 = vrcp.f32 %v3133_v7  ;;  %v3150_v51 = vmul.f32 %v6199_v61, %v7746_v37 }
 0x701   : > { %5285 = vmatprep.mubr.msk.f32.mxu1 %vm1057_vm0, %v2786_v60  ;;  %6208 = vrcp.f32 %v3145_v26 }
 0x702   : > { %v6201_v12 = vpop.eup %6200  ;;  %5286 = vmatmul.mubr.msk.f32.gmra.mrb[54].mxu1 %vm1057_vm0, %v2788_v42 }
 0x703   : > { %v3152_v4 = vmul.f32 %v6201_v12, %v7749_v50  ;;  %v3142_v23 = vpop.xlane.xlu0 %3141  ;;  %5308 = vmatprep.mubr.msk.f32.mxu1 %vm1057_vm0, %v3150_v51  ;;  %v6203_v44 = vpop.eup %6202 }
 0x704   : > { %v3506_v45 = vpop.xlane.xlu1 %3505  ;;  %6210 = vrcp.f32 %v3142_v23  ;;  %v3158_v57 = vmul.f32 %v6203_v44, %v7755_v22 }
 0x705   : > { %6212 = vrcp.f32 %v3148_v11 }
 0x706   : > { %5309 = vmatmul.mubr.msk.f32.vlgmr.msra.gmra.mrb[56].mxu1 %vm1057_vm0, %v3152_v4  ;;  %v6205_v41 = vpop.eup %6204 }
 0x707   : > { %v7946_v5 = vpop.f32.mrb[16].mxu1  ;;  %v3518_v35 = vpop.xlane.xlu0 %3517  ;;  %v3156_v20 = vmul.f32 %v6205_v41, %v7760_v3  ;;  %v8343_v41 = vld [vmem:[#allocation26_spill] sm:$0xff] }
 0x708   : > { %v3503_v25 = vpop.xlane.xlu1 %3502  ;;  %v7948_v37 = vpop.f32.mrb[17].mxu1 }
 0x709   : > { %6214 = vrcp.f32 %v3503_v25 }
 0x70a   : > { %v6207_v13 = vpop.eup %6206  ;;  %6216 = vrcp.f32 %v3506_v45 }
 0x70b   : > { %v3515_v50 = vpop.xlane.xlu0 %3514  ;;  %v3154_v46 = vmul.f32 %v6207_v13, %v7777_v49  ;;  %v6209_v6 = vpop.eup %6208 }
 0x70c   : > { %v3512_v48 = vpop.xlane.xlu1 %3511  ;;  %v3162_v32 = vmul.f32 %v6209_v6, %v7771_v62  ;;  %v8346_v6 = vld [vmem:[#allocation34_spill] sm:$0xff] }
 0x70d   : > { %5311 = vmatprep.mubr.msk.f32.mxu1 %vm1057_vm0, %v3154_v46 }
 0x70e   : > { %v6211_v47 = vpop.eup %6210  ;;  %5312 = vmatmul.mubr.msk.f32.gmra.mrb[58].mxu1 %vm1057_vm0, %v3156_v20  ;;  %v8345_v20 = vld [vmem:[#allocation28_spill] sm:$0xff] }
 0x70f   : > { %v3524_v59 = vpop.xlane.xlu0 %3523  ;;  %5314 = vmatprep.mubr.msk.f32.mxu1 %vm1057_vm0, %v3158_v57  ;;  %v3160_v34 = vmul.f32 %v6211_v47, %v7780_v29  ;;  %v6213_v39 = vpop.eup %6212 }
 0x710   : > { %v3509_v22 = vpop.xlane.xlu1 %3508  ;;  %v3164_v38 = vmul.f32 %v6213_v39, %v7766_v8  ;;  %v8347_v39 = vld [vmem:[#allocation30_spill] sm:$0xff] }
 0x711   : > { %6218 = vrcp.f32 %v3509_v22 }
 0x712   : > { %5315 = vmatmul.mubr.msk.f32.gmra.mrb[60].mxu1 %vm1057_vm0, %v3160_v34  ;;  %6220 = vrcp.f32 %v3512_v48 }
 0x713   : > { %v6215_v3 = vpop.eup %6214  ;;  %v7959_v49 = vpop.f32.mrb[18].mxu1  ;;  %5317 = vmatprep.mubr.msk.f32.mxu1 %vm1057_vm0, %v3162_v32  ;;  %6222 = vrcp.f32 %v3515_v50  ;;  %v8344_v50 = vld [vmem:[#allocation29_spill] sm:$0xff] }
 0x714   : > { %v3521_v36 = vpop.xlane.xlu0 %3520  ;;  %v7962_v55 = vpop.f32.mrb[19].mxu1  ;;  %v3526_v14 = vmul.f32 %v6215_v3, %v7790_v43  ;;  %6224 = vrcp.f32 %v3518_v35  ;;  %v8348_v3 = vld [vmem:[#allocation27_spill] sm:$0xff] }
 0x715   : > { %v3879_v62 = vpop.xlane.xlu1 %3878  ;;  %6226 = vrcp.f32 %v3521_v36  ;;  %v6217_v1 = vpop.eup %6216 }
 0x716   : > { %5318 = vmatmul.mubr.msk.f32.gmra.mrb[62].mxu1 %vm1057_vm0, %v3164_v38  ;;  %6228 = vrcp.f32 %v3524_v59  ;;  %v3528_v40 = vmul.f32 %v6217_v1, %v7787_v33 }
 0x717   : > { %5340 = vmatprep.mubr.msk.f32.mxu1 %vm1057_vm0, %v3526_v14  ;;  %6230 = vrcp.f32 %v3879_v62 }
 0x718   : > { %v3882_v29 = vpop.xlane.xlu0 %3881 }
 0x719   : > { %6232 = vrcp.f32 %v3882_v29 }
 0x71b   : > { %v6219_v63 = vpop.eup %6218 }
 0x71c   : > { %v3888_v58 = vpop.xlane.xlu0 %3887  ;;  %v6221_v11 = vpop.eup %6220  ;;  %v3530_v7 = vmul.f32 %v6219_v63, %v7810_v17 }
 0x71d   : > { %v6223_v26 = vpop.eup %6222  ;;  %v3532_v33 = vmul.f32 %v6221_v11, %v7799_v18 }
 0x71e   : > { %v3891_v9 = vpop.xlane.xlu1 %3890  ;;  %v6225_v51 = vpop.eup %6224  ;;  %v3534_v12 = vmul.f32 %v6223_v26, %v7805_v0 }
 0x71f   : > { %v7968_v54 = vpop.f32.mrb[20].mxu1  ;;  %v6227_v4 = vpop.eup %6226  ;;  %v3536_v17 = vmul.f32 %v6225_v51, %v7796_v28 }
 0x720   : > { %v3885_v16 = vpop.xlane.xlu0 %3884  ;;  %v7970_v52 = vpop.f32.mrb[21].mxu1  ;;  %v3538_v45 = vmul.f32 %v6227_v4, %v7818_v19 }
 0x721   : > { %6234 = vrcp.f32 %v3885_v16  ;;  %v6229_v23 = vpop.eup %6228 }
 0x722   : > { %v3900_v8 = vpop.xlane.xlu1 %3899  ;;  %6236 = vrcp.f32 %v3888_v58  ;;  %v6231_v35 = vpop.eup %6230  ;;  %v3540_v18 = vmul.f32 %v6229_v23, %v7816_v10 }
 0x723   : > { %6238 = vrcp.f32 %v3891_v9  ;;  %v6233_v0 = vpop.eup %6232  ;;  %v3902_v44 = vmul.f32 %v6231_v35, %v7825_v31 }
 0x724   : > { %v5838_v56 = vpop.permute.xlu0 %5837  ;;  %v3904_v28 = vmul.f32 %v6233_v0, %v8343_v41 }
 0x725   : > { %v5840_v43 = vunpack.i.h.bf16 %v5838_v56  ;;  %v5839_v24 = vunpack.i.l.bf16 %v5838_v56 }
 0x726   : > { %v3897_v53 = vpop.xlane.xlu1 %3896 }
 0x727   : > { %v5622_v21 = vpack.c.bf16 %v5840_v43, %v5839_v24  ;;  %6240 = vrcp.f32 %v3897_v53 }
 0x729   : > { %5623 = vmatprep.subr.bf16.mxu1 %v5622_v21 }
 0x72a   : > { %5625 = vmatpush3.bf16.msra.mxu1 %v5622_v21  ;;  %v5843_v27 = vpop.permute.xlu1 %5842 }
 0x72b   : > { %v5845_v30 = vunpack.i.h.bf16 %v5843_v27  ;;  %v5844_v15 = vunpack.i.l.bf16 %v5843_v27  ;;  %v7973_v61 = vpop.f32.mrb[22].mxu1  ;;  %v6235_v25 = vpop.eup %6234 }
 0x72c   : > { %v7976_v60 = vpop.f32.mrb[23].mxu1  ;;  %v6237_v13 = vpop.eup %6236  ;;  %v3906_v19 = vmul.f32 %v6235_v25, %v8344_v50 }
 0x72d   : > { %5341 = vmatmul.mubr.msk.f32.vlgmr.msra.gmra.mrb[64].mxu1 %vm1057_vm0, %v3528_v40  ;;  %v5632_v42 = vpack.c.bf16 %v5845_v30, %v5844_v15  ;;  %v6239_v46 = vpop.eup %6238  ;;  %v3908_v10 = vmul.f32 %v6237_v13, %v8345_v20 }
 0x72e   : > { %5343 = vmatprep.mubr.msk.f32.mxu1 %vm1057_vm0, %v3530_v7  ;;  %v3910_v57 = vmul.f32 %v6239_v46, %v8346_v6 }
 0x72f   : > { %5633 = vmatprep.subr.bf16.mxu1 %v5632_v42 }
 0x730   : > { %5635 = vmatpush3.bf16.msra.mxu1 %v5632_v42 }
 0x731   : > { %5344 = vmatmul.mubr.msk.f32.gmra.mrb[66].mxu1 %vm1057_vm0, %v3532_v33  ;;  %v6241_v47 = vpop.eup %6240 }
 0x732   : > { %5346 = vmatprep.mubr.msk.f32.mxu1 %vm1057_vm0, %v3534_v12  ;;  %v3914_v32 = vmul.f32 %v6241_v47, %v8347_v39  ;;  %v4339_v39 = vld [vmem:[#allocation11 + $0x8] sm:$0xff] }
 0x735   : > { %5347 = vmatmul.mubr.msk.f32.gmra.mrb[68].mxu1 %vm1057_vm0, %v3536_v17 }
 0x736   : > { %5349 = vmatprep.mubr.msk.f32.mxu1 %vm1057_vm0, %v3538_v45 }
 0x739   : > { %5350 = vmatmul.mubr.msk.f32.gmra.mrb[70].mxu1 %vm1057_vm0, %v3540_v18 }
 0x73a   : > { %5372 = vmatprep.mubr.msk.f32.mxu1 %vm1057_vm0, %v3902_v44 }
 0x73d   : > { %5373 = vmatmul.mubr.msk.f32.vlgmr.msra.gmra.mrb[72].mxu1 %vm1057_vm0, %v3904_v28 }
 0x73e   : > { %5375 = vmatprep.mubr.msk.f32.mxu1 %vm1057_vm0, %v3906_v19 }
 0x741   : > { %5376 = vmatmul.mubr.msk.f32.gmra.mrb[74].mxu1 %vm1057_vm0, %v3908_v10 }
 0x742   : > { %5378 = vmatprep.mubr.msk.f32.mxu1 %vm1057_vm0, %v3910_v57 }
 0x754   : > { %v3894_v31 = vpop.xlane.xlu0 %3893 }
 0x755   : > { %6242 = vrcp.f32 %v3894_v31 }
 0x756   : > { %6244 = vrcp.f32 %v3900_v8 }
 0x75f   : > { %v6243_v48 = vpop.eup %6242 }
 0x760   : > { %v3912_v59 = vmul.f32 %v6243_v48, %v7887_v2  ;;  %v6245_v34 = vpop.eup %6244 }
 0x761   : > { %v3916_v36 = vmul.f32 %v6245_v34, %v8348_v3  ;;  %v4338_v34 = vld [vmem:[#allocation11] sm:$0xff] }
 0x762   : > { %5379 = vmatmul.mubr.msk.f32.gmra.mrb[76].mxu1 %vm1057_vm0, %v3912_v59  ;;  %v5636_v3 = vpack.c.bf16 %v4339_v39, %v4338_v34 }
 0x763   : > { %5381 = vmatprep.mubr.msk.f32.mxu1 %vm1057_vm0, %v3914_v32  ;;  %v4340_v32 = vld [vmem:[#allocation11 + $0x10] sm:$0xff] }
 0x764   : > { %5637 = vmatprep.subr.bf16.mxu0 %v5636_v3 }
 0x765   : > { %5639 = vmatpush3.bf16.msra.mxu0 %v5636_v3 }
 0x766   : > { %5382 = vmatmul.mubr.msk.f32.gmra.mrb[78].mxu1 %vm1057_vm0, %v3916_v36  ;;  %v4341_v36 = vld [vmem:[#allocation11 + $0x18] sm:$0xff] }
 0x778   : > { %v5182_v22 = vpop.f32.mrb[24].mxu1 }
 0x779   : > { %v1757_v38 = vpop.f32.mrb[25].mxu1 }
 0x77a   : > { %v5846_v14 = vpack.i.bf16 %v5182_v22, %v1757_v38  ;;  %v5640_v22 = vpack.c.bf16 %v4341_v36, %v4340_v32  ;;  %v4342_v38 = vld [vmem:[#allocation11 + $0x20] sm:$0xff] }
 0x77c   : > { %5847 = vrot.lane.b32.xlu1 %v5846_v14, %s6521_s17  ;;  %v4343_v14 = vld [vmem:[#allocation11 + $0x28] sm:$0xff]  ;;  %5641 = vmatprep.subr.bf16.mxu0 %v5640_v22 }
 0x77d   : > { %5643 = vmatpush3.bf16.msra.mxu0 %v5640_v22 }
 0x780   : > { %v5185_v29 = vpop.f32.mrb[26].mxu1 }
 0x781   : > { %v1767_v62 = vpop.f32.mrb[27].mxu1 }
 0x782   : > { %v5851_v58 = vpack.i.bf16 %v5185_v29, %v1767_v62  ;;  %v5644_v62 = vpack.c.bf16 %v4343_v14, %v4342_v38 }
 0x784   : > { %5852 = vrot.lane.b32.xlu1 %v5851_v58, %s6521_s17  ;;  %5645 = vmatprep.subr.bf16.mxu0 %v5644_v62 }
 0x785   : > { %5647 = vmatpush3.bf16.msra.mxu0 %v5644_v62 }
 0x788   : > { %v5188_v2 = vpop.f32.mrb[28].mxu1 }
 0x789   : > { %v1777_v9 = vpop.f32.mrb[29].mxu1 }
 0x78a   : > { %v5856_v16 = vpack.i.bf16 %v5188_v2, %v1777_v9 }
 0x78c   : > { %5857 = vrot.lane.b32.xlu1 %v5856_v16, %s6521_s17 }
 0x790   : > { %v5191_v8 = vpop.f32.mrb[30].mxu1 }
 0x791   : > { %v1787_v56 = vpop.f32.mrb[31].mxu1 }
 0x792   : > { %v5861_v43 = vpack.i.bf16 %v5191_v8, %v1787_v56 }
 0x794   : > { %5862 = vrot.lane.b32.xlu0 %v5861_v43, %s6521_s17 }
 0x798   : > { %v5214_v24 = vpop.f32.mrb[32].mxu1 }
 0x799   : > { %v2133_v21 = vpop.f32.mrb[33].mxu1 }
 0x79a   : > { %v5866_v53 = vpack.i.bf16 %v5214_v24, %v2133_v21 }
 0x79c   : > { %5867 = vrot.lane.b32.xlu0 %v5866_v53, %s6520_s27  ;;  %v4344_v53 = vld [vmem:[#allocation11 + $0x30] sm:$0xff] }
 0x7a0   : > { %v5217_v1 = vpop.f32.mrb[34].mxu1 }
 0x7a1   : > { %v2143_v63 = vpop.f32.mrb[35].mxu1 }
 0x7a2   : > { %v5871_v40 = vpack.i.bf16 %v5217_v1, %v2143_v63  ;;  %v4345_v1 = vld [vmem:[#allocation11 + $0x38] sm:$0xff] }
 0x7a3   : > { %v5648_v63 = vpack.c.bf16 %v4345_v1, %v4344_v53 }
 0x7a4   : > { %5872 = vrot.lane.b32.xlu1 %v5871_v40, %s6520_s27  ;;  %v5220_v27 = vpop.f32.mrb[36].mxu1 }
 0x7a5   : > { %v2153_v11 = vpop.f32.mrb[37].mxu1  ;;  %5649 = vmatprep.subr.bf16.mxu0 %v5648_v63 }
 0x7a6   : > { %v5876_v30 = vpack.i.bf16 %v5220_v27, %v2153_v11  ;;  %5651 = vmatpush3.bf16.msra.mxu0 %v5648_v63  ;;  %v4346_v27 = vld [vmem:[#allocation11 + $0x40] sm:$0xff]  ;;  %v4347_v11 = vld [vmem:[#allocation11 + $0x48] sm:$0xff] }
 0x7a8   : > { %5877 = vrot.lane.b32.xlu1 %v5876_v30, %s6520_s27  ;;  %v5223_v15 = vpop.f32.mrb[38].mxu1  ;;  %v5652_v30 = vpack.c.bf16 %v4347_v11, %v4346_v27 }
 0x7a9   : > { %v2163_v7 = vpop.f32.mrb[39].mxu1 }
 0x7aa   : > { %v5881_v26 = vpack.i.bf16 %v5223_v15, %v2163_v7  ;;  %5653 = vmatprep.subr.bf16.mxu0 %v5652_v30  ;;  %v4348_v7 = vld [vmem:[#allocation11 + $0x50] sm:$0xff] }
 0x7ab   : > { %5655 = vmatpush3.bf16.msra.mxu0 %v5652_v30 }
 0x7ac   : > { %5882 = vrot.lane.b32.xlu0 %v5881_v26, %s6520_s27  ;;  %v5246_v42 = vpop.f32.mrb[40].mxu1  ;;  %v4349_v26 = vld [vmem:[#allocation11 + $0x58] sm:$0xff] }
 0x7ad   : > { %v2509_v33 = vpop.f32.mrb[41].mxu1 }
 0x7ae   : > { %v5886_v51 = vpack.i.bf16 %v5246_v42, %v2509_v33  ;;  %v4350_v42 = vld [vmem:[#allocation11 + $0x60] sm:$0xff] }
 0x7b0   : > { %5887 = vrot.lane.b32.xlu1 %v5886_v51, %s6519_s20  ;;  %v5249_v12 = vpop.f32.mrb[42].mxu1 }
 0x7b1   : > { %v2519_v4 = vpop.f32.mrb[43].mxu1 }
 0x7b2   : > { %v5891_v17 = vpack.i.bf16 %v5249_v12, %v2519_v4  ;;  %v5656_v4 = vpack.c.bf16 %v4349_v26, %v4348_v7 }
 0x7b4   : > { %5892 = vrot.lane.b32.xlu0 %v5891_v17, %s6519_s20  ;;  %v5252_v23 = vpop.f32.mrb[44].mxu1  ;;  %v4351_v17 = vld [vmem:[#allocation11 + $0x68] sm:$0xff]  ;;  %5657 = vmatprep.subr.bf16.mxu0 %v5656_v4 }
 0x7b5   : > { %v2529_v45 = vpop.f32.mrb[45].mxu1  ;;  %5659 = vmatpush3.bf16.msra.mxu0 %v5656_v4 }
 0x7b6   : > { %v5896_v35 = vpack.i.bf16 %v5252_v23, %v2529_v45  ;;  %v5660_v45 = vpack.c.bf16 %v4351_v17, %v4350_v42 }
 0x7b8   : > { %5897 = vrot.lane.b32.xlu1 %v5896_v35, %s6519_s20  ;;  %v5255_v18 = vpop.f32.mrb[46].mxu1  ;;  %5661 = vmatprep.subr.bf16.mxu0 %v5660_v45 }
 0x7b9   : > { %v2539_v0 = vpop.f32.mrb[47].mxu1  ;;  %5663 = vmatpush3.bf16.msra.mxu0 %v5660_v45 }
 0x7ba   : > { %v5901_v44 = vpack.i.bf16 %v5255_v18, %v2539_v0 }
 0x7bc   : > { %5902 = vrot.lane.b32.xlu0 %v5901_v44, %s6519_s20  ;;  %v5278_v25 = vpop.f32.mrb[48].mxu1 }
 0x7bd   : > { %v2885_v41 = vpop.f32.mrb[49].mxu1 }
 0x7be   : > { %v5906_v28 = vpack.i.bf16 %v5278_v25, %v2885_v41 }
 0x7c0   : > { %5907 = vrot.lane.b32.xlu1 %v5906_v28, %s6518_s29  ;;  %v4352_v28 = vld [vmem:[#allocation11 + $0x70] sm:$0xff] }
 0x7c1   : > { %v5281_v13 = vpop.f32.mrb[50].mxu1 }
 0x7c2   : > { %v2895_v50 = vpop.f32.mrb[51].mxu1 }
 0x7c3   : > { %v5911_v19 = vpack.i.bf16 %v5281_v13, %v2895_v50  ;;  %v4353_v13 = vld [vmem:[#allocation11 + $0x78] sm:$0xff] }
 0x7c5   : > { %5912 = vrot.lane.b32.xlu0 %v5911_v19, %s6518_s29 }
 0x7cd   : > { %v5284_v46 = vpop.f32.mrb[52].mxu1 }
 0x7ce   : > { %v2905_v20 = vpop.f32.mrb[53].mxu1 }
 0x7cf   : > { %v5916_v10 = vpack.i.bf16 %v5284_v46, %v2905_v20 }
 0x7d1   : > { %5917 = vrot.lane.b32.xlu1 %v5916_v10, %s6518_s29 }
 0x7d5   : > { %v8021_v6 = vpop.f32.mrb[54].mxu1 }
 0x7d6   : > { %v8023_v57 = vpop.f32.mrb[55].mxu1 }
 0x7d7   : > { %v5961_v31 = vpack.i.bf16 %v8021_v6, %v8023_v57 }
 0x7d9   : > { %v5310_v47 = vpop.f32.mrb[56].mxu1 }
 0x7da   : > { %v3261_v48 = vpop.f32.mrb[57].mxu1 }
 0x7db   : > { %v5921_v59 = vpack.i.bf16 %v5310_v47, %v3261_v48 }
 0x7dd   : > { %5922 = vrot.lane.b32.xlu1 %v5921_v59, %s6517_s2 }
 0x7e1   : > { %v5313_v29 = vpop.f32.mrb[58].mxu1 }
 0x7e2   : > { %v3271_v58 = vpop.f32.mrb[59].mxu1 }
 0x7e3   : > { %v5926_v2 = vpack.i.bf16 %v5313_v29, %v3271_v58 }
 0x7e5   : > { %5927 = vrot.lane.b32.xlu0 %v5926_v2, %s6517_s2  ;;  %v5316_v9 = vpop.f32.mrb[60].mxu1 }
 0x7e6   : > { %v3281_v16 = vpop.f32.mrb[61].mxu1 }
 0x7e7   : > { %v5931_v8 = vpack.i.bf16 %v5316_v9, %v3281_v16 }
 0x7e9   : > { %5932 = vrot.lane.b32.xlu1 %v5931_v8, %s6517_s2  ;;  %v8030_v56 = vpop.f32.mrb[62].mxu1 }
 0x7ea   : > { %v3291_v43 = vpop.f32.mrb[63].mxu1 }
 0x7eb   : > { %v5966_v24 = vpack.i.bf16 %v8030_v56, %v3291_v43 }
 0x7ee   : > { %v8033_v21 = vpop.permute.xlu1 %5847 }
 0x7ef   : > { %v5850_v7 = vunpack.i.h.bf16 %v8033_v21  ;;  %v5849_v26 = vunpack.i.l.bf16 %v8033_v21 }
 0x7f1   : > { %v4276_v21 = vsel %vm1057_vm0, %v7948_v37, %v5849_v26 }
 0x7f6   : > { %v8035_v40 = vpop.permute.xlu1 %5852 }
 0x7f7   : > { %v5855_v42 = vunpack.i.h.bf16 %v8035_v40 }
 0x7fe   : > { %v5858_v15 = vpop.permute.xlu1 %5857 }
 0x7ff   : > { %v5860_v33 = vunpack.i.h.bf16 %v5858_v15  ;;  %v5859_v51 = vunpack.i.l.bf16 %v5858_v15 }
 0x800   : > { %v5342_v12 = vpop.f32.mrb[64].mxu1 }
 0x801   : > { %v3637_v23 = vpop.f32.mrb[65].mxu1  ;;  %v4281_v35 = vsel %vm1057_vm0, %v7968_v54, %v5860_v33  ;;  %v4280_v18 = vsel %vm1057_vm0, %v7970_v52, %v5859_v51  ;;  %v5664_v54 = vpack.c.bf16 %v4353_v13, %v4352_v28  ;;  %v5854_v51 = vunpack.i.l.bf16 %v8035_v40 }
 0x802   : > { %v5936_v0 = vpack.i.bf16 %v5342_v12, %v3637_v23  ;;  %v4279_v40 = vsel %vm1057_vm0, %v7959_v49, %v5855_v42 }
 0x803   : > { %5665 = vmatprep.subr.bf16.mxu0 %v5664_v54  ;;  %v4278_v28 = vsel %vm1057_vm0, %v7962_v55, %v5854_v51 }
 0x804   : > { %5937 = vrot.lane.b32.xlu1 %v5936_v0, %s6516_s26  ;;  %v5345_v44 = vpop.f32.mrb[66].mxu1  ;;  %5667 = vmatpush3.bf16.msra.mxu0 %v5664_v54 }
 0x805   : > { %v3647_v25 = vpop.f32.mrb[67].mxu1 }
 0x806   : > { %v5941_v41 = vpack.i.bf16 %v5345_v44, %v3647_v25  ;;  %v5863_v50 = vpop.permute.xlu0 %5862 }
 0x807   : > { %v5865_v46 = vunpack.i.h.bf16 %v5863_v50  ;;  %v5864_v20 = vunpack.i.l.bf16 %v5863_v50 }
 0x808   : > { %5942 = vrot.lane.b32.xlu0 %v5941_v41, %s6516_s26  ;;  %v5348_v19 = vpop.f32.mrb[68].mxu1 }
 0x809   : > { %v3657_v52 = vpop.f32.mrb[69].mxu1  ;;  %v8045_v47 = vsel %vm1057_vm0, %v7973_v61, %v5865_v46  ;;  %v8049_v48 = vsel %vm1057_vm0, %v7976_v60, %v5864_v20 }
 0x80a   : > { %v5946_v10 = vpack.i.bf16 %v5348_v19, %v3657_v52 }
 0x80c   : > { %5947 = vrot.lane.b32.xlu1 %v5946_v10, %s6516_s26  ;;  %v5351_v59 = vpop.f32.mrb[70].mxu1 }
 0x80d   : > { %v3667_v34 = vpop.f32.mrb[71].mxu1 }
 0x80e   : > { %v5976_v39 = vpack.i.bf16 %v5351_v59, %v3667_v34 }
 0x810   : > { %v5374_v32 = vpop.f32.mrb[72].mxu1 }
 0x811   : > { %v4013_v3 = vpop.f32.mrb[73].mxu1 }
 0x812   : > { %v5951_v36 = vpack.i.bf16 %v5374_v32, %v4013_v3 }
 0x814   : > { %5952 = vrot.lane.b32.xlu1 %v5951_v36, %s6514_s8  ;;  %v5377_v22 = vpop.f32.mrb[74].mxu1 }
 0x815   : > { %v4023_v38 = vpop.f32.mrb[75].mxu1 }
 0x816   : > { %v5956_v14 = vpack.i.bf16 %v5377_v22, %v4023_v38  ;;  %v5873_v61 = vpop.permute.xlu1 %5872 }
 0x817   : > { %v5875_v23 = vunpack.i.h.bf16 %v5873_v61  ;;  %v5874_v45 = vunpack.i.l.bf16 %v5873_v61 }
 0x818   : > { %5967 = vrot.lane.b32.xlu1 %v5966_v24, %s6517_s2  ;;  %5957 = vrot.lane.b32.xlu0 %v5956_v14, %s6514_s8  ;;  %v5868_v24 = vpop.permute.xlu0 %5867 }
 0x819   : > { %v5870_v4 = vunpack.i.h.bf16 %v5868_v24  ;;  %v5869_v17 = vunpack.i.l.bf16 %v5868_v24  ;;  %v4287_v37 = vsel %vm4284_vm2, %v4278_v28, %v5874_v45  ;;  %v4288_v46 = vsel %vm4284_vm2, %v4279_v40, %v5875_v23 }
 0x81a   : > { %v5878_v60 = vpop.permute.xlu1 %5877 }
 0x81b   : > { %v5880_v29 = vunpack.i.h.bf16 %v5878_v60  ;;  %v5879_v62 = vunpack.i.l.bf16 %v5878_v60 }
 0x81c   : > { %5962 = vrot.lane.b32.xlu0 %v5961_v31, %s6518_s29 }
 0x81d   : > { %v8060_v58 = vsel %vm4284_vm2, %v4280_v18, %v5879_v62  ;;  %v8063_v2 = vsel %vm4284_vm2, %v4281_v35, %v5880_v29  ;;  %v4277_v35 = vsel %vm1057_vm0, %v7946_v5, %v5850_v7  ;;  %v4285_v5 = vsel %vm4284_vm2, %v4276_v21, %v5869_v17 }
 0x81e   : > { %v8070_v1 = vpop.permute.xlu0 %5882  ;;  %v4286_v54 = vsel %vm4284_vm2, %v4277_v35, %v5870_v4 }
 0x820   : > { %5977 = vrot.lane.b32.xlu0 %v5976_v39, %s6516_s26  ;;  %s6422_s26 = sshll.u32 %s6522_s9, 4  ;;  %s6423_s26 = int_to_ptr.vmem [resolvable:$false] %s6422_s26 }
 0x821   : > { %s6424_s2 = scalar_lea.vmem %s6423_s26, 2048  ;;  %p6425_p3 = scmp.lt.s32.totalorder %s8159_s4, %s6423_s26 }
 0x822   : > { %v5888_v57 = vpop.permute.xlu1 %5887  ;;  %p6426_p5 = scmp.lt.s32.totalorder %s6424_s2, %s6418_s25 }
 0x823   : > { %v5890_v18 = vunpack.i.h.bf16 %v5888_v57  ;;  %v5889_v0 = vunpack.i.l.bf16 %v5888_v57 }
 0x824   : > { %p6427_p9 = por %p6426_p5, %p6425_p3 }
 0x825   : > { %v4294_v49 = vsel %vm4293_vm3, %v4285_v5, %v5889_v0  ;;  %v4295_v20 = vsel %vm4293_vm3, %v4286_v54, %v5890_v18  ;;  %v5885_v18 = vunpack.i.h.bf16 %v8070_v1  ;;  %v5884_v0 = vunpack.i.l.bf16 %v8070_v1 }
 0x826   : > { %v5893_v27 = vpop.permute.xlu0 %5892  ;;  %p6428_p8 = pnand %p6427_p9, %p6421_p6 }
 0x827   : > { %v5895_v55 = vunpack.i.h.bf16 %v5893_v27  ;;  %v5894_v59 = vunpack.i.l.bf16 %v5893_v27 }
 0x82a   : > { %v8068_v31 = vpop.permute.xlu1 %5897 }
 0x82b   : > { %v5900_v45 = vunpack.i.h.bf16 %v8068_v31  ;;  %v5899_v35 = vunpack.i.l.bf16 %v8068_v31 }
 0x82d   : > { %v4298_v1 = vsel %vm4293_vm3, %v8060_v58, %v5899_v35  ;;  %v4299_v5 = vsel %vm4293_vm3, %v8063_v2, %v5900_v45 }
 0x82e   : > { %v8074_v30 = vpop.permute.xlu0 %5902 }
 0x832   : > { %v5908_v53 = vpop.permute.xlu1 %5907 }
 0x833   : > { %v5910_v44 = vunpack.i.h.bf16 %v5908_v53  ;;  %v5909_v25 = vunpack.i.l.bf16 %v5908_v53 }
 0x835   : > { %v5380_v9 = vpop.f32.mrb[76].mxu1  ;;  %v4303_v34 = vsel %vm4302_vm4, %v4294_v49, %v5909_v25  ;;  %v4304_v39 = vsel %vm4302_vm4, %v4295_v20, %v5910_v44  ;;  %v5905_v44 = vunpack.i.h.bf16 %v8074_v30  ;;  %v5904_v25 = vunpack.i.l.bf16 %v8074_v30 }
 0x836   : > { %v4033_v16 = vpop.f32.mrb[77].mxu1  ;;  %v4292_v30 = vsel %vm4284_vm2, %v8045_v47, %v5885_v18 }
 0x837   : > { %v5971_v8 = vpack.i.bf16 %v5380_v9, %v4033_v16  ;;  %v5913_v33 = vpop.permute.xlu0 %5912 }
 0x838   : > { %v5915_v3 = vunpack.i.h.bf16 %v5913_v33  ;;  %v5914_v36 = vunpack.i.l.bf16 %v5913_v33 }
 0x839   : > { %5972 = vrot.lane.b32.xlu1 %v5971_v8, %s6514_s8  ;;  %v5383_v56 = vpop.f32.mrb[78].mxu1 }
 0x83a   : > { %v4043_v43 = vpop.f32.mrb[79].mxu1 }
 0x83b   : > { %v5981_v6 = vpack.i.bf16 %v5383_v56, %v4043_v43  ;;  %v4296_v43 = vsel %vm4293_vm3, %v4287_v37, %v5894_v59  ;;  %v4291_v37 = vsel %vm4284_vm2, %v8049_v48, %v5884_v0 }
 0x83c   : > { %v4305_v53 = vsel %vm4302_vm4, %v4296_v43, %v5914_v36  ;;  %v4300_v58 = vsel %vm4293_vm3, %v4291_v37, %v5904_v25 }
 0x83d   : > { %5982 = vrot.lane.b32.xlu1 %v5981_v6, %s6514_s8  ;;  %v4297_v6 = vsel %vm4293_vm3, %v4288_v46, %v5895_v55  ;;  %s8349_s8 = sld [smem:[#allocation49_spill]] }
 0x83e   : > { %v4306_v27 = vsel %vm4302_vm4, %v4297_v6, %v5915_v3 }
 0x843   : > { %v8072_v63 = vpop.permute.xlu1 %5917  ;;  %v4791_v43 = vld [vmem:[%s8349_s8] ss:$0 sm:$0xff] }
 0x844   : > { %v5920_v21 = vunpack.i.h.bf16 %v8072_v63  ;;  %v5919_v40 = vunpack.i.l.bf16 %v8072_v63 }
 0x846   : > { %v4308_v46 = vsel %vm4302_vm4, %v4299_v5, %v5920_v21 }
 0x84f   : > { %v5923_v11 = vpop.permute.xlu1 %5922 }
 0x850   : > { %v5925_v13 = vunpack.i.h.bf16 %v5923_v11  ;;  %v5924_v50 = vunpack.i.l.bf16 %v5923_v11 }
 0x852   : > { %v4313_v22 = vsel %vm4311_vm5, %v4304_v39, %v5925_v13  ;;  %v4312_v14 = vsel %vm4311_vm5, %v4303_v34, %v5924_v50 }
 0x857   : > { %v5928_v41 = vpop.permute.xlu0 %5927 }
 0x858   : > { %v5930_v61 = vunpack.i.h.bf16 %v5928_v41  ;;  %v5929_v60 = vunpack.i.l.bf16 %v5928_v41 }
 0x85a   : > { %v4314_v42 = vsel %vm4311_vm5, %v4305_v53, %v5929_v60  ;;  %v4315_v33 = vsel %vm4311_vm5, %v4306_v27, %v5930_v61 }
 0x85b   : > { %v8076_v15 = vpop.permute.xlu1 %5932 }
 0x85c   : > { %v5935_v41 = vunpack.i.h.bf16 %v8076_v15  ;;  %v5934_v28 = vunpack.i.l.bf16 %v8076_v15  ;;  %v4307_v15 = vsel %vm4302_vm4, %v4298_v1, %v5919_v40 }
 0x85e   : > { %v4316_v2 = vsel %vm4311_vm5, %v4307_v15, %v5934_v28 }
 0x876   : > { %v5938_v12 = vpop.permute.xlu1 %5937 }
 0x877   : > { %v5940_v52 = vunpack.i.h.bf16 %v5938_v12  ;;  %v5939_v10 = vunpack.i.l.bf16 %v5938_v12 }
 0x879   : > { %v4322_v9 = vsel %vm4320_vm6, %v4313_v22, %v5940_v52  ;;  %v4321_v56 = vsel %vm4320_vm6, %v4312_v14, %v5939_v10  ;;  %v4317_v52 = vsel %vm4311_vm5, %v4308_v46, %v5935_v41 }
 0x87a   : > { %v5943_v32 = vpop.permute.xlu0 %5942 }
 0x87b   : > { %v5945_v16 = vunpack.i.h.bf16 %v5943_v32  ;;  %v5944_v8 = vunpack.i.l.bf16 %v5943_v32 }
 0x87d   : > { %v4323_v51 = vsel %vm4320_vm6, %v4314_v42, %v5944_v8  ;;  %v4324_v12 = vsel %vm4320_vm6, %v4315_v33, %v5945_v16 }
 0x87e   : > { %v8090_v19 = vpop.permute.xlu1 %5947 }
 0x87f   : > { %v5950_v50 = vunpack.i.h.bf16 %v8090_v19  ;;  %v5949_v31 = vunpack.i.l.bf16 %v8090_v19  ;;  %v4301_v19 = vsel %vm4293_vm3, %v4292_v30, %v5905_v44 }
 0x881   : > { %v4325_v47 = vsel %vm4320_vm6, %v4316_v2, %v5949_v31  ;;  %v4326_v48 = vsel %vm4320_vm6, %v4317_v52, %v5950_v50 }
 0x886   : > { %v5953_v38 = vpop.permute.xlu1 %5952 }
 0x887   : > { %v5955_v29 = vunpack.i.h.bf16 %v5953_v38  ;;  %v5954_v62 = vunpack.i.l.bf16 %v5953_v38 }
 0x889   : > { %v4330_v57 = vsel %vm4329_vm7, %v4321_v56, %v5954_v62  ;;  %v4331_v24 = vsel %vm4329_vm7, %v4322_v9, %v5955_v29 }
 0x88a   : > { %5416 = vmatprep.mubr.f32.mxu0 %v4330_v57  ;;  %v5958_v11 = vpop.permute.xlu0 %5957  ;;  %v5968_v13 = vpop.permute.xlu1 %5967 }
 0x88b   : > { %v5960_v7 = vunpack.i.h.bf16 %v5958_v11  ;;  %v5959_v26 = vunpack.i.l.bf16 %v5958_v11  ;;  %5417 = vmatmul.mubr.f32.vlgmr.msra.gmra.mrb[68].mxu0 %v4331_v24  ;;  %v5970_v3 = vunpack.i.h.bf16 %v5968_v13  ;;  %v5969_v36 = vunpack.i.l.bf16 %v5968_v13 }
 0x88d   : > { %v4332_v4 = vsel %vm4329_vm7, %v4323_v51, %v5959_v26  ;;  %v4333_v17 = vsel %vm4329_vm7, %v4324_v12, %v5960_v7 }
 0x88e   : > { %5419 = vmatprep.mubr.f32.mxu0 %v4332_v4  ;;  %v5963_v23 = vpop.permute.xlu0 %5962 }
 0x88f   : > { %5420 = vmatmul.mubr.f32.gmra.mrb[70].mxu0 %v4333_v17  ;;  %v5965_v63 = vunpack.i.h.bf16 %v5963_v23  ;;  %v5964_v54 = vunpack.i.l.bf16 %v5963_v23 }
 0x891   : > { %v4310_v59 = vsel %vm4302_vm4, %v4301_v19, %v5965_v63  ;;  %v4309_v34 = vsel %vm4302_vm4, %v4300_v58, %v5964_v54 }
 0x892   : > { %v5978_v49 = vpop.permute.xlu0 %5977  ;;  %v4318_v29 = vsel %vm4311_vm5, %v4309_v34, %v5969_v36  ;;  %v4319_v62 = vsel %vm4311_vm5, %v4310_v59, %v5970_v3 }
 0x893   : > { %v5980_v39 = vunpack.i.h.bf16 %v5978_v49  ;;  %v5979_v32 = vunpack.i.l.bf16 %v5978_v49 }
 0x895   : > { %v4327_v9 = vsel %vm4320_vm6, %v4318_v29, %v5979_v32  ;;  %v4328_v16 = vsel %vm4320_vm6, %v4319_v62, %v5980_v39 }
 0x8ab   : > { %v5973_v20 = vpop.permute.xlu1 %5972 }
 0x8ac   : > { %v5975_v10 = vunpack.i.h.bf16 %v5973_v20  ;;  %v5974_v55 = vunpack.i.l.bf16 %v5973_v20 }
 0x8ae   : > { %v4334_v22 = vsel %vm4329_vm7, %v4325_v47, %v5974_v55  ;;  %v4335_v38 = vsel %vm4329_vm7, %v4326_v48, %v5975_v10 }
 0x8af   : > { %5422 = vmatprep.mubr.f32.mxu0 %v4334_v22  ;;  %v5983_v14 = vpop.permute.xlu1 %5982 }
 0x8b0   : > { %v5985_v61 = vunpack.i.h.bf16 %v5983_v14  ;;  %v5984_v60 = vunpack.i.l.bf16 %v5983_v14  ;;  %5423 = vmatmul.mubr.f32.gmra.mrb[72].mxu0 %v4335_v38 }
 0x8b2   : > { %v4336_v8 = vsel %vm4329_vm7, %v4327_v9, %v5984_v60  ;;  %v4337_v56 = vsel %vm4329_vm7, %v4328_v16, %v5985_v61 }
 0x8b3   : > { %5425 = vmatprep.mubr.f32.mxu0 %v4336_v8 }
 0x8b4   : > { %5426 = vmatmul.mubr.f32.gmra.mrb[74].mxu0 %v4337_v56 }
 0x95e   : > { %v5418_v6 = vpop.f32.mrb[68].mxu0 }
 0x95f   : > { %v4433_v57 = vadd.f32 %v5418_v6, %v4791_v43  ;;  %v4427_v24 = vpop.f32.mrb[69].mxu0 }
 0x960   : > { %v4428_v53 = vadd.f32 %v4791_v43, %v4427_v24 }
 0x961   : > { %4467 = vst [vmem:[%s529_s10 + $0x8] sm:$0xff] %v4433_v57 }
 0x962   : > { %4466 = vst [vmem:[%s529_s10] sm:$0xff] %v4428_v53  ;;  %v5421_v27 = vpop.f32.mrb[70].mxu0 }
 0x963   : > { %v4443_v11 = vadd.f32 %v5421_v27, %v4791_v43  ;;  %v4437_v7 = vpop.f32.mrb[71].mxu0 }
 0x964   : > { %v4438_v26 = vadd.f32 %v4791_v43, %v4437_v7 }
 0x965   : > { %4469 = vst [vmem:[%s529_s10 + $0x18] sm:$0xff] %v4443_v11 }
 0x966   : > { %4468 = vst [vmem:[%s529_s10 + $0x10] sm:$0xff] %v4438_v26 }
 0x983   : > { %v5424_v42 = vpop.f32.mrb[72].mxu0 }
 0x984   : > { %v4453_v33 = vadd.f32 %v5424_v42, %v4791_v43  ;;  %v4447_v51 = vpop.f32.mrb[73].mxu0 }
 0x985   : > { %v4448_v12 = vadd.f32 %v4791_v43, %v4447_v51 }
 0x986   : > { %4471 = vst [vmem:[%s529_s10 + $0x28] sm:$0xff] %v4453_v33 }
 0x987   : > { %4470 = vst [vmem:[%s529_s10 + $0x20] sm:$0xff] %v4448_v12  ;;  %v5427_v4 = vpop.f32.mrb[74].mxu0 }
 0x988   : > { %v4463_v17 = vadd.f32 %v5427_v4, %v4791_v43  ;;  %v4457_v23 = vpop.f32.mrb[75].mxu0 }
 0x989   : > { %v4458_v45 = vadd.f32 %v4791_v43, %v4457_v23 }
 0x98a   : > { %4473 = vst [vmem:[%s529_s10 + $0x38] sm:$0xff] %v4463_v17 }
 0x98b   : > { %4472 = vst [vmem:[%s529_s10 + $0x30] sm:$0xff] %v4458_v45 }
 0x98c   : > { %6431 = shalt.err (!%p6428_p8)
}
 0x98d   : > { %s6432_s29 = scalar_lea.hbm %s8164_s19, 1024  ;;  %s6436_s17 = scalar_lea.hbm %s8350_s13, 2048 }
 0x98e   : > { %p6433_p11 = scmp.ne.s32.totalorder %s8164_s19, %s6432_s29  ;;  %p6437_p1 = scmp.lt.u32.totalorder %s8164_s19, %s8350_s13 }
 0x98f   : > { %p6438_p2 = scmp.lt.u32.totalorder %s6436_s17, %s6432_s29  ;;  %p6440_p0 = scmp.lt.u32.totalorder %s6432_s29, %s8164_s19 }
 0x990   : > { %p6434_p7 = pnand %p6433_p11, %p6758_p10 }
 0x991   : > { %p6439_p13 = por %p6438_p2, %p6437_p1 }
 0x992   : > { %p6435_p12 = pneg %p6434_p7 }
 0x993   : > { %p6441_p4 = por %p6440_p0, %p6439_p13 }
 0x995   : > { %p6442_p6 = pnand %p6441_p4, %p6435_p12 }
 0x997   : > { %6445 = shalt.err (!%p6442_p6)
}
 0x998   : > { %s6523_s8 = smov 128   ;;  %s6524_s10 = smov 8  }
 0x999   : > { %5688 = dma.vmem_to_hbm [thread:$0]  (%p6758_p10), %s8159_s4, 1024, %s8164_s19, %s4475_s15, %s6523_s8, %s6523_s8, %s6524_s10  }
 0x99a PF: > { %s8351_s16 = sld [smem:[#allocation20_spill]]  ;;  %s8352_s14 = sld [smem:[#allocation21_spill]] }
 0x99b   : > { %p8354_p5 = scmp.ge.s32.totalorder %s6500_s24, 2 }
 0x9a0   : > { %s4503_s7 = sand.u32 1, %s8351_s16   ;;  %p8353_p3 = scmp.ne.s32.totalorder %s8352_s14, 0 }
 0x9a1   : > { %s4504_s25 = scalar_lea.sflag [#allocation4], %s4503_s7 }
 0x9a2   : > { %p5711_p9 = pnand %p8354_p5, %p8353_p3 }
 0x9a4   : > { %6483 = dma.done.wait (!%p5711_p9), %s4504_s25, 1024  }
 0x9a5   : > { %6485 = vsyncadd (!%p5711_p9), %s4504_s25, 4294966272  ;;  %s8355_s9 = smov %s6748_s21  ;;  %p30_p8 = scmp.ge.s32.totalorder %s6748_s21, 4  }
 0x9a6   : > { %s8356_s21 = smov %s6492_s22  ;;  %s8357_s22 = smov %s6496_s23 }
 0x9a7   : > { %s8358_s23 = smov %s6764_s12  ;;  %s8359_s24 = smov %s8355_s9 }
 0x9a8   :  { %32 = sbr.rel (!%p30_p8) target bundleno = 18 (0x12), region = 142 }
 0x9af   :  { %4509 = vsyncpa [#allocation3], 1 }
 0x9b0   :  { %4511 = vsyncpa [#allocation3 + $0x1], 1 }
 0x9b1   :  { %4512 = vsyncpa [#allocation6], 1 }
 0x9b2   :  { %4514 = vsyncpa [#allocation6 + $0x1], 1 }
 0x9b3   :  { %4515 = vsyncpa [#allocation9], 1 }
 0x9b4   :  { %4516 = vsyncpa [#allocation12], 1 }
 0x9b5   :  { %4517 = vsyncpa [#allocation4], 1 }
 0x9b6   :  { %4519 = vsyncpa [#allocation4 + $0x1], 1 }

</bundles_post_ra>
